<compile_context>
chip_gen: v6e
topology: v6e:2x2x1
jax: 0.10.0
libtpu: 0.0.40
codegen_flags: <defaults>
</compile_context>

<pallas_src>
import math

import jax
import jax.numpy as jnp
from jax.experimental import pallas as pl
from jax.experimental.pallas import tpu as pltpu

EMBED_DIM = 64            # module default embed_dim
HIDDEN = 256              # block1 hidden width
BETA0, BETA1 = 0.1, 20.0  # linear VP noise schedule used by marginal_prob_std


def _round_up(v, m):
    return ((v + m - 1) // m) * m


def _silu(v):
    # x * sigmoid(x) == x * 0.5 * (1 + tanh(0.5 x)): a single EUP push
    # (tanh) instead of exp + reciprocal.
    return 0.5 * v * (1.0 + jnp.tanh(0.5 * v))


def mlp_generate_kernel(t_ref, x_ref, c_ref,
                        wg_ref,
                        we1s_ref, we1c_ref, be1_ref,
                        we2_ref, be2_ref,
                        wc_ref, bc_ref,
                        wb1x_ref, wb1e_ref, wb1c_ref, bb1_ref,
                        wb2_ref, bb2_ref,
                        wb3_ref, bb3_ref,
                        wd_ref, bd_ref,
                        o_ref):
    bf16 = jnp.bfloat16
    f32 = jnp.float32

    t = t_ref[...]                                   # (TB, 1) f32

    # GaussianFourierProjection(embed_dim=32): 2*pi already folded into wg.
    xp = t * wg_ref[...]                             # (TB, 16) f32
    sin_t = jnp.sin(xp)
    cos_t = jnp.cos(xp)

    # embed: Linear(32, 64) -> SiLU -> Linear(64, 32) -> SiLU
    # concat-free: gfp @ We1 == sin @ We1[:16] + cos @ We1[16:]
    e = (jnp.dot(sin_t.astype(bf16), we1s_ref[...], preferred_element_type=f32)
         + jnp.dot(cos_t.astype(bf16), we1c_ref[...], preferred_element_type=f32)
         + be1_ref[...])
    e = _silu(e)
    e = _silu(jnp.dot(e.astype(bf16), we2_ref[...], preferred_element_type=f32)
              + be2_ref[...])

    # pre_sort_condition: Linear(cond_dim, 32) -> SiLU  (cond already bf16)
    c = _silu(jnp.dot(c_ref[...], wc_ref[...], preferred_element_type=f32)
              + bc_ref[...])

    # block1 layer 1: cat([x, embed_t, embed_c]) @ Wb1 as three partial dots.
    h = (jnp.dot(x_ref[...], wb1x_ref[...], preferred_element_type=f32)
         + jnp.dot(e.astype(bf16), wb1e_ref[...], preferred_element_type=f32)
         + jnp.dot(c.astype(bf16), wb1c_ref[...], preferred_element_type=f32)
         + bb1_ref[...])
    h = _silu(h)
    h = _silu(jnp.dot(h.astype(bf16), wb2_ref[...], preferred_element_type=f32)
              + bb2_ref[...])
    h = _silu(jnp.dot(h.astype(bf16), wb3_ref[...], preferred_element_type=f32)
              + bb3_ref[...])

    # decoder: Linear(256, out_dim)
    h = jnp.dot(h.astype(bf16), wd_ref[...], preferred_element_type=f32) + bd_ref[...]

    # h / marginal_prob_std(t)[1][:, None]   (VP-SDE linear schedule std)
    log_alpha = -0.25 * (t * t) * (BETA1 - BETA0) - 0.5 * t * BETA0
    std = jnp.sqrt(1.0 - jnp.exp(2.0 * log_alpha))   # (TB, 1) f32
    o_ref[...] = h * pl.reciprocal(std, approx=True)


def mlp_generate_net(t, x, cond, kparams, *, tb=2048):
    """t: (B,), x: (B, out_dim), cond: (B, cond_dim), kparams from
    prepare_kernel_params.  Returns (B, out_dim) f32."""
    B, out_dim = x.shape
    cond_dim = cond.shape[1]

    # Adaptive batch tile:
    #  * ALIGN=16 sublanes (bf16-packed x/cond inputs),
    #  * at least 2 grid steps when the batch allows (v7x megacore sharding),
    #  * TB chosen to cover B with minimal padding (often exactly).
    ALIGN = 16
    tb_cap = max(ALIGN, min(tb, _round_up(B, ALIGN)))
    nb = max(pl.cdiv(B, tb_cap), 2 if B >= 2 * ALIGN else 1)
    TB = _round_up(pl.cdiv(B, nb), ALIGN)
    nb = pl.cdiv(B, TB)
    Bp = nb * TB

    t2 = t.reshape(B, 1).astype(jnp.float32)
    xb = x.astype(jnp.bfloat16)        # consumed only as bf16 MXU inputs
    cb = cond.astype(jnp.bfloat16)
    if Bp != B:
        pad = Bp - B
        t2 = jnp.pad(t2, ((0, pad), (0, 0)), constant_values=1.0)  # keep std != 0
        xb = jnp.pad(xb, ((0, pad), (0, 0)))
        cb = jnp.pad(cb, ((0, pad), (0, 0)))

    def batch_spec(feat):
        return pl.BlockSpec((TB, feat), lambda i: (i, 0))

    def weight_spec(p):
        # Full-size block, same block index for every grid step -> stays
        # VMEM-resident (loaded once, not re-DMA'd).
        return pl.BlockSpec(p.shape, lambda i: (0, 0))

    out = pl.pallas_call(
        mlp_generate_kernel,
        out_shape=jax.ShapeDtypeStruct((Bp, out_dim), jnp.float32),
        grid=(nb,),
        in_specs=[batch_spec(1), batch_spec(out_dim), batch_spec(cond_dim)]
                 + [weight_spec(p) for p in kparams],
        out_specs=pl.BlockSpec((TB, out_dim), lambda i: (i, 0)),
        compiler_params=pltpu.CompilerParams(
            dimension_semantics=("parallel",),
            vmem_limit_bytes=48 * 1024 * 1024),
    )(t2, xb, cb, *kparams)

    return out if Bp == B else out[:B]


def init_raw_params(key, out_dim, cond_dim, embed_dim=EMBED_DIM):
    """Deterministic synthetic parameters (PyTorch Linear-style init), f32,
    laid out as (in, out)."""
    half = embed_dim // 2
    ks = jax.random.split(key, 8)

    def lin(k, fan_in, fan_out):
        kw, kb = jax.random.split(k)
        lim = 1.0 / math.sqrt(fan_in)
        w = jax.random.uniform(kw, (fan_in, fan_out), jnp.float32, -lim, lim)
        b = jax.random.uniform(kb, (1, fan_out), jnp.float32, -lim, lim)
        return w, b

    # GFP(embed_dim=32) -> W shape (16,), frozen, scale 30.
    wg = (jax.random.normal(ks[0], (half // 2,)) * 30.0).astype(jnp.float32)
    we1, be1 = lin(ks[1], half, embed_dim)           # Linear(32, 64)
    we2, be2 = lin(ks[2], embed_dim, half)           # Linear(64, 32)
    wc, bc = lin(ks[3], cond_dim, half)              # pre_sort_condition Dense
    wb1, bb1 = lin(ks[4], out_dim + embed_dim, HIDDEN)
    wb2, bb2 = lin(ks[5], HIDDEN, HIDDEN)
    wb3, bb3 = lin(ks[6], HIDDEN, HIDDEN)
    wd, bd = lin(ks[7], HIDDEN, out_dim)             # decoder Dense
    return (wg, we1, be1, we2, be2, wc, bc,
            wb1, bb1, wb2, bb2, wb3, bb3, wd, bd)


def prepare_kernel_params(raw, out_dim, embed_dim=EMBED_DIM):
    """One-time transform: fold 2*pi into the GFP weights, split the
    concat-feeding weight matrices, and cast matmul weights to bf16.
    Biases stay f32."""
    (wg, we1, be1, we2, be2, wc, bc,
     wb1, bb1, wb2, bb2, wb3, bb3, wd, bd) = raw
    half = embed_dim // 2
    quarter = half // 2
    bf16 = jnp.bfloat16
    f32 = jnp.float32

    wg2 = (wg.reshape(1, quarter) * (2.0 * math.pi)).astype(f32)

    we1s = we1[:quarter].astype(bf16)                # sin rows of Linear(32, 64)
    we1c = we1[quarter:].astype(bf16)                # cos rows
    wb1x = wb1[:out_dim].astype(bf16)                # x rows of Linear(out+64, 256)
    wb1e = wb1[out_dim:out_dim + half].astype(bf16)  # embed_t rows
    wb1c = wb1[out_dim + half:].astype(bf16)         # embed_c rows

    return (wg2,
            we1s, we1c, be1.astype(f32),
            we2.astype(bf16), be2.astype(f32),
            wc.astype(bf16), bc.astype(f32),
            wb1x, wb1e, wb1c, bb1.astype(f32),
            wb2.astype(bf16), bb2.astype(f32),
            wb3.astype(bf16), bb3.astype(f32),
            wd.astype(bf16), bd.astype(f32))


def reference_forward(t, x, cond, raw, mixed):
    """Pure-JAX reference of the PyTorch forward.
    mixed=True mirrors the kernel's bf16-in/f32-acc matmuls; mixed=False is
    the original full-f32 module semantics."""
    (wg, we1, be1, we2, be2, wc, bc,
     wb1, bb1, wb2, bb2, wb3, bb3, wd, bd) = raw
    f32 = jnp.float32
    cast = (lambda a: a.astype(jnp.bfloat16)) if mixed else (lambda a: a.astype(f32))

    def dot(a, w):
        return jnp.dot(cast(a), cast(w), preferred_element_type=f32)

    def silu(v):
        return v * (1.0 / (1.0 + jnp.exp(-v)))

    tb = t.reshape(-1, 1).astype(f32)
    wg2 = (wg.reshape(1, -1) * (2.0 * math.pi)).astype(f32)
    xp = tb * wg2
    gfp = jnp.concatenate([jnp.sin(xp), jnp.cos(xp)], axis=-1)
    e = silu(dot(gfp, we1) + be1)
    e = silu(dot(e, we2) + be2)
    c = silu(dot(cond, wc) + bc)
    h = jnp.concatenate([x, e, c], axis=-1)
    h = silu(dot(h, wb1) + bb1)
    h = silu(dot(h, wb2) + bb2)
    h = silu(dot(h, wb3) + bb3)
    h = dot(h, wd) + bd
    log_alpha = -0.25 * tb * tb * (BETA1 - BETA0) - 0.5 * tb * BETA0
    std = jnp.sqrt(1.0 - jnp.exp(2.0 * log_alpha))
    return h / std


if __name__ == "__main__":
    # Small shapes implied by the module: x is (B, output_dim), t is (B,),
    # condition is (B, input_dim - output_dim).
    B = 256
    input_dim = 16
    output_dim = 8
    cond_dim = input_dim - output_dim

    key = jax.random.PRNGKey(0)
    k_x, k_t, k_c, k_p = jax.random.split(key, 4)
    x = jax.random.normal(k_x, (B, output_dim), jnp.float32)
    t = jax.random.uniform(k_t, (B,), jnp.float32, minval=0.05, maxval=1.0)
    cond = jax.random.normal(k_c, (B, cond_dim), jnp.float32)

    raw = init_raw_params(k_p, output_dim, cond_dim)
    kparams = prepare_kernel_params(raw, output_dim)

    # Adaptive tiling at B=256 picks TB=128, grid=(2,): exercises the
    # multi-step grid and both TensorCores on v7x.
    out = mlp_generate_net(t, x, cond, kparams)
    out = jax.block_until_ready(out)
    assert out.shape == (B, output_dim)

    # Tight check against a reference that mirrors the kernel's precision
    # (bf16 MXU inputs, f32 accumulation / elementwise).
    ref_mixed = reference_forward(t, x, cond, raw, mixed=True)
    assert jnp.allclose(out, ref_mixed, atol=5e-3, rtol=5e-3), \
        "mismatch vs mixed-precision reference"

    # Loose sanity check against the original full-f32 module semantics
    # (difference is the bf16 matmul quantization only).
    ref_f32 = reference_forward(t, x, cond, raw, mixed=False)
    assert jnp.allclose(out, ref_f32, atol=1e-1, rtol=1e-1), \
        "mismatch vs f32 reference"

    print("KERNEL_OK")
</pallas_src>

<mosaic_0001>
module attributes {stable_mosaic.version = 11 : i64} {
  func.func @mlp_generate_kernel(%arg0: i32, %arg1: memref<128x1xf32, #tpu.memory_space<vmem>>, %arg2: memref<128x8xbf16, #tpu.memory_space<vmem>>, %arg3: memref<128x8xbf16, #tpu.memory_space<vmem>>, %arg4: memref<1x16xf32, #tpu.memory_space<vmem>>, %arg5: memref<16x64xbf16, #tpu.memory_space<vmem>>, %arg6: memref<16x64xbf16, #tpu.memory_space<vmem>>, %arg7: memref<1x64xf32, #tpu.memory_space<vmem>>, %arg8: memref<64x32xbf16, #tpu.memory_space<vmem>>, %arg9: memref<1x32xf32, #tpu.memory_space<vmem>>, %arg10: memref<8x32xbf16, #tpu.memory_space<vmem>>, %arg11: memref<1x32xf32, #tpu.memory_space<vmem>>, %arg12: memref<8x256xbf16, #tpu.memory_space<vmem>>, %arg13: memref<32x256xbf16, #tpu.memory_space<vmem>>, %arg14: memref<32x256xbf16, #tpu.memory_space<vmem>>, %arg15: memref<1x256xf32, #tpu.memory_space<vmem>>, %arg16: memref<256x256xbf16, #tpu.memory_space<vmem>>, %arg17: memref<1x256xf32, #tpu.memory_space<vmem>>, %arg18: memref<256x256xbf16, #tpu.memory_space<vmem>>, %arg19: memref<1x256xf32, #tpu.memory_space<vmem>>, %arg20: memref<256x8xbf16, #tpu.memory_space<vmem>>, %arg21: memref<1x8xf32, #tpu.memory_space<vmem>>, %arg22: memref<128x8xf32, #tpu.memory_space<vmem>>) attributes {dimension_semantics = [#tpu.dimension_semantics<parallel>], iteration_bounds = array<i64: 2>, scalar_prefetch = 0 : i64, scratch_operands = 0 : i64, tpu.core_type = #tpu.core_type<tc>, window_params = [{transform_indices = @transform_0, window_bounds = array<i64: 128, 1>}, {transform_indices = @transform_1, window_bounds = array<i64: 128, 8>}, {transform_indices = @transform_2, window_bounds = array<i64: 128, 8>}, {pipeline_mode = #tpu.pipeline_mode<synchronous>, transform_indices = @transform_3, window_bounds = array<i64: 1, 16>}, {pipeline_mode = #tpu.pipeline_mode<synchronous>, transform_indices = @transform_4, window_bounds = array<i64: 16, 64>}, {pipeline_mode = #tpu.pipeline_mode<synchronous>, transform_indices = @transform_5, window_bounds = array<i64: 16, 64>}, {pipeline_mode = #tpu.pipeline_mode<synchronous>, transform_indices = @transform_6, window_bounds = array<i64: 1, 64>}, {pipeline_mode = #tpu.pipeline_mode<synchronous>, transform_indices = @transform_7, window_bounds = array<i64: 64, 32>}, {pipeline_mode = #tpu.pipeline_mode<synchronous>, transform_indices = @transform_8, window_bounds = array<i64: 1, 32>}, {pipeline_mode = #tpu.pipeline_mode<synchronous>, transform_indices = @transform_9, window_bounds = array<i64: 8, 32>}, {pipeline_mode = #tpu.pipeline_mode<synchronous>, transform_indices = @transform_10, window_bounds = array<i64: 1, 32>}, {pipeline_mode = #tpu.pipeline_mode<synchronous>, transform_indices = @transform_11, window_bounds = array<i64: 8, 256>}, {pipeline_mode = #tpu.pipeline_mode<synchronous>, transform_indices = @transform_12, window_bounds = array<i64: 32, 256>}, {pipeline_mode = #tpu.pipeline_mode<synchronous>, transform_indices = @transform_13, window_bounds = array<i64: 32, 256>}, {pipeline_mode = #tpu.pipeline_mode<synchronous>, transform_indices = @transform_14, window_bounds = array<i64: 1, 256>}, {pipeline_mode = #tpu.pipeline_mode<synchronous>, transform_indices = @transform_15, window_bounds = array<i64: 256, 256>}, {pipeline_mode = #tpu.pipeline_mode<synchronous>, transform_indices = @transform_16, window_bounds = array<i64: 1, 256>}, {pipeline_mode = #tpu.pipeline_mode<synchronous>, transform_indices = @transform_17, window_bounds = array<i64: 256, 256>}, {pipeline_mode = #tpu.pipeline_mode<synchronous>, transform_indices = @transform_18, window_bounds = array<i64: 1, 256>}, {pipeline_mode = #tpu.pipeline_mode<synchronous>, transform_indices = @transform_19, window_bounds = array<i64: 256, 8>}, {pipeline_mode = #tpu.pipeline_mode<synchronous>, transform_indices = @transform_20, window_bounds = array<i64: 1, 8>}, {transform_indices = @transform_21, window_bounds = array<i64: 128, 8>}]} {
    %c0 = arith.constant 0 : index
    %c0_0 = arith.constant 0 : index
    %0 = vector.load %arg1[%c0, %c0_0] : memref<128x1xf32, #tpu.memory_space<vmem>>, vector<128x1xf32>
    %c0_1 = arith.constant 0 : index
    %c0_2 = arith.constant 0 : index
    %1 = vector.load %arg4[%c0_1, %c0_2] : memref<1x16xf32, #tpu.memory_space<vmem>>, vector<1x16xf32>
    %2 = vector.broadcast %0 : vector<128x1xf32> to vector<128x16xf32>
    %3 = vector.broadcast %1 : vector<1x16xf32> to vector<128x16xf32>
    %4 = arith.mulf %2, %3 : vector<128x16xf32>
    %5 = math.sin %4 : vector<128x16xf32>
    %6 = math.cos %4 : vector<128x16xf32>
    %7 = arith.truncf %5 : vector<128x16xf32> to vector<128x16xbf16>
    %c0_3 = arith.constant 0 : index
    %c0_4 = arith.constant 0 : index
    %8 = vector.load %arg5[%c0_3, %c0_4] : memref<16x64xbf16, #tpu.memory_space<vmem>>, vector<16x64xbf16>
    %cst = arith.constant dense<0.000000e+00> : vector<128x64xf32>
    %9 = tpu.matmul %7, %8, %cst {dimension_numbers = #tpu.dot_dimension_numbers<[1], [0], [0], [1], [0, 0, 1, 1], [], []>} : vector<128x16xbf16>, vector<16x64xbf16>, vector<128x64xf32> -> vector<128x64xf32>
    %10 = arith.truncf %6 : vector<128x16xf32> to vector<128x16xbf16>
    %c0_5 = arith.constant 0 : index
    %c0_6 = arith.constant 0 : index
    %11 = vector.load %arg6[%c0_5, %c0_6] : memref<16x64xbf16, #tpu.memory_space<vmem>>, vector<16x64xbf16>
    %cst_7 = arith.constant dense<0.000000e+00> : vector<128x64xf32>
    %12 = tpu.matmul %10, %11, %cst_7 {dimension_numbers = #tpu.dot_dimension_numbers<[1], [0], [0], [1], [0, 0, 1, 1], [], []>} : vector<128x16xbf16>, vector<16x64xbf16>, vector<128x64xf32> -> vector<128x64xf32>
    %13 = arith.addf %9, %12 : vector<128x64xf32>
    %c0_8 = arith.constant 0 : index
    %c0_9 = arith.constant 0 : index
    %14 = vector.load %arg7[%c0_8, %c0_9] : memref<1x64xf32, #tpu.memory_space<vmem>>, vector<1x64xf32>
    %15 = vector.broadcast %14 : vector<1x64xf32> to vector<128x64xf32>
    %16 = arith.addf %13, %15 : vector<128x64xf32>
    %cst_10 = arith.constant 5.000000e-01 : f32
    %17 = vector.broadcast %cst_10 : f32 to vector<128x64xf32>
    %18 = arith.mulf %17, %16 : vector<128x64xf32>
    %cst_11 = arith.constant 5.000000e-01 : f32
    %19 = vector.broadcast %cst_11 : f32 to vector<128x64xf32>
    %20 = arith.mulf %19, %16 : vector<128x64xf32>
    %21 = math.tanh %20 : vector<128x64xf32>
    %cst_12 = arith.constant 1.000000e+00 : f32
    %22 = vector.broadcast %cst_12 : f32 to vector<128x64xf32>
    %23 = arith.addf %22, %21 : vector<128x64xf32>
    %24 = arith.mulf %18, %23 : vector<128x64xf32>
    %25 = arith.truncf %24 : vector<128x64xf32> to vector<128x64xbf16>
    %c0_13 = arith.constant 0 : index
    %c0_14 = arith.constant 0 : index
    %26 = vector.load %arg8[%c0_13, %c0_14] : memref<64x32xbf16, #tpu.memory_space<vmem>>, vector<64x32xbf16>
    %cst_15 = arith.constant dense<0.000000e+00> : vector<128x32xf32>
    %27 = tpu.matmul %25, %26, %cst_15 {dimension_numbers = #tpu.dot_dimension_numbers<[1], [0], [0], [1], [0, 0, 1, 1], [], []>} : vector<128x64xbf16>, vector<64x32xbf16>, vector<128x32xf32> -> vector<128x32xf32>
    %c0_16 = arith.constant 0 : index
    %c0_17 = arith.constant 0 : index
    %28 = vector.load %arg9[%c0_16, %c0_17] : memref<1x32xf32, #tpu.memory_space<vmem>>, vector<1x32xf32>
    %29 = vector.broadcast %28 : vector<1x32xf32> to vector<128x32xf32>
    %30 = arith.addf %27, %29 : vector<128x32xf32>
    %cst_18 = arith.constant 5.000000e-01 : f32
    %31 = vector.broadcast %cst_18 : f32 to vector<128x32xf32>
    %32 = arith.mulf %31, %30 : vector<128x32xf32>
    %cst_19 = arith.constant 5.000000e-01 : f32
    %33 = vector.broadcast %cst_19 : f32 to vector<128x32xf32>
    %34 = arith.mulf %33, %30 : vector<128x32xf32>
    %35 = math.tanh %34 : vector<128x32xf32>
    %cst_20 = arith.constant 1.000000e+00 : f32
    %36 = vector.broadcast %cst_20 : f32 to vector<128x32xf32>
    %37 = arith.addf %36, %35 : vector<128x32xf32>
    %38 = arith.mulf %32, %37 : vector<128x32xf32>
    %c0_21 = arith.constant 0 : index
    %c0_22 = arith.constant 0 : index
    %39 = vector.load %arg3[%c0_21, %c0_22] : memref<128x8xbf16, #tpu.memory_space<vmem>>, vector<128x8xbf16>
    %c0_23 = arith.constant 0 : index
    %c0_24 = arith.constant 0 : index
    %40 = vector.load %arg10[%c0_23, %c0_24] : memref<8x32xbf16, #tpu.memory_space<vmem>>, vector<8x32xbf16>
    %cst_25 = arith.constant dense<0.000000e+00> : vector<128x32xf32>
    %41 = tpu.matmul %39, %40, %cst_25 {dimension_numbers = #tpu.dot_dimension_numbers<[1], [0], [0], [1], [0, 0, 1, 1], [], []>} : vector<128x8xbf16>, vector<8x32xbf16>, vector<128x32xf32> -> vector<128x32xf32>
    %c0_26 = arith.constant 0 : index
    %c0_27 = arith.constant 0 : index
    %42 = vector.load %arg11[%c0_26, %c0_27] : memref<1x32xf32, #tpu.memory_space<vmem>>, vector<1x32xf32>
    %43 = vector.broadcast %42 : vector<1x32xf32> to vector<128x32xf32>
    %44 = arith.addf %41, %43 : vector<128x32xf32>
    %cst_28 = arith.constant 5.000000e-01 : f32
    %45 = vector.broadcast %cst_28 : f32 to vector<128x32xf32>
    %46 = arith.mulf %45, %44 : vector<128x32xf32>
    %cst_29 = arith.constant 5.000000e-01 : f32
    %47 = vector.broadcast %cst_29 : f32 to vector<128x32xf32>
    %48 = arith.mulf %47, %44 : vector<128x32xf32>
    %49 = math.tanh %48 : vector<128x32xf32>
    %cst_30 = arith.constant 1.000000e+00 : f32
    %50 = vector.broadcast %cst_30 : f32 to vector<128x32xf32>
    %51 = arith.addf %50, %49 : vector<128x32xf32>
    %52 = arith.mulf %46, %51 : vector<128x32xf32>
    %c0_31 = arith.constant 0 : index
    %c0_32 = arith.constant 0 : index
    %53 = vector.load %arg2[%c0_31, %c0_32] : memref<128x8xbf16, #tpu.memory_space<vmem>>, vector<128x8xbf16>
    %c0_33 = arith.constant 0 : index
    %c0_34 = arith.constant 0 : index
    %54 = vector.load %arg12[%c0_33, %c0_34] : memref<8x256xbf16, #tpu.memory_space<vmem>>, vector<8x256xbf16>
    %cst_35 = arith.constant dense<0.000000e+00> : vector<128x256xf32>
    %55 = tpu.matmul %53, %54, %cst_35 {dimension_numbers = #tpu.dot_dimension_numbers<[1], [0], [0], [1], [0, 0, 1, 1], [], []>} : vector<128x8xbf16>, vector<8x256xbf16>, vector<128x256xf32> -> vector<128x256xf32>
    %56 = arith.truncf %38 : vector<128x32xf32> to vector<128x32xbf16>
    %c0_36 = arith.constant 0 : index
    %c0_37 = arith.constant 0 : index
    %57 = vector.load %arg13[%c0_36, %c0_37] : memref<32x256xbf16, #tpu.memory_space<vmem>>, vector<32x256xbf16>
    %cst_38 = arith.constant dense<0.000000e+00> : vector<128x256xf32>
    %58 = tpu.matmul %56, %57, %cst_38 {dimension_numbers = #tpu.dot_dimension_numbers<[1], [0], [0], [1], [0, 0, 1, 1], [], []>} : vector<128x32xbf16>, vector<32x256xbf16>, vector<128x256xf32> -> vector<128x256xf32>
    %59 = arith.addf %55, %58 : vector<128x256xf32>
    %60 = arith.truncf %52 : vector<128x32xf32> to vector<128x32xbf16>
    %c0_39 = arith.constant 0 : index
    %c0_40 = arith.constant 0 : index
    %61 = vector.load %arg14[%c0_39, %c0_40] : memref<32x256xbf16, #tpu.memory_space<vmem>>, vector<32x256xbf16>
    %cst_41 = arith.constant dense<0.000000e+00> : vector<128x256xf32>
    %62 = tpu.matmul %60, %61, %cst_41 {dimension_numbers = #tpu.dot_dimension_numbers<[1], [0], [0], [1], [0, 0, 1, 1], [], []>} : vector<128x32xbf16>, vector<32x256xbf16>, vector<128x256xf32> -> vector<128x256xf32>
    %63 = arith.addf %59, %62 : vector<128x256xf32>
    %c0_42 = arith.constant 0 : index
    %c0_43 = arith.constant 0 : index
    %64 = vector.load %arg15[%c0_42, %c0_43] : memref<1x256xf32, #tpu.memory_space<vmem>>, vector<1x256xf32>
    %65 = vector.broadcast %64 : vector<1x256xf32> to vector<128x256xf32>
    %66 = arith.addf %63, %65 : vector<128x256xf32>
    %cst_44 = arith.constant 5.000000e-01 : f32
    %67 = vector.broadcast %cst_44 : f32 to vector<128x256xf32>
    %68 = arith.mulf %67, %66 : vector<128x256xf32>
    %cst_45 = arith.constant 5.000000e-01 : f32
    %69 = vector.broadcast %cst_45 : f32 to vector<128x256xf32>
    %70 = arith.mulf %69, %66 : vector<128x256xf32>
    %71 = math.tanh %70 : vector<128x256xf32>
    %cst_46 = arith.constant 1.000000e+00 : f32
    %72 = vector.broadcast %cst_46 : f32 to vector<128x256xf32>
    %73 = arith.addf %72, %71 : vector<128x256xf32>
    %74 = arith.mulf %68, %73 : vector<128x256xf32>
    %75 = arith.truncf %74 : vector<128x256xf32> to vector<128x256xbf16>
    %c0_47 = arith.constant 0 : index
    %c0_48 = arith.constant 0 : index
    %76 = vector.load %arg16[%c0_47, %c0_48] : memref<256x256xbf16, #tpu.memory_space<vmem>>, vector<256x256xbf16>
    %cst_49 = arith.constant dense<0.000000e+00> : vector<128x256xf32>
    %77 = tpu.matmul %75, %76, %cst_49 {dimension_numbers = #tpu.dot_dimension_numbers<[1], [0], [0], [1], [0, 0, 1, 1], [], []>} : vector<128x256xbf16>, vector<256x256xbf16>, vector<128x256xf32> -> vector<128x256xf32>
    %c0_50 = arith.constant 0 : index
    %c0_51 = arith.constant 0 : index
    %78 = vector.load %arg17[%c0_50, %c0_51] : memref<1x256xf32, #tpu.memory_space<vmem>>, vector<1x256xf32>
    %79 = vector.broadcast %78 : vector<1x256xf32> to vector<128x256xf32>
    %80 = arith.addf %77, %79 : vector<128x256xf32>
    %cst_52 = arith.constant 5.000000e-01 : f32
    %81 = vector.broadcast %cst_52 : f32 to vector<128x256xf32>
    %82 = arith.mulf %81, %80 : vector<128x256xf32>
    %cst_53 = arith.constant 5.000000e-01 : f32
    %83 = vector.broadcast %cst_53 : f32 to vector<128x256xf32>
    %84 = arith.mulf %83, %80 : vector<128x256xf32>
    %85 = math.tanh %84 : vector<128x256xf32>
    %cst_54 = arith.constant 1.000000e+00 : f32
    %86 = vector.broadcast %cst_54 : f32 to vector<128x256xf32>
    %87 = arith.addf %86, %85 : vector<128x256xf32>
    %88 = arith.mulf %82, %87 : vector<128x256xf32>
    %89 = arith.truncf %88 : vector<128x256xf32> to vector<128x256xbf16>
    %c0_55 = arith.constant 0 : index
    %c0_56 = arith.constant 0 : index
    %90 = vector.load %arg18[%c0_55, %c0_56] : memref<256x256xbf16, #tpu.memory_space<vmem>>, vector<256x256xbf16>
    %cst_57 = arith.constant dense<0.000000e+00> : vector<128x256xf32>
    %91 = tpu.matmul %89, %90, %cst_57 {dimension_numbers = #tpu.dot_dimension_numbers<[1], [0], [0], [1], [0, 0, 1, 1], [], []>} : vector<128x256xbf16>, vector<256x256xbf16>, vector<128x256xf32> -> vector<128x256xf32>
    %c0_58 = arith.constant 0 : index
    %c0_59 = arith.constant 0 : index
    %92 = vector.load %arg19[%c0_58, %c0_59] : memref<1x256xf32, #tpu.memory_space<vmem>>, vector<1x256xf32>
    %93 = vector.broadcast %92 : vector<1x256xf32> to vector<128x256xf32>
    %94 = arith.addf %91, %93 : vector<128x256xf32>
    %cst_60 = arith.constant 5.000000e-01 : f32
    %95 = vector.broadcast %cst_60 : f32 to vector<128x256xf32>
    %96 = arith.mulf %95, %94 : vector<128x256xf32>
    %cst_61 = arith.constant 5.000000e-01 : f32
    %97 = vector.broadcast %cst_61 : f32 to vector<128x256xf32>
    %98 = arith.mulf %97, %94 : vector<128x256xf32>
    %99 = math.tanh %98 : vector<128x256xf32>
    %cst_62 = arith.constant 1.000000e+00 : f32
    %100 = vector.broadcast %cst_62 : f32 to vector<128x256xf32>
    %101 = arith.addf %100, %99 : vector<128x256xf32>
    %102 = arith.mulf %96, %101 : vector<128x256xf32>
    %103 = arith.truncf %102 : vector<128x256xf32> to vector<128x256xbf16>
    %c0_63 = arith.constant 0 : index
    %c0_64 = arith.constant 0 : index
    %104 = vector.load %arg20[%c0_63, %c0_64] : memref<256x8xbf16, #tpu.memory_space<vmem>>, vector<256x8xbf16>
    %cst_65 = arith.constant dense<0.000000e+00> : vector<128x8xf32>
    %105 = tpu.matmul %103, %104, %cst_65 {dimension_numbers = #tpu.dot_dimension_numbers<[1], [0], [0], [1], [0, 0, 1, 1], [], []>} : vector<128x256xbf16>, vector<256x8xbf16>, vector<128x8xf32> -> vector<128x8xf32>
    %c0_66 = arith.constant 0 : index
    %c0_67 = arith.constant 0 : index
    %106 = vector.load %arg21[%c0_66, %c0_67] : memref<1x8xf32, #tpu.memory_space<vmem>>, vector<1x8xf32>
    %107 = vector.broadcast %106 : vector<1x8xf32> to vector<128x8xf32>
    %108 = arith.addf %105, %107 : vector<128x8xf32>
    %109 = arith.mulf %0, %0 : vector<128x1xf32>
    %cst_68 = arith.constant -2.500000e-01 : f32
    %110 = vector.broadcast %cst_68 : f32 to vector<128x1xf32>
    %111 = arith.mulf %110, %109 : vector<128x1xf32>
    %cst_69 = arith.constant 1.990000e+01 : f32
    %112 = vector.broadcast %cst_69 : f32 to vector<128x1xf32>
    %113 = arith.mulf %111, %112 : vector<128x1xf32>
    %cst_70 = arith.constant 5.000000e-01 : f32
    %114 = vector.broadcast %cst_70 : f32 to vector<128x1xf32>
    %115 = arith.mulf %114, %0 : vector<128x1xf32>
    %cst_71 = arith.constant 1.000000e-01 : f32
    %116 = vector.broadcast %cst_71 : f32 to vector<128x1xf32>
    %117 = arith.mulf %115, %116 : vector<128x1xf32>
    %118 = arith.subf %113, %117 : vector<128x1xf32>
    %cst_72 = arith.constant 2.000000e+00 : f32
    %119 = vector.broadcast %cst_72 : f32 to vector<128x1xf32>
    %120 = arith.mulf %119, %118 : vector<128x1xf32>
    %121 = math.exp %120 : vector<128x1xf32>
    %cst_73 = arith.constant 1.000000e+00 : f32
    %122 = vector.broadcast %cst_73 : f32 to vector<128x1xf32>
    %123 = arith.subf %122, %121 : vector<128x1xf32>
    %124 = math.sqrt %123 : vector<128x1xf32>
    %125 = tpu.reciprocal %124 {approx = true} : vector<128x1xf32> -> vector<128x1xf32>
    %126 = vector.broadcast %125 : vector<128x1xf32> to vector<128x8xf32>
    %127 = arith.mulf %108, %126 : vector<128x8xf32>
    %c0_74 = arith.constant 0 : index
    %c0_75 = arith.constant 0 : index
    %128 = vector.load %arg22[%c0_74, %c0_75] : memref<128x8xf32, #tpu.memory_space<vmem>>, vector<128x8xf32>
    tpu.vector_store %arg22[%c0_74, %c0_75], %127 {strides = array<i32>} : memref<128x8xf32, #tpu.memory_space<vmem>>, vector<128x8xf32>,
    return
  }
  func.func @transform_0(%arg0: i32) -> (i32, i32) {
    %c0_i32 = arith.constant 0 : i32
    %c0_i32_0 = arith.constant 0 : i32
    return %arg0, %c0_i32 : i32, i32
  }
  func.func @transform_1(%arg0: i32) -> (i32, i32) {
    %c0_i32 = arith.constant 0 : i32
    %c0_i32_0 = arith.constant 0 : i32
    return %arg0, %c0_i32 : i32, i32
  }
  func.func @transform_2(%arg0: i32) -> (i32, i32) {
    %c0_i32 = arith.constant 0 : i32
    %c0_i32_0 = arith.constant 0 : i32
    return %arg0, %c0_i32 : i32, i32
  }
  func.func @transform_3(%arg0: i32) -> (i32, i32) {
    %c0_i32 = arith.constant 0 : i32
    %c0_i32_0 = arith.constant 0 : i32
    %c0_i32_1 = arith.constant 0 : i32
    return %c0_i32, %c0_i32_0 : i32, i32
  }
  func.func @transform_4(%arg0: i32) -> (i32, i32) {
    %c0_i32 = arith.constant 0 : i32
    %c0_i32_0 = arith.constant 0 : i32
    %c0_i32_1 = arith.constant 0 : i32
    return %c0_i32, %c0_i32_0 : i32, i32
  }
  func.func @transform_5(%arg0: i32) -> (i32, i32) {
    %c0_i32 = arith.constant 0 : i32
    %c0_i32_0 = arith.constant 0 : i32
    %c0_i32_1 = arith.constant 0 : i32
    return %c0_i32, %c0_i32_0 : i32, i32
  }
  func.func @transform_6(%arg0: i32) -> (i32, i32) {
    %c0_i32 = arith.constant 0 : i32
    %c0_i32_0 = arith.constant 0 : i32
    %c0_i32_1 = arith.constant 0 : i32
    return %c0_i32, %c0_i32_0 : i32, i32
  }
  func.func @transform_7(%arg0: i32) -> (i32, i32) {
    %c0_i32 = arith.constant 0 : i32
    %c0_i32_0 = arith.constant 0 : i32
    %c0_i32_1 = arith.constant 0 : i32
    return %c0_i32, %c0_i32_0 : i32, i32
  }
  func.func @transform_8(%arg0: i32) -> (i32, i32) {
    %c0_i32 = arith.constant 0 : i32
    %c0_i32_0 = arith.constant 0 : i32
    %c0_i32_1 = arith.constant 0 : i32
    return %c0_i32, %c0_i32_0 : i32, i32
  }
  func.func @transform_9(%arg0: i32) -> (i32, i32) {
    %c0_i32 = arith.constant 0 : i32
    %c0_i32_0 = arith.constant 0 : i32
    %c0_i32_1 = arith.constant 0 : i32
    return %c0_i32, %c0_i32_0 : i32, i32
  }
  func.func @transform_10(%arg0: i32) -> (i32, i32) {
    %c0_i32 = arith.constant 0 : i32
    %c0_i32_0 = arith.constant 0 : i32
    %c0_i32_1 = arith.constant 0 : i32
    return %c0_i32, %c0_i32_0 : i32, i32
  }
  func.func @transform_11(%arg0: i32) -> (i32, i32) {
    %c0_i32 = arith.constant 0 : i32
    %c0_i32_0 = arith.constant 0 : i32
    %c0_i32_1 = arith.constant 0 : i32
    return %c0_i32, %c0_i32_0 : i32, i32
  }
  func.func @transform_12(%arg0: i32) -> (i32, i32) {
    %c0_i32 = arith.constant 0 : i32
    %c0_i32_0 = arith.constant 0 : i32
    %c0_i32_1 = arith.constant 0 : i32
    return %c0_i32, %c0_i32_0 : i32, i32
  }
  func.func @transform_13(%arg0: i32) -> (i32, i32) {
    %c0_i32 = arith.constant 0 : i32
    %c0_i32_0 = arith.constant 0 : i32
    %c0_i32_1 = arith.constant 0 : i32
    return %c0_i32, %c0_i32_0 : i32, i32
  }
  func.func @transform_14(%arg0: i32) -> (i32, i32) {
    %c0_i32 = arith.constant 0 : i32
    %c0_i32_0 = arith.constant 0 : i32
    %c0_i32_1 = arith.constant 0 : i32
    return %c0_i32, %c0_i32_0 : i32, i32
  }
  func.func @transform_15(%arg0: i32) -> (i32, i32) {
    %c0_i32 = arith.constant 0 : i32
    %c0_i32_0 = arith.constant 0 : i32
    %c0_i32_1 = arith.constant 0 : i32
    return %c0_i32, %c0_i32_0 : i32, i32
  }
  func.func @transform_16(%arg0: i32) -> (i32, i32) {
    %c0_i32 = arith.constant 0 : i32
    %c0_i32_0 = arith.constant 0 : i32
    %c0_i32_1 = arith.constant 0 : i32
    return %c0_i32, %c0_i32_0 : i32, i32
  }
  func.func @transform_17(%arg0: i32) -> (i32, i32) {
    %c0_i32 = arith.constant 0 : i32
    %c0_i32_0 = arith.constant 0 : i32
    %c0_i32_1 = arith.constant 0 : i32
    return %c0_i32, %c0_i32_0 : i32, i32
  }
  func.func @transform_18(%arg0: i32) -> (i32, i32) {
    %c0_i32 = arith.constant 0 : i32
    %c0_i32_0 = arith.constant 0 : i32
    %c0_i32_1 = arith.constant 0 : i32
    return %c0_i32, %c0_i32_0 : i32, i32
  }
  func.func @transform_19(%arg0: i32) -> (i32, i32) {
    %c0_i32 = arith.constant 0 : i32
    %c0_i32_0 = arith.constant 0 : i32
    %c0_i32_1 = arith.constant 0 : i32
    return %c0_i32, %c0_i32_0 : i32, i32
  }
  func.func @transform_20(%arg0: i32) -> (i32, i32) {
    %c0_i32 = arith.constant 0 : i32
    %c0_i32_0 = arith.constant 0 : i32
    %c0_i32_1 = arith.constant 0 : i32
    return %c0_i32, %c0_i32_0 : i32, i32
  }
  func.func @transform_21(%arg0: i32) -> (i32, i32) {
    %c0_i32 = arith.constant 0 : i32
    %c0_i32_0 = arith.constant 0 : i32
    return %arg0, %c0_i32 : i32, i32
  }
}

</mosaic_0001>

<bundles_post_ra>
// kernel: tpu_custom_call.1
= control target key start
LH: loop header
LB: loop body
LE: loop exit
PB: predicated region body
PF: predicated region fallthrough
CT: control target
= control target key end

     0   :  { %s11564_s0 = inlined_call_operand.vmem [shape: f32[256,1], index: 0, kind: input, shape index: {}]   ;;  %s11565_s1 = inlined_call_operand.vmem [shape: bf16[256,8], index: 1, kind: input, shape index: {}]   ;;  %s11566_s2 = inlined_call_operand.vmem [shape: bf16[256,8], index: 2, kind: input, shape index: {}]   ;;  %s11567_s3 = inlined_call_operand.vmem [shape: f32[1,16], index: 3, kind: input, shape index: {}]   ;;  %s11568_s4 = inlined_call_operand.vmem [shape: bf16[16,64], index: 4, kind: input, shape index: {}]   ;;  %s11569_s5 = inlined_call_operand.vmem [shape: bf16[16,64], index: 5, kind: input, shape index: {}]   ;;  %s11570_s6 = inlined_call_operand.vmem [shape: f32[1,64], index: 6, kind: input, shape index: {}]   ;;  %s11571_s7 = inlined_call_operand.vmem [shape: bf16[64,32], index: 7, kind: input, shape index: {}]   ;;  %s11572_s8 = inlined_call_operand.vmem [shape: f32[1,32], index: 8, kind: input, shape index: {}]   ;;  %s11573_s9 = inlined_call_operand.vmem [shape: bf16[8,32], index: 9, kind: input, shape index: {}]   ;;  %s11574_s10 = inlined_call_operand.vmem [shape: f32[1,32], index: 10, kind: input, shape index: {}]   ;;  %s11575_s11 = inlined_call_operand.vmem [shape: bf16[8,256], index: 11, kind: input, shape index: {}]   ;;  %s11576_s12 = inlined_call_operand.vmem [shape: bf16[32,256], index: 12, kind: input, shape index: {}]   ;;  %s11577_s13 = inlined_call_operand.vmem [shape: bf16[32,256], index: 13, kind: input, shape index: {}]   ;;  %s11578_s14 = inlined_call_operand.vmem [shape: f32[1,256], index: 14, kind: input, shape index: {}]   ;;  %s11579_s15 = inlined_call_operand.vmem [shape: bf16[256,256], index: 15, kind: input, shape index: {}]   ;;  %s11580_s16 = inlined_call_operand.vmem [shape: f32[1,256], index: 16, kind: input, shape index: {}]   ;;  %s11581_s17 = inlined_call_operand.vmem [shape: bf16[256,256], index: 17, kind: input, shape index: {}]   ;;  %s11582_s18 = inlined_call_operand.vmem [shape: f32[1,256], index: 18, kind: input, shape index: {}]   ;;  %s11583_s19 = inlined_call_operand.vmem [shape: bf16[256,8], index: 19, kind: input, shape index: {}]   ;;  %s11584_s20 = inlined_call_operand.vmem [shape: f32[1,8], index: 20, kind: input, shape index: {}]   ;;  %s11585_s21 = inlined_call_operand.vmem [shape: f32[256,8], index: 21, kind: output, shape index: {}]  }
   0x1   :  { %11640 = sst [smem:[#allocation26_spill]] %s11564_s0 }
   0x2   :  { %11641 = sst [smem:[#allocation27_spill]] %s11565_s1 }
   0x3   :  { %11642 = sst [smem:[#allocation28_spill]] %s11566_s2  ;;  %s8686_s2 = smov 0  }
   0x4   :  { %11643 = sst [smem:[#allocation29_spill]] %s11567_s3 }
   0x5   :  { %11644 = sst [smem:[#allocation30_spill]] %s11568_s4 }
   0x6   :  { %11645 = sst [smem:[#allocation31_spill]] %s11569_s5 }
   0x7 LB: > { %s7383_s25 = sadd.s32 4294967295, %s8567_s2   ;;  %p7387_p0 = scmp.ge.s32.totalorder %s8567_s2, 1  ;;  %s8567_s2 = sphi %s8686_s2, %s31_s2  }
   0x8   : > { %p610_p1 = scmp.lt.s32.totalorder %s8567_s2, 3 }
   0xa   : > { %p611_p2 = pnand %p7387_p0, %p610_p1 }
   0xc   : > { %614 = sbr.rel (%p611_p2) target bundleno = 1998 (0x7ce), region = 104 }
  0x11   : > { %s7388_s26 = sshll.u32 %s7383_s25, 4  ;;  %v11587_v0 = vmov 0   ;;  %s11646_s29 = sld [smem:[#allocation26_spill]] }
  0x12   : > { %7962 = vset.pattern.permute.xlu1 %v11587_v0  ;;  %7961 = vset.pattern.permute.xlu0 %v11587_v0  ;;  %p681_p3 = scmp.lt.s32.totalorder %s7388_s26, 31  ;;  %s11647_s22 = sld [smem:[#allocation28_spill]] }
  0x13   : > { %s11648_s25 = sld [smem:[#allocation27_spill]] }
  0x14   : > { %s11756_s26 = smov (!%p681_p3, %s7388_s26), 31  ;;  %s11696_s1 = sld [smem:[#allocation31_spill]] }
  0x15   : > { %s7389_s27 = sshll.u32 %s11756_s26, 3  ;;  %s7391_s4 = sshll.u32 %s11756_s26, 2 }
  0x16   : > { %s11697_s28 = sld [smem:[#allocation30_spill]] }
  0x17   : > { %s8704_s0 = scalar_lea.vmem %s11646_s29, %s7389_s27 }
  0x18   : > { %v707_v1 = vld [vmem:[%s8704_s0 + $0x10] sm:$0xff]  ;;  %v705_v2 = vld [vmem:[%s8704_s0] sm:$0xff]  ;;  %v708_v3 = vld [vmem:[%s8704_s0 + $0x18] sm:$0xff]  ;;  %s8722_s23 = scalar_lea.vmem %s11647_s22, %s7391_s4 }
  0x19   : > { %734 = vperm.xlu1 %7962, %v707_v1   ;;  %v6905_v4 = vmul.f32 %v707_v1, %v707_v1  ;;  %v6953_v5 = vmul.f32 0.5, %v707_v1  ;;  %724 = vperm.xlu0 %7961, %v705_v2   ;;  %v6903_v6 = vmul.f32 %v705_v2, %v705_v2  ;;  %v6951_v7 = vmul.f32 0.5, %v705_v2  ;;  %v706_v8 = vld [vmem:[%s8704_s0 + $0x8] sm:$0xff]  ;;  %v709_v14 = vld [vmem:[%s8704_s0 + $0x20] sm:$0xff]  ;;  %v712_v31 = vld [vmem:[%s8704_s0 + $0x38] sm:$0xff]  ;;  %s8757_s3 = scalar_lea.vmem %s11648_s25, %s7391_s4 }
  0x1a   : > { %v6906_v9 = vmul.f32 %v708_v3, %v708_v3  ;;  %v6954_v10 = vmul.f32 0.5, %v708_v3  ;;  %v6904_v11 = vmul.f32 %v706_v8, %v706_v8  ;;  %v6952_v12 = vmul.f32 0.5, %v706_v8  ;;  %v710_v13 = vld [vmem:[%s8704_s0 + $0x28] sm:$0xff]  ;;  %v711_v40 = vld [vmem:[%s8704_s0 + $0x30] sm:$0xff]  ;;  %v713_v58 = vld [vmem:[%s8704_s0 + $0x40] sm:$0xff] }
  0x1b   : > { %v6921_v15 = vmul.f32 -0.25, %v6905_v4  ;;  %v6969_v16 = vmul.f32 0.1, %v6953_v5  ;;  %v6919_v17 = vmul.f32 -0.25, %v6903_v6  ;;  %v6967_v18 = vmul.f32 0.1, %v6951_v7 }
  0x1c   : > { %v6922_v19 = vmul.f32 -0.25, %v6906_v9  ;;  %v6970_v20 = vmul.f32 0.1, %v6954_v10  ;;  %v6920_v21 = vmul.f32 -0.25, %v6904_v11  ;;  %v6968_v22 = vmul.f32 0.1, %v6952_v12 }
  0x1d   : > { %v6937_v23 = vmul.f32 19.9, %v6921_v15  ;;  %v6935_v24 = vmul.f32 19.9, %v6919_v17  ;;  %739 = vperm.xlu1 %7962, %v708_v3   ;;  %729 = vperm.xlu0 %7961, %v706_v8   ;;  %v6908_v25 = vmul.f32 %v710_v13, %v710_v13  ;;  %v6956_v26 = vmul.f32 0.5, %v710_v13  ;;  %v714_v45 = vld [vmem:[%s8704_s0 + $0x48] sm:$0xff] }
  0x1e   : > { %v6938_v27 = vmul.f32 19.9, %v6922_v19  ;;  %v6936_v28 = vmul.f32 19.9, %v6920_v21  ;;  %v6907_v29 = vmul.f32 %v709_v14, %v709_v14  ;;  %v6955_v30 = vmul.f32 0.5, %v709_v14  ;;  %v716_v2 = vld [vmem:[%s8704_s0 + $0x58] sm:$0xff] }
  0x1f   : > { %v6985_v32 = vsub.f32 %v6937_v23, %v6969_v16  ;;  %v6983_v33 = vsub.f32 %v6935_v24, %v6967_v18  ;;  %v6924_v34 = vmul.f32 -0.25, %v6908_v25  ;;  %v6972_v35 = vmul.f32 0.1, %v6956_v26  ;;  %v715_v6 = vld [vmem:[%s8704_s0 + $0x50] sm:$0xff]  ;;  %v718_v16 = vld [vmem:[%s8704_s0 + $0x68] sm:$0xff]  ;;  %v8728_v25 = vld [vmem:[%s8704_s0 + $0x60] sm:$0xff] }
  0x20   : > { %v6986_v36 = vsub.f32 %v6938_v27, %v6970_v20  ;;  %v6984_v37 = vsub.f32 %v6936_v28, %v6968_v22  ;;  %v6923_v38 = vmul.f32 -0.25, %v6907_v29  ;;  %v6971_v39 = vmul.f32 0.1, %v6955_v30 }
  0x21   : > { %v7001_v41 = vmul.f32 2.0, %v6985_v32  ;;  %v6999_v42 = vmul.f32 2.0, %v6983_v33  ;;  %v6940_v43 = vmul.f32 19.9, %v6924_v34  ;;  %749 = vperm.xlu1 %7962, %v710_v13   ;;  %744 = vperm.xlu0 %7961, %v709_v14   ;;  %v6910_v44 = vmul.f32 %v712_v31, %v712_v31 }
  0x22   : > { %v7002_v46 = vmul.f32 2.0, %v6986_v36  ;;  %v7000_v47 = vmul.f32 2.0, %v6984_v37  ;;  %v6939_v48 = vmul.f32 19.9, %v6923_v38  ;;  %v6958_v49 = vmul.f32 0.5, %v712_v31 }
  0x23   : > { %v7019_v50 = vmul.f32 1.442695, %v7001_v41  ;;  %v7015_v51 = vmul.f32 1.442695, %v6999_v42  ;;  %v6988_v52 = vsub.f32 %v6940_v43, %v6972_v35  ;;  %v6926_v53 = vmul.f32 -0.25, %v6910_v44  ;;  %v720_v41 = vld [vmem:[%s8704_s0 + $0x78] sm:$0xff] }
  0x24   : > { %v7021_v54 = vmul.f32 1.442695, %v7002_v46  ;;  %v7017_v55 = vmul.f32 1.442695, %v7000_v47  ;;  %v6987_v56 = vsub.f32 %v6939_v48, %v6971_v39  ;;  %v6974_v57 = vmul.f32 0.1, %v6958_v49 }
  0x25   : > { %8111 = vpow2.f32 %v7019_v50  ;;  %v7004_v59 = vmul.f32 2.0, %v6988_v52  ;;  %v6942_v60 = vmul.f32 19.9, %v6926_v53  ;;  %759 = vperm.xlu1 %7962, %v712_v31   ;;  %v6909_v61 = vmul.f32 %v711_v40, %v711_v40  ;;  %754 = vperm.xlu0 %7961, %v711_v40   ;;  %v8733_v48 = vld [vmem:[%s8704_s0 + $0x70] sm:$0xff]  ;;  %s11649_s0 = sld [smem:[#allocation29_spill]] }
  0x26   : > { %8113 = vpow2.f32 %v7015_v51  ;;  %v7003_v62 = vmul.f32 2.0, %v6987_v56  ;;  %v6957_v63 = vmul.f32 0.5, %v711_v40  ;;  %v6912_v1 = vmul.f32 %v714_v45, %v714_v45 }
  0x27   : > { %8115 = vpow2.f32 %v7021_v54  ;;  %v7025_v3 = vmul.f32 1.442695, %v7004_v59  ;;  %v6990_v4 = vsub.f32 %v6942_v60, %v6974_v57  ;;  %v6925_v5 = vmul.f32 -0.25, %v6909_v61 }
  0x28   : > { %8117 = vpow2.f32 %v7017_v55  ;;  %v7023_v7 = vmul.f32 1.442695, %v7003_v62  ;;  %v6973_v8 = vmul.f32 0.1, %v6957_v63  ;;  %v6928_v9 = vmul.f32 -0.25, %v6912_v1 }
  0x29   : > { %8119 = vpow2.f32 %v7025_v3  ;;  %v7006_v10 = vmul.f32 2.0, %v6990_v4  ;;  %v6941_v11 = vmul.f32 19.9, %v6925_v5  ;;  %v6960_v12 = vmul.f32 0.5, %v714_v45  ;;  %769 = vperm.xlu1 %7962, %v714_v45   ;;  %764 = vperm.xlu0 %7961, %v713_v58  }
  0x2a   : > { %8121 = vpow2.f32 %v7023_v7  ;;  %v6944_v13 = vmul.f32 19.9, %v6928_v9  ;;  %v6911_v14 = vmul.f32 %v713_v58, %v713_v58  ;;  %v6959_v15 = vmul.f32 0.5, %v713_v58 }
  0x2b   : > { %v7029_v17 = vmul.f32 1.442695, %v7006_v10  ;;  %v6989_v18 = vsub.f32 %v6941_v11, %v6973_v8  ;;  %v6976_v19 = vmul.f32 0.1, %v6960_v12  ;;  %v6914_v20 = vmul.f32 %v716_v2, %v716_v2 }
  0x2c   : > { %v6927_v21 = vmul.f32 -0.25, %v6911_v14  ;;  %v6975_v22 = vmul.f32 0.1, %v6959_v15  ;;  %v6962_v23 = vmul.f32 0.5, %v716_v2  ;;  %v6913_v24 = vmul.f32 %v715_v6, %v715_v6 }
  0x2d   : > { %8123 = vpow2.f32 %v7029_v17  ;;  %v7005_v26 = vmul.f32 2.0, %v6989_v18  ;;  %v6992_v27 = vsub.f32 %v6944_v13, %v6976_v19  ;;  %v6930_v28 = vmul.f32 -0.25, %v6914_v20  ;;  %779 = vperm.xlu1 %7962, %v716_v2   ;;  %774 = vperm.xlu0 %7961, %v715_v6  }
  0x2e   : > { %v6943_v29 = vmul.f32 19.9, %v6927_v21  ;;  %v6978_v30 = vmul.f32 0.1, %v6962_v23  ;;  %v6929_v31 = vmul.f32 -0.25, %v6913_v24  ;;  %v6961_v32 = vmul.f32 0.5, %v715_v6 }
  0x2f   : > { %v7027_v33 = vmul.f32 1.442695, %v7005_v26  ;;  %v7008_v34 = vmul.f32 2.0, %v6992_v27  ;;  %v6946_v35 = vmul.f32 19.9, %v6930_v28  ;;  %v6916_v36 = vmul.f32 %v718_v16, %v718_v16 }
  0x30   : > { %v6991_v37 = vsub.f32 %v6943_v29, %v6975_v22  ;;  %v6945_v38 = vmul.f32 19.9, %v6929_v31  ;;  %v6977_v39 = vmul.f32 0.1, %v6961_v32  ;;  %v6964_v40 = vmul.f32 0.5, %v718_v16 }
  0x31   : > { %8125 = vpow2.f32 %v7027_v33  ;;  %v7033_v42 = vmul.f32 1.442695, %v7008_v34  ;;  %v6994_v43 = vsub.f32 %v6946_v35, %v6978_v30  ;;  %v6932_v44 = vmul.f32 -0.25, %v6916_v36  ;;  %789 = vperm.xlu1 %7962, %v718_v16   ;;  %784 = vperm.xlu0 %7961, %v8728_v25  }
  0x32   : > { %v8112_v45 = vpop.eup %8111  ;;  %v7007_v46 = vmul.f32 2.0, %v6991_v37  ;;  %v6993_v47 = vsub.f32 %v6945_v38, %v6977_v39  ;;  %v6980_v54 = vmul.f32 0.1, %v6964_v40  ;;  %v6915_v60 = vmul.f32 %v8728_v25, %v8728_v25 }
  0x33   : > { %v8114_v49 = vpop.eup %8113  ;;  %v8735_v50 = vsub.f32 1.0, %v8112_v45  ;;  %8127 = vpow2.f32 %v7033_v42  ;;  %v7010_v56 = vmul.f32 2.0, %v6994_v43  ;;  %v6948_v57 = vmul.f32 19.9, %v6932_v44 }
  0x34   : > { %v8116_v51 = vpop.eup %8115  ;;  %v8737_v52 = vsub.f32 1.0, %v8114_v49  ;;  %v7031_v53 = vmul.f32 1.442695, %v7007_v46  ;;  %v7009_v59 = vmul.f32 2.0, %v6993_v47  ;;  %v6931_v7 = vmul.f32 -0.25, %v6915_v60 }
  0x35   : > { %v8118_v55 = vpop.eup %8117  ;;  %8129 = vrsqrt.f32 %v8735_v50  ;;  %799 = vperm.xlu1 %7962, %v720_v41   ;;  %794 = vperm.xlu0 %7961, %v8733_v48   ;;  %v8744_v62 = vsub.f32 1.0, %v8116_v51  ;;  %v7037_v3 = vmul.f32 1.442695, %v7010_v56  ;;  %v6996_v4 = vsub.f32 %v6948_v57, %v6980_v54 }
  0x36   : > { %v8120_v58 = vpop.eup %8119  ;;  %8131 = vrsqrt.f32 %v8737_v52  ;;  %v8746_v63 = vsub.f32 1.0, %v8118_v55  ;;  %v7035_v6 = vmul.f32 1.442695, %v7009_v59  ;;  %v7082_v8 = vand.u32 2147483648, %v8735_v50 }
  0x37   : > { %v8122_v61 = vpop.eup %8121  ;;  %v8748_v1 = vsub.f32 1.0, %v8120_v58  ;;  %8133 = vpow2.f32 %v7031_v53  ;;  %v7012_v10 = vmul.f32 2.0, %v6996_v4  ;;  %vm7079_vm0 = vcmp.eq.f32.partialorder %v8735_v50, inf }
  0x38   : > { %v8750_v2 = vsub.f32 1.0, %v8122_v61  ;;  %8135 = vrsqrt.f32 %v8744_v62  ;;  %v6963_v12 = vmul.f32 0.5, %v8728_v25  ;;  %v6918_v13 = vmul.f32 %v720_v41, %v720_v41 }
  0x39   : > { %8137 = vrsqrt.f32 %v8746_v63  ;;  %v6966_v14 = vmul.f32 0.5, %v720_v41  ;;  %vm7065_vm1 = vcmp.eq.f32.partialorder %v8737_v52, inf  ;;  %v7068_v15 = vand.u32 2147483648, %v8737_v52 }
  0x3a   : > { %v8124_v5 = vpop.eup %8123  ;;  %8139 = vrsqrt.f32 %v8748_v1  ;;  %v6947_v16 = vmul.f32 19.9, %v6931_v7  ;;  %v7089_v18 = vand.u32 2147483648, %v8744_v62  ;;  %v7041_v20 = vmul.f32 1.442695, %v7012_v10 }
  0x3b   : > { %8141 = vrsqrt.f32 %v8750_v2  ;;  %v8764_v9 = vsub.f32 1.0, %v8124_v5  ;;  %v6979_v21 = vmul.f32 0.1, %v6963_v12  ;;  %vm7072_vm2 = vcmp.eq.f32.partialorder %v8746_v63, inf }
  0x3c   : > { %8143 = vpow2.f32 %v7037_v3  ;;  %v6934_v23 = vmul.f32 -0.25, %v6918_v13  ;;  %v6917_v24 = vmul.f32 %v8733_v48, %v8733_v48  ;;  %vm7067_vm3 = vcmp.eq.f32.partialorder %v8737_v52, 0.0 }
  0x3d   : > { %8145 = vpow2.f32 %v7035_v6  ;;  %vm7086_vm4 = vcmp.eq.f32.partialorder %v8744_v62, inf  ;;  %vm7074_vm5 = vcmp.eq.f32.partialorder %v8746_v63, 0.0  ;;  %v6982_v26 = vmul.f32 0.1, %v6966_v14 }
  0x3e   : > { %v8126_v11 = vpop.eup %8125  ;;  %8147 = vrsqrt.f32 %v8764_v9  ;;  %v7075_v28 = vand.u32 2147483648, %v8746_v63  ;;  %v6965_v29 = vmul.f32 0.5, %v8733_v48  ;;  %vm7081_vm6 = vcmp.eq.f32.partialorder %v8735_v50, 0.0 }
  0x3f   : > { %v8772_v19 = vsub.f32 1.0, %v8126_v11  ;;  %vm7100_vm7 = vcmp.eq.f32.partialorder %v8748_v1, inf  ;;  %v7103_v31 = vand.u32 2147483648, %v8748_v1  ;;  %v6995_v32 = vsub.f32 %v6947_v16, %v6979_v21 }
  0x40   : > { %v8128_v17 = vpop.eup %8127  ;;  %vm7088_vm8 = vcmp.eq.f32.partialorder %v8744_v62, 0.0  ;;  %v6950_v35 = vmul.f32 19.9, %v6934_v23  ;;  %v6933_v36 = vmul.f32 -0.25, %v6917_v24  ;;  %vm7093_vm9 = vcmp.eq.f32.partialorder %v8750_v2, inf }
  0x41   : > { %v8775_v22 = vsub.f32 1.0, %v8128_v17  ;;  %8149 = vrsqrt.f32 %v8772_v19  ;;  %v7096_v39 = vand.u32 2147483648, %v8750_v2  ;;  %v7011_v40 = vmul.f32 2.0, %v6995_v32 }
  0x42   : > { %v8130_v25 = vpop.eup %8129  ;;  %vm7102_vm10 = vcmp.eq.f32.partialorder %v8748_v1, 0.0  ;;  %v6981_v42 = vmul.f32 0.1, %v6965_v29  ;;  %vm7095_vm11 = vcmp.eq.f32.partialorder %v8750_v2, 0.0  ;;  %vm7114_vm12 = vcmp.eq.f32.partialorder %v8764_v9, inf }
  0x43   : > { %v8132_v27 = vpop.eup %8131  ;;  %8151 = vrsqrt.f32 %v8775_v22  ;;  %v7078_v33 = vmul.f32 %v8130_v25, %v8735_v50  ;;  %v7039_v45 = vmul.f32 1.442695, %v7011_v40  ;;  %v6998_v46 = vsub.f32 %v6950_v35, %v6982_v26 }
  0x44   : > { %v8134_v30 = vpop.eup %8133  ;;  %8153 = vpow2.f32 %v7041_v20  ;;  %v7064_v38 = vmul.f32 %v8132_v27, %v8737_v52  ;;  %vm7116_vm13 = vcmp.eq.f32.partialorder %v8764_v9, 0.0  ;;  %v7117_v51 = vand.u32 2147483648, %v8764_v9 }
  0x45   : > { %v8791_v34 = vsub.f32 1.0, %v8134_v30  ;;  %v8136_v37 = vpop.eup %8135  ;;  %v7080_v48 = vsel %vm7079_vm0, %v8735_v50, %v7078_v33  ;;  %v6949_v53 = vmul.f32 19.9, %v6933_v36  ;;  %v7014_v57 = vmul.f32 2.0, %v6998_v46 }
  0x46   : > { %v8138_v41 = vpop.eup %8137  ;;  %v7085_v49 = vmul.f32 %v8136_v37, %v8744_v62  ;;  %v7066_v55 = vsel %vm7065_vm1, %v8737_v52, %v7064_v38  ;;  %vm7107_vm14 = vcmp.eq.f32.partialorder %v8772_v19, inf  ;;  %vm7109_vm15 = vcmp.eq.f32.partialorder %v8772_v19, 0.0 }
  0x47   : > { %8155 = vrsqrt.f32 %v8791_v34  ;;  %v8140_v43 = vpop.eup %8139  ;;  %v7071_v44 = vmul.f32 %v8138_v41, %v8746_v63  ;;  %v6997_v61 = vsub.f32 %v6949_v53, %v6981_v42  ;;  %v7045_v7 = vmul.f32 1.442695, %v7014_v57 }
  0x48   : > { %v8142_v47 = vpop.eup %8141  ;;  %8157 = vpow2.f32 %v7039_v45  ;;  %v7099_v59 = vmul.f32 %v8140_v43, %v8748_v1  ;;  %v7087_v10 = vsel %vm7086_vm4, %v8744_v62, %v7085_v49  ;;  %v7110_v12 = vand.u32 2147483648, %v8772_v19 }
  0x49   : > { %v8144_v54 = vpop.eup %8143  ;;  %v7073_v56 = vsel %vm7072_vm2, %v8746_v63, %v7071_v44  ;;  %v7092_v5 = vmul.f32 %v8142_v47, %v8750_v2  ;;  %v7069_v63 = vsel %vm7067_vm3, %v7068_v15, %v7066_v55  ;;  %v7013_v16 = vmul.f32 2.0, %v6997_v61 }
  0x4a   : > { %v8146_v58 = vpop.eup %8145  ;;  %v8814_v60 = vsub.f32 1.0, %v8144_v54  ;;  %v7076_v3 = vsel %vm7074_vm5, %v7075_v28, %v7073_v56  ;;  %v7101_v14 = vsel %vm7100_vm7, %v8748_v1, %v7099_v59  ;;  %v7083_v52 = vsel %vm7081_vm6, %v7082_v8, %v7080_v48 }
  0x4b   : > { %v8148_v4 = vpop.eup %8147  ;;  %v8819_v6 = vsub.f32 1.0, %v8146_v58  ;;  %8159 = vrcp.f32 %v7076_v3  ;;  %v7094_v17 = vsel %vm7093_vm9, %v8750_v2, %v7092_v5  ;;  %v7090_v21 = vsel %vm7088_vm8, %v7089_v18, %v7087_v10 }
  0x4c   : > { %v7113_v11 = vmul.f32 %v8148_v4, %v8764_v9  ;;  %8161 = vrsqrt.f32 %v8814_v60  ;;  %v7043_v8 = vmul.f32 1.442695, %v7013_v16  ;;  %vm7128_vm0 = vcmp.eq.f32.partialorder %v8775_v22, inf }
  0x4d   : > { %8163 = vrsqrt.f32 %v8819_v6  ;;  %v7104_v62 = vsel %vm7102_vm10, %v7103_v31, %v7101_v14  ;;  %vm7130_vm1 = vcmp.eq.f32.partialorder %v8775_v22, 0.0  ;;  %v7097_v26 = vsel %vm7095_vm11, %v7096_v39, %v7094_v17 }
  0x4e   : > { %v8150_v13 = vpop.eup %8149  ;;  %8165 = vpow2.f32 %v7045_v7  ;;  %v7115_v24 = vsel %vm7114_vm12, %v8764_v9, %v7113_v11  ;;  %v7131_v28 = vand.u32 2147483648, %v8775_v22  ;;  %vm7121_vm2 = vcmp.eq.f32.partialorder %v8791_v34, inf }
  0x4f   : > { %v7106_v20 = vmul.f32 %v8150_v13, %v8772_v19  ;;  %8167 = vrcp.f32 %v7069_v63  ;;  %v7118_v1 = vsel %vm7116_vm13, %v7117_v51, %v7115_v24  ;;  %vm7123_vm3 = vcmp.eq.f32.partialorder %v8791_v34, 0.0 }
  0x50   : > { %v8152_v15 = vpop.eup %8151  ;;  %8169 = vrcp.f32 %v7090_v21  ;;  %v7124_v2 = vand.u32 2147483648, %v8791_v34  ;;  %vm7142_vm4 = vcmp.eq.f32.partialorder %v8814_v60, inf  ;;  %vm7144_vm5 = vcmp.eq.f32.partialorder %v8814_v60, 0.0 }
  0x51   : > { %v8154_v23 = vpop.eup %8153  ;;  %v7127_v50 = vmul.f32 %v8152_v15, %v8775_v22  ;;  %8171 = vrcp.f32 %v7083_v52  ;;  %v7108_v18 = vsel %vm7107_vm14, %v8772_v19, %v7106_v20  ;;  %v7145_v38 = vand.u32 2147483648, %v8814_v60 }
  0x52   : > { %v8854_v25 = vsub.f32 1.0, %v8154_v23  ;;  %8173 = vpow2.f32 %v7043_v8  ;;  %v7111_v31 = vsel %vm7109_vm15, %v7110_v12, %v7108_v18  ;;  %vm7135_vm6 = vcmp.eq.f32.partialorder %v8819_v6, inf }
  0x53   : > { %v7129_v29 = vsel %vm7128_vm0, %v8775_v22, %v7127_v50  ;;  %v7138_v19 = vand.u32 2147483648, %v8819_v6  ;;  %vm7137_vm7 = vcmp.eq.f32.partialorder %v8819_v6, 0.0 }
  0x54   : > { %v8156_v27 = vpop.eup %8155  ;;  %8175 = vrsqrt.f32 %v8854_v25  ;;  %v7132_v35 = vsel %vm7130_vm1, %v7131_v28, %v7129_v29  ;;  %vm7156_vm8 = vcmp.eq.f32.partialorder %v8854_v25, inf  ;;  %vm7158_vm9 = vcmp.eq.f32.partialorder %v8854_v25, 0.0 }
  0x55   : > { %v7120_v30 = vmul.f32 %v8156_v27, %v8791_v34  ;;  %8177 = vrcp.f32 %v7104_v62  ;;  %v8158_v32 = vpop.eup %8157  ;;  %v7159_v54 = vand.u32 2147483648, %v8854_v25 }
  0x56   : > { %8179 = vrcp.f32 %v7097_v26  ;;  %v7059_v33 = vsub.f32 1.0, %v8158_v32  ;;  %v8910_v26 = vld [vmem:[%s11649_s0] ss:$0 sm:$0xff] }
  0x57   : > { %8181 = vrcp.f32 %v7118_v1  ;;  %v7122_v9 = vsel %vm7121_vm2, %v8791_v34, %v7120_v30 }
  0x58   : > { %v8160_v36 = vpop.eup %8159  ;;  %8183 = vrcp.f32 %v7111_v31  ;;  %v7125_v41 = vsel %vm7123_vm3, %v7124_v2, %v7122_v9  ;;  %vm7149_vm10 = vcmp.eq.f32.partialorder %v7059_v33, inf  ;;  %v7152_v5 = vand.u32 2147483648, %v7059_v33 }
  0x59   : > { %v8162_v37 = vpop.eup %8161  ;;  %8185 = vrsqrt.f32 %v7059_v33  ;;  %7198 = vperm.xlu1 %7962, %v8160_v36   ;;  %vm7151_vm11 = vcmp.eq.f32.partialorder %v7059_v33, 0.0 }
  0x5a   : > { %v8164_v39 = vpop.eup %8163  ;;  %v7141_v40 = vmul.f32 %v8162_v37, %v8814_v60  ;;  %8187 = vrcp.f32 %v7132_v35 }
  0x5b   : > { %v8166_v22 = vpop.eup %8165  ;;  %v7134_v42 = vmul.f32 %v8164_v39, %v8819_v6  ;;  %8189 = vrcp.f32 %v7125_v41 }
  0x5c   : > { %v8168_v43 = vpop.eup %8167  ;;  %v7143_v44 = vsel %vm7142_vm4, %v8814_v60, %v7141_v40  ;;  %v7062_v45 = vsub.f32 1.0, %v8166_v22 }
  0x5d   : > { %v8170_v46 = vpop.eup %8169  ;;  %v7136_v47 = vsel %vm7135_vm6, %v8819_v6, %v7134_v42  ;;  %7193 = vperm.xlu0 %7961, %v8168_v43   ;;  %v7146_v34 = vsel %vm7144_vm5, %v7145_v38, %v7143_v44 }
  0x5e   : > { %v8172_v48 = vpop.eup %8171  ;;  %8191 = vrsqrt.f32 %v7062_v45  ;;  %7208 = vperm.xlu1 %7962, %v8170_v46   ;;  %v7139_v51 = vsel %vm7137_vm7, %v7138_v19, %v7136_v47  ;;  %vm7170_vm12 = vcmp.eq.f32.partialorder %v7062_v45, inf  ;;  %v7173_v13 = vand.u32 2147483648, %v7062_v45 }
  0x5f   : > { %v8174_v49 = vpop.eup %8173  ;;  %8193 = vrcp.f32 %v7146_v34  ;;  %vm7172_vm13 = vcmp.eq.f32.partialorder %v7062_v45, 0.0 }
  0x60   : > { %v7061_v55 = vsub.f32 1.0, %v8174_v49  ;;  %8195 = vrcp.f32 %v7139_v51 }
  0x61   : > { %v8176_v53 = vpop.eup %8175  ;;  %7203 = vperm.xlu0 %7961, %v8172_v48  }
  0x62   : > { %v8178_v56 = vpop.eup %8177  ;;  %v7155_v57 = vmul.f32 %v8176_v53, %v8854_v25  ;;  %8197 = vrsqrt.f32 %v7061_v55  ;;  %vm7163_vm14 = vcmp.eq.f32.partialorder %v7061_v55, inf  ;;  %v7166_v20 = vand.u32 2147483648, %v7061_v55 }
  0x63   : > { %v8180_v58 = vpop.eup %8179  ;;  %7218 = vperm.xlu1 %7962, %v8178_v56   ;;  %vm7165_vm15 = vcmp.eq.f32.partialorder %v7061_v55, 0.0 }
  0x64   : > { %v8182_v59 = vpop.eup %8181  ;;  %v7157_v60 = vsel %vm7156_vm8, %v8854_v25, %v7155_v57 }
  0x65   : > { %v7160_v61 = vsel %vm7158_vm9, %v7159_v54, %v7157_v60  ;;  %v8184_v3 = vpop.eup %8183  ;;  %7213 = vperm.xlu0 %7961, %v8180_v58  }
  0x66   : > { %8199 = vrcp.f32 %v7160_v61  ;;  %v8186_v4 = vpop.eup %8185 }
  0x67   : > { %7228 = vperm.xlu1 %7962, %v8182_v59   ;;  %v8188_v6 = vpop.eup %8187  ;;  %v7148_v7 = vmul.f32 %v8186_v4, %v7059_v33  ;;  %v11604_v59 = vmov 683565275   ;;  %v11600_v4 = vmov 2475754826  }
  0x68   : > { %v8190_v11 = vpop.eup %8189 }
  0x69   : > { %v7150_v10 = vsel %vm7149_vm10, %v7059_v33, %v7148_v7  ;;  %7223 = vperm.xlu0 %7961, %v8184_v3  }
  0x6a   : > { %v7153_v63 = vsel %vm7151_vm11, %v7152_v5, %v7150_v10  ;;  %v11596_v10 = vmov 2102212464  }
  0x6b   : > { %7238 = vperm.xlu1 %7962, %v8188_v6   ;;  %v8192_v12 = vpop.eup %8191  ;;  %8201 = vrcp.f32 %v7153_v63  ;;  %v11598_v6 = vmov 2131351028   ;;  %v11602_v63 = vmov 920167782  }
  0x6c   : > { %v8194_v14 = vpop.eup %8193  ;;  %v7169_v16 = vmul.f32 %v8192_v12, %v7062_v45 }
  0x6d   : > { %7233 = vperm.xlu0 %7961, %v8190_v11   ;;  %v8196_v52 = vpop.eup %8195 }
  0x6e   : > { %v7171_v15 = vsel %vm7170_vm12, %v7062_v45, %v7169_v16 }
  0x6f   : > { %7248 = vperm.xlu1 %7962, %v8194_v14   ;;  %v8198_v17 = vpop.eup %8197  ;;  %v7174_v21 = vsel %vm7172_vm13, %v7173_v13, %v7171_v15 }
  0x70   : > { %v7162_v23 = vmul.f32 %v8198_v17, %v7061_v55  ;;  %8203 = vrcp.f32 %v7174_v21  ;;  %v11593_v17 = vmov 1326507024  }
  0x71   : > { %7243 = vperm.xlu0 %7961, %v8196_v52  }
  0x72   : > { %v7164_v50 = vsel %vm7163_vm14, %v7061_v55, %v7162_v23 }
  0x73   : > { %v8200_v24 = vpop.eup %8199  ;;  %v7167_v8 = vsel %vm7165_vm15, %v7166_v20, %v7164_v50 }
  0x74   : > { %7258 = vperm.xlu1 %7962, %v8200_v24   ;;  %8205 = vrcp.f32 %v7167_v8 }
  0x78   : > { %v8202_v25 = vpop.eup %8201 }
  0x79   : > { %7253 = vperm.xlu0 %7961, %v8202_v25  }
  0x7d   : > { %v8204_v62 = vpop.eup %8203 }
  0x7e   : > { %7268 = vperm.xlu1 %7962, %v8204_v62  }
  0x81   : > { %v8206_v18 = vpop.eup %8205 }
  0x82   : > { %7263 = vperm.xlu0 %7961, %v8206_v18  }
  0x94   : > { %v735_v27 = vpop.permute.xlu1 %734  ;;  %v725_v28 = vpop.permute.xlu0 %724 }
  0x95   : > { %v8913_v1 = vmul.f32 %v8910_v26, %v735_v27  ;;  %v8916_v29 = vmul.f32 %v8910_v26, %v725_v28 }
  0x97   : > { %v1032_v30 = vand.u32 2147483647, %v8913_v1  ;;  %v1035_v2 = vand.u32 2139095040, %v8913_v1  ;;  %v11590_v31 = vand.u32 2147483647, %v8916_v29  ;;  %v827_v32 = vand.u32 2139095040, %v8916_v29 }
  0x98   : > { %v740_v9 = vpop.permute.xlu1 %739  ;;  %v730_v46 = vpop.permute.xlu0 %729 }
  0x99   : > { %v1036_v33 = vshrl.u32 %v1035_v2, 23  ;;  %v1039_v35 = vand.u32 8388607, %v1032_v30  ;;  %v8925_v36 = vmul.f32 %v8910_v26, %v740_v9  ;;  %v828_v37 = vshrl.u32 %v827_v32, 23 }
  0x9a   : > { %v831_v38 = vand.u32 8388607, %v11590_v31  ;;  %v8932_v53 = vmul.f32 %v8910_v26, %v730_v46 }
  0x9b   : > { %v7405_v19 = vadd.s32 4294967169, %v1036_v33  ;;  %v7397_v39 = vadd.s32 4294967169, %v828_v37  ;;  %v1139_v40 = vand.u32 2139095040, %v8925_v36  ;;  %v1040_v41 = vor.u32 8388608, %v1039_v35 }
  0x9c   : > { %v832_v42 = vor.u32 8388608, %v831_v38  ;;  %v1136_v44 = vand.u32 2147483647, %v8925_v36 }
  0x9d   : > { %v1042_v22 = vadd.s32 1, %v7405_v19  ;;  %v834_v43 = vadd.s32 1, %v7397_v39  ;;  %v1140_v45 = vshrl.u32 %v1139_v40, 23  ;;  %v8934_v54 = vshll.u32 %v1040_v41, 8 }
  0x9e   : > { %v8938_v56 = vshll.u32 %v832_v42, 8  ;;  %v8942_v57 = vand.u32 8388607, %v1136_v44 }
  0x9f   : > { %vm1043_vm0 = vcmp.gt.s32.totalorder %v1042_v22, 0  ;;  %vm835_vm1 = vcmp.gt.s32.totalorder %v834_v43, 0  ;;  %v7409_v34 = vadd.s32 4294967169, %v1140_v45 }
  0xa0   : > { %v1044_v47 = vsel %vm1043_vm0, %v1042_v22, 0  ;;  %v836_v51 = vsel %vm835_vm1, %v834_v43, 0 }
  0xa1   : > { %v1045_v48 = vshrl.u32 %v1044_v47, 5  ;;  %v1046_v49 = vand.u32 31, %v1044_v47  ;;  %v8936_v55 = vshrl.u32 %v836_v51, 5  ;;  %v838_v61 = vand.u32 31, %v836_v51 }
  0xa2   : > { %v8945_v3 = vadd.s32 1, %v7409_v34 }
  0xa3   : > { %v1047_v58 = vsub.s32 32, %v1046_v49  ;;  %v1049_v60 = vshll.u32 %v11604_v59, %v1046_v49  ;;  %v1052_v5 = vshll.u32 %v11600_v4, %v1046_v49  ;;  %v1055_v7 = vshll.u32 %v11598_v6, %v1046_v49 }
  0xa4   : > { %v1058_v11 = vshll.u32 %v11596_v10, %v1046_v49  ;;  %v1061_v12 = vshll.u32 %v11602_v63, %v1046_v49  ;;  %vm1064_vm2 = vcmp.lt.s32.totalorder %v1045_v48, 1  ;;  %vm1065_vm3 = vcmp.lt.s32.totalorder %v1045_v48, 2 }
  0xa5   : > { %v1050_v13 = vshrl.u32 %v11600_v4, %v1047_v58  ;;  %v1053_v14 = vshrl.u32 %v11598_v6, %v1047_v58  ;;  %v1056_v16 = vshrl.u32 %v11596_v10, %v1047_v58  ;;  %v1048_v52 = vshrl.u32 %v11604_v59, %v1047_v58 }
  0xa6   : > { %v1059_v15 = vshrl.u32 %v11602_v63, %v1047_v58  ;;  %v1062_v20 = vshrl.u32 %v11593_v17, %v1047_v58  ;;  %v839_v50 = vsub.s32 32, %v838_v61  ;;  %vm1066_vm4 = vcmp.lt.s32.totalorder %v1045_v48, 3 }
  0xa7   : > { %v1051_v21 = vor.u32 %v1050_v13, %v1049_v60  ;;  %v1054_v23 = vor.u32 %v1053_v14, %v1052_v5  ;;  %v1057_v24 = vor.u32 %v1056_v16, %v1055_v7  ;;  %vm1067_vm5 = vcmp.lt.s32.totalorder %v1045_v48, 4 }
  0xa8   : > { %v1060_v8 = vor.u32 %v1059_v15, %v1058_v11  ;;  %v1063_v25 = vor.u32 %v1062_v20, %v1061_v12  ;;  %v841_v33 = vshll.u32 %v11604_v59, %v838_v61  ;;  %v842_v38 = vshrl.u32 %v11600_v4, %v839_v50 }
  0xa9   : > { %v1068_v62 = vsel %vm1064_vm2, %v1048_v52, %v1051_v21  ;;  %v1069_v18 = vsel %vm1067_vm5, %v1057_v24, 2102212464  ;;  %v1072_v27 = vsel %vm1064_vm2, %v1051_v21, %v1054_v23  ;;  %v1076_v28 = vsel %vm1064_vm2, %v1054_v23, %v1057_v24 }
  0xaa   : > { %v1070_v2 = vsel %vm1066_vm4, %v1054_v23, %v1069_v18  ;;  %v1073_v32 = vsel %vm1067_vm5, %v1060_v8, 920167782  ;;  %v1077_v9 = vsel %vm1067_vm5, %v1063_v25, 1326507024  ;;  %v844_v19 = vshll.u32 %v11600_v4, %v838_v61 }
  0xab   : > { %v1074_v35 = vsel %vm1066_vm4, %v1057_v24, %v1073_v32  ;;  %v1078_v37 = vsel %vm1066_vm4, %v1060_v8, %v1077_v9  ;;  %v1071_v39 = vsel %vm1065_vm3, %v1068_v62, %v1070_v2  ;;  %v845_v22 = vshrl.u32 %v11598_v6, %v839_v50 }
  0xac   : > { %v1075_v40 = vsel %vm1065_vm3, %v1072_v27, %v1074_v35  ;;  %v1079_v41 = vsel %vm1065_vm3, %v1076_v28, %v1078_v37  ;;  %v843_v47 = vor.u32 %v842_v38, %v841_v33  ;;  %v847_v49 = vshll.u32 %v11598_v6, %v838_v61 }
  0xad   : > { %v8968_v42 = vmul.u32.u64.low %v8934_v54, %v1079_v41  ;;  %v8969_v43 = vmul.u32.u64.high %v8934_v54, %v1079_v41, %v8968_v42  ;;  %v8972_v45 = vmul.u32.u64.low %v8934_v54, %v1075_v40  ;;  %v8973_v46 = vmul.u32.u64.high %v8934_v54, %v1075_v40, %v8972_v45 }
  0xae   : > { %v846_v34 = vor.u32 %v845_v22, %v844_v19  ;;  %v848_v51 = vshrl.u32 %v11596_v10, %v839_v50  ;;  %v840_v48 = vshrl.u32 %v11604_v59, %v839_v50  ;;  %v850_v58 = vshll.u32 %v11596_v10, %v838_v61 }
  0xaf   : > { %v851_v60 = vshrl.u32 %v11602_v63, %v839_v50  ;;  %v854_v5 = vshrl.u32 %v11593_v17, %v839_v50  ;;  %v1087_v7 = vmul.u32 %v8934_v54, %v1071_v39  ;;  %v853_v12 = vshll.u32 %v11602_v63, %v838_v61 }
  0xb0   : > { %v849_v11 = vor.u32 %v848_v51, %v847_v49  ;;  %vm856_vm6 = vcmp.lt.s32.totalorder %v8936_v55, 1  ;;  %vm1089_vm7 = vc.u32 %v8969_v43, %v8972_v45  ;;  %v1090_v13 = vadd.s32 1, %v8973_v46 }
  0xb1   : > { %v852_v14 = vor.u32 %v851_v60, %v850_v58  ;;  %vm857_vm8 = vcmp.lt.s32.totalorder %v8936_v55, 2  ;;  %v855_v16 = vor.u32 %v854_v5, %v853_v12  ;;  %vm858_vm9 = vcmp.lt.s32.totalorder %v8936_v55, 3 }
  0xb2   : > { %vm859_vm10 = vcmp.lt.s32.totalorder %v8936_v55, 4  ;;  %v864_v52 = vsel %vm856_vm6, %v843_v47, %v846_v34  ;;  %v1091_v54 = vsel %vm1089_vm7, %v1090_v13, %v8973_v46  ;;  %v868_v20 = vsel %vm856_vm6, %v846_v34, %v849_v11 }
  0xb3   : > { %v861_v15 = vsel %vm859_vm10, %v849_v11, 2102212464  ;;  %v865_v61 = vsel %vm859_vm10, %v852_v14, 920167782  ;;  %v1092_v21 = vadd.s32 %v1091_v54, %v1087_v7  ;;  %v860_v23 = vsel %vm856_vm6, %v840_v48, %v843_v47 }
  0xb4   : > { %v866_v24 = vsel %vm858_vm9, %v849_v11, %v865_v61  ;;  %v869_v50 = vsel %vm859_vm10, %v855_v16, 1326507024  ;;  %v862_v8 = vsel %vm858_vm9, %v846_v34, %v861_v15  ;;  %vm1147_vm11 = vcmp.gt.s32.totalorder %v8945_v3, 0 }
  0xb5   : > { %v867_v25 = vsel %vm857_vm8, %v864_v52, %v866_v24  ;;  %v870_v62 = vsel %vm858_vm9, %v852_v14, %v869_v50  ;;  %v1093_v18 = vadd.s32 536870912, %v1092_v21  ;;  %v1148_v33 = vsel %vm1147_vm11, %v8945_v3, 0 }
  0xb6   : > { %v871_v27 = vsel %vm857_vm8, %v868_v20, %v870_v62  ;;  %v8998_v28 = vmul.u32.u64.low %v8938_v56, %v867_v25  ;;  %v8999_v2 = vmul.u32.u64.high %v8938_v56, %v867_v25, %v8998_v28  ;;  %v931_v35 = vand.u32 2139095040, %v8932_v53 }
  0xb7   : > { %v9003_v32 = vmul.u32.u64.low %v8938_v56, %v871_v27  ;;  %v9004_v9 = vmul.u32.u64.high %v8938_v56, %v871_v27, %v9003_v32  ;;  %v9008_v37 = vshrl.u32 %v1093_v18, 30  ;;  %v863_v38 = vsel %vm857_vm8, %v860_v23, %v862_v8 }
  0xb8   : > { %v1150_v19 = vand.u32 31, %v1148_v33  ;;  %v882_v40 = vadd.s32 1, %v8999_v2  ;;  %v879_v22 = vmul.u32 %v8938_v56, %v863_v38  ;;  %v1144_v3 = vor.u32 8388608, %v8942_v57 }
  0xb9   : > { %v1095_v39 = vshll.u32 %v9008_v37, 30  ;;  %vm881_vm12 = vc.u32 %v9004_v9, %v8998_v28  ;;  %v932_v42 = vshrl.u32 %v931_v35, 23  ;;  %v1149_v55 = vshrl.u32 %v1148_v33, 5 }
  0xba   : > { %v1151_v41 = vsub.s32 32, %v1150_v19  ;;  %v883_v47 = vsel %vm881_vm12, %v882_v40, %v8999_v2  ;;  %v1153_v34 = vshll.u32 %v11604_v59, %v1150_v19  ;;  %v1156_v48 = vshll.u32 %v11600_v4, %v1150_v19 }
  0xbb   : > { %v9018_v46 = vsub.s32 %v1092_v21, %v1095_v39  ;;  %v884_v49 = vadd.s32 %v883_v47, %v879_v22  ;;  %v1159_v60 = vshll.u32 %v11598_v6, %v1150_v19  ;;  %v1162_v5 = vshll.u32 %v11596_v10, %v1150_v19 }
  0xbc   : > { %v1154_v51 = vshrl.u32 %v11600_v4, %v1151_v41  ;;  %v1157_v56 = vshrl.u32 %v11598_v6, %v1151_v41  ;;  %v1160_v57 = vshrl.u32 %v11596_v10, %v1151_v41  ;;  %v1163_v13 = vshrl.u32 %v11602_v63, %v1151_v41 }
  0xbd   : > { %v1098_v58 = vsub.s32 0, %v9018_v46  ;;  %v885_v7 = vadd.s32 536870912, %v884_v49  ;;  %v1165_v52 = vshll.u32 %v11602_v63, %v1150_v19  ;;  %v1166_v54 = vshrl.u32 %v11593_v17, %v1151_v41 }
  0xbe   : > { %v1155_v11 = vor.u32 %v1154_v51, %v1153_v34  ;;  %v1158_v12 = vor.u32 %v1157_v56, %v1156_v48  ;;  %v1161_v16 = vor.u32 %v1160_v57, %v1159_v60  ;;  %v1164_v61 = vor.u32 %v1163_v13, %v1162_v5 }
  0xbf   : > { %v7406_v14 = vmin.u32 %v1098_v58, %v9018_v46  ;;  %v9033_v15 = vshrl.u32 %v885_v7, 30  ;;  %v1184_v20 = vshll.u32 %v1144_v3, 8  ;;  %v1167_v23 = vor.u32 %v1166_v54, %v1165_v52 }
  0xc0   : > { %vm1168_vm13 = vcmp.lt.s32.totalorder %v1149_v55, 1  ;;  %v7401_v24 = vadd.s32 4294967169, %v932_v42  ;;  %vm1169_vm14 = vcmp.lt.s32.totalorder %v1149_v55, 2  ;;  %vm1171_vm15 = vcmp.lt.s32.totalorder %v1149_v55, 4 }
  0xc1   : > { %v1100_v21 = vclz %v7406_v14  ;;  %v887_v50 = vshll.u32 %v9033_v15, 30  ;;  %v1176_v8 = vsel %vm1168_vm13, %v1155_v11, %v1158_v12  ;;  %vm1170_vm0 = vcmp.lt.s32.totalorder %v1149_v55, 3 }
  0xc2   : > { %v1177_v62 = vsel %vm1171_vm15, %v1164_v61, 920167782  ;;  %v1180_v18 = vsel %vm1168_vm13, %v1158_v12, %v1161_v16  ;;  %v1173_v2 = vsel %vm1171_vm15, %v1161_v16, 2102212464  ;;  %v1181_v33 = vsel %vm1171_vm15, %v1167_v23, 1326507024 }
  0xc3   : > { %v7407_v25 = vadd.s32 4294967294, %v1100_v21  ;;  %v9038_v27 = vsub.s32 %v884_v49, %v887_v50  ;;  %v1178_v32 = vsel %vm1170_vm0, %v1161_v16, %v1177_v62  ;;  %v1152_v35 = vshrl.u32 %v11604_v59, %v1151_v41  ;;  %v750_v49 = vpop.permute.xlu1 %749 }
  0xc4   : > { %v1179_v38 = vsel %vm1169_vm14, %v1176_v8, %v1178_v32  ;;  %v1182_v19 = vsel %vm1170_vm0, %v1164_v61, %v1181_v33  ;;  %v938_v3 = vadd.s32 1, %v7401_v24  ;;  %v1174_v34 = vsel %vm1170_vm0, %v1158_v12, %v1173_v2 }
  0xc5   : > { %vm7408_vm1 = vcmp.lt.s32.totalorder %v7407_v25, 0  ;;  %v890_v40 = vsub.s32 0, %v9038_v27  ;;  %v1183_v22 = vsel %vm1169_vm14, %v1180_v18, %v1182_v19  ;;  %v1172_v47 = vsel %vm1168_vm13, %v1152_v35, %v1155_v11 }
  0xc6   : > { %v1103_v39 = vsel %vm7408_vm1, 0, %v7407_v25  ;;  %v9049_v48 = vmul.u32.u64.low %v1184_v20, %v1183_v22  ;;  %v9050_v41 = vmul.u32.u64.high %v1184_v20, %v1183_v22, %v9049_v48  ;;  %vm939_vm2 = vcmp.gt.s32.totalorder %v938_v3, 0 }
  0xc7   : > { %v1108_v42 = vsub.s32 4294967266, %v1103_v39  ;;  %v7398_v51 = vmin.u32 %v890_v40, %v9038_v27  ;;  %v9052_v56 = vmul.u32.u64.low %v1184_v20, %v1179_v38  ;;  %v9053_v58 = vmul.u32.u64.high %v1184_v20, %v1179_v38, %v9052_v56 }
  0xc8   : > { %v11589_v60 = vand.u32 2147483647, %v8932_v53  ;;  %v940_v57 = vsel %vm939_vm2, %v938_v3, 0  ;;  %v9058_v5 = vmul.f32 %v8910_v26, %v750_v49  ;;  %v1104_v7 = vsub.s32 32, %v1103_v39 }
  0xc9   : > { %v892_v11 = vclz %v7398_v51  ;;  %v1175_v12 = vsel %vm1169_vm14, %v1172_v47, %v1174_v34  ;;  %v942_v13 = vand.u32 31, %v940_v57  ;;  %v1109_v14 = vadd.s32 127, %v1108_v42 }
  0xca   : > { %11650 = vst [vmem:[#allocation2_spill] sm:$0xff] %v9058_v5  ;;  %vm1193_vm3 = vc.u32 %v9050_v41, %v9052_v56  ;;  %v1088_v16 = vadd.s32 %v8972_v45, %v8969_v43  ;;  %v1194_v52 = vadd.s32 1, %v9053_v58  ;;  %v935_v54 = vand.u32 8388607, %v11589_v60 }
  0xcb   : > { %v1191_v61 = vmul.u32 %v1184_v20, %v1175_v12  ;;  %v943_v21 = vsub.s32 32, %v942_v13  ;;  %v1347_v23 = vand.u32 2139095040, %v9058_v5  ;;  %v7399_v55 = vadd.s32 4294967294, %v892_v11 }
  0xcc   : > { %v1106_v24 = vshrl.u32 %v1088_v16, %v1104_v7  ;;  %v1195_v50 = vsel %vm1193_vm3, %v1194_v52, %v9053_v58  ;;  %v1110_v8 = vshll.u32 %v1109_v14, 23  ;;  %v1105_v62 = vshll.u32 %v9018_v46, %v1103_v39 }
  0xcd   : > { %v1196_v25 = vadd.s32 %v1195_v50, %v1191_v61  ;;  %v936_v18 = vor.u32 8388608, %v935_v54  ;;  %v1344_v43 = vand.u32 2147483647, %v9058_v5  ;;  %v9074_v45 = vadd.s32 %v8998_v28, %v9004_v9 }
  0xce   : > { %v946_v20 = vshrl.u32 %v11600_v4, %v943_v21  ;;  %v1348_v32 = vshrl.u32 %v1347_v23, 23  ;;  %v1107_v33 = vor.u32 %v1106_v24, %v1105_v62  ;;  %vm7400_vm4 = vcmp.lt.s32.totalorder %v7399_v55, 0 }
  0xcf   : > { %v1197_v2 = vadd.s32 536870912, %v1196_v25  ;;  %v949_v35 = vshrl.u32 %v11598_v6, %v943_v21  ;;  %v952_v38 = vshrl.u32 %v11596_v10, %v943_v21  ;;  %v1111_v19 = vor.u32 4788187, %v1110_v8 }
  0xd0   : > { %v945_v46 = vshll.u32 %v11604_v59, %v942_v13  ;;  %v955_v39 = vshrl.u32 %v11602_v63, %v943_v21  ;;  %v948_v28 = vshll.u32 %v11600_v4, %v942_v13  ;;  %v951_v9 = vshll.u32 %v11598_v6, %v942_v13 }
  0xd1   : > { %v9079_v40 = vshrl.u32 %v1197_v2, 30  ;;  %v954_v22 = vshll.u32 %v11596_v10, %v942_v13  ;;  %v958_v3 = vshrl.u32 %v11593_v17, %v943_v21  ;;  %v9087_v42 = vsel %vm7400_vm4, 0, %v7399_v55 }
  0xd2   : > { %v941_v34 = vshrl.u32 %v940_v57, 5  ;;  %v947_v49 = vor.u32 %v946_v20, %v945_v46  ;;  %v950_v51 = vor.u32 %v949_v35, %v948_v28  ;;  %v953_v48 = vor.u32 %v952_v38, %v951_v9 }
  0xd3   : > { %v1199_v47 = vshll.u32 %v9079_v40, 30  ;;  %v956_v58 = vor.u32 %v955_v39, %v954_v22  ;;  %v957_v7 = vshll.u32 %v11602_v63, %v942_v13  ;;  %v1114_v11 = vcvt.s32.f32 %v1107_v33 }
  0xd4   : > { %v976_v14 = vshll.u32 %v936_v18, 8  ;;  %v7417_v16 = vadd.s32 4294967169, %v1348_v32  ;;  %v1112_v52 = vand.u32 2147483647, %v1111_v19  ;;  %v896_v54 = vsub.s32 32, %v9087_v42 }
  0xd5   : > { %v9091_v12 = vsub.s32 %v1196_v25, %v1199_v47  ;;  %v944_v61 = vshrl.u32 %v11604_v59, %v943_v21  ;;  %v959_v23 = vor.u32 %v958_v3, %v957_v7  ;;  %v900_v24 = vsub.s32 4294967266, %v9087_v42 }
  0xd6   : > { %vm960_vm5 = vcmp.lt.s32.totalorder %v941_v34, 1  ;;  %vm963_vm6 = vcmp.lt.s32.totalorder %v941_v34, 4  ;;  %vm962_vm7 = vcmp.lt.s32.totalorder %v941_v34, 3  ;;  %vm961_vm8 = vcmp.lt.s32.totalorder %v941_v34, 2 }
  0xd7   : > { %v1202_v57 = vsub.s32 0, %v9091_v12  ;;  %v965_v55 = vsel %vm963_vm6, %v953_v48, 2102212464  ;;  %v968_v13 = vsel %vm960_vm5, %v947_v49, %v950_v51  ;;  %v969_v50 = vsel %vm963_vm6, %v956_v58, 920167782 }
  0xd8   : > { %v970_v25 = vsel %vm962_vm7, %v953_v48, %v969_v50  ;;  %v972_v62 = vsel %vm960_vm5, %v950_v51, %v953_v48  ;;  %v9098_v18 = vmul.f32 %v1114_v11, %v1112_v52  ;;  %v964_v2 = vsel %vm960_vm5, %v944_v61, %v947_v49 }
  0xd9   : > { %v7410_v8 = vmin.u32 %v1202_v57, %v9091_v12  ;;  %v971_v21 = vsel %vm961_vm8, %v968_v13, %v970_v25  ;;  %v973_v20 = vsel %vm963_vm6, %v959_v23, 1326507024  ;;  %v966_v33 = vsel %vm962_vm7, %v950_v51, %v965_v55 }
  0xda   : > { %v974_v35 = vsel %vm962_vm7, %v956_v58, %v973_v20  ;;  %v1354_v38 = vadd.s32 1, %v7417_v16  ;;  %v9102_v46 = vmul.u32.u64.low %v976_v14, %v971_v21  ;;  %v9103_v39 = vmul.u32.u64.high %v976_v14, %v971_v21, %v9102_v46 }
  0xdb   : > { %v1204_v32 = vclz %v7410_v8  ;;  %v975_v19 = vsel %vm961_vm8, %v972_v62, %v974_v35  ;;  %v1351_v28 = vand.u32 8388607, %v1344_v43  ;;  %v1192_v47 = vadd.s32 %v9052_v56, %v9050_v41 }
  0xdc   : > { %v9108_v22 = vmul.u32.u64.low %v976_v14, %v975_v19  ;;  %v9109_v3 = vmul.u32.u64.high %v976_v14, %v975_v19, %v9108_v22  ;;  %vm1355_vm9 = vcmp.gt.s32.totalorder %v1354_v38, 0  ;;  %v967_v49 = vsel %vm961_vm8, %v964_v2, %v966_v33  ;;  %v745_v19 = vpop.permute.xlu0 %744 }
  0xdd   : > { %v7411_v9 = vadd.s32 4294967294, %v1204_v32  ;;  %v1356_v51 = vsel %vm1355_vm9, %v1354_v38, 0  ;;  %v897_v48 = vshll.u32 %v9038_v27, %v9087_v42  ;;  %v9117_v58 = vshrl.u32 %v9074_v45, %v896_v54 }
  0xde   : > { %v1358_v7 = vand.u32 31, %v1356_v51  ;;  %v1116_v11 = vxor.u32 2147483648, %v9098_v18  ;;  %v9120_v16 = vadd.s32 127, %v900_v24  ;;  %v986_v61 = vadd.s32 1, %v9103_v39 }
  0xdf   : > { %vm7412_vm10 = vcmp.lt.s32.totalorder %v7411_v9, 0  ;;  %v983_v56 = vmul.u32 %v976_v14, %v967_v49  ;;  %v1352_v34 = vor.u32 8388608, %v1351_v28  ;;  %vm985_vm11 = vc.u32 %v9109_v3, %v9102_v46 }
  0xe0   : > { %v1207_v52 = vsel %vm7412_vm10, 0, %v7411_v9  ;;  %v9126_v45 = vshrl.u32 %v1356_v51, 5  ;;  %v1359_v54 = vsub.s32 32, %v1358_v7  ;;  %v987_v24 = vsel %vm985_vm11, %v986_v61, %v9103_v39 }
  0xe1   : > { %v1208_v23 = vsub.s32 32, %v1207_v52  ;;  %v1212_v41 = vsub.s32 4294967266, %v1207_v52  ;;  %v1209_v57 = vshll.u32 %v9091_v12, %v1207_v52  ;;  %v1361_v50 = vshll.u32 %v11604_v59, %v1358_v7 }
  0xe2   : > { %v988_v8 = vadd.s32 %v987_v24, %v983_v56  ;;  %v1362_v25 = vshrl.u32 %v11600_v4, %v1359_v54  ;;  %v1364_v14 = vshll.u32 %v11600_v4, %v1358_v7  ;;  %v1365_v62 = vshrl.u32 %v11598_v6, %v1359_v54 }
  0xe3   : > { %v1210_v55 = vshrl.u32 %v1192_v47, %v1208_v23  ;;  %v1213_v13 = vadd.s32 127, %v1212_v41  ;;  %v1367_v21 = vshll.u32 %v11598_v6, %v1358_v7  ;;  %v1368_v20 = vshrl.u32 %v11596_v10, %v1359_v54 }
  0xe4   : > { %v989_v32 = vadd.s32 536870912, %v988_v8  ;;  %v1370_v33 = vshll.u32 %v11596_v10, %v1358_v7  ;;  %v1371_v35 = vshrl.u32 %v11602_v63, %v1359_v54  ;;  %v9137_v38 = vshll.u32 %v1352_v34, 8 }
  0xe5   : > { %v1211_v12 = vor.u32 %v1210_v55, %v1209_v57  ;;  %v1214_v2 = vshll.u32 %v1213_v13, 23  ;;  %v1363_v28 = vor.u32 %v1362_v25, %v1361_v50  ;;  %v1366_v9 = vor.u32 %v1365_v62, %v1364_v14  ;;  %v760_v25 = vpop.permute.xlu1 %759 }
  0xe6   : > { %v1369_v22 = vor.u32 %v1368_v20, %v1367_v21  ;;  %v9139_v47 = vshrl.u32 %v989_v32, 30  ;;  %v1372_v49 = vor.u32 %v1371_v35, %v1370_v33  ;;  %v1373_v51 = vshll.u32 %v11602_v63, %v1358_v7 }
  0xe7   : > { %v1215_v39 = vor.u32 4788187, %v1214_v2  ;;  %v1374_v52 = vshrl.u32 %v11593_v17, %v1359_v54  ;;  %v1218_v61 = vcvt.s32.f32 %v1211_v12  ;;  %v1360_v23 = vshrl.u32 %v11604_v59, %v1359_v54 }
  0xe8   : > { %vm1379_vm12 = vcmp.lt.s32.totalorder %v9126_v45, 4  ;;  %v9146_v41 = vmul.f32 %v8910_v26, %v745_v19  ;;  %vm1034_vm13 = vcmp.lt.s32.totalorder %v8913_v1, 0  ;;  %v991_v56 = vshll.u32 %v9139_v47, 30 }
  0xe9   : > { %v1375_v34 = vor.u32 %v1374_v52, %v1373_v51  ;;  %vm1376_vm14 = vcmp.lt.s32.totalorder %v9126_v45, 1  ;;  %v1381_v7 = vsel %vm1379_vm12, %v1369_v22, 2102212464  ;;  %v1216_v57 = vand.u32 2147483647, %v1215_v39 }
  0xea   : > { %vm1378_vm15 = vcmp.lt.s32.totalorder %v9126_v45, 3  ;;  %v1384_v55 = vsel %vm1376_vm14, %v1363_v28, %v1366_v9  ;;  %v1385_v54 = vsel %vm1379_vm12, %v1372_v49, 920167782  ;;  %v9156_v13 = vsub.s32 %v988_v8, %v991_v56 }
  0xeb   : > { %vm1377_vm0 = vcmp.lt.s32.totalorder %v9126_v45, 2  ;;  %v1386_v24 = vsel %vm1378_vm15, %v1369_v22, %v1385_v54  ;;  %v1388_v50 = vsel %vm1376_vm14, %v1366_v9, %v1369_v22  ;;  %v1380_v14 = vsel %vm1376_vm14, %v1360_v23, %v1363_v28 }
  0xec   : > { %v1382_v62 = vsel %vm1378_vm15, %v1366_v9, %v1381_v7  ;;  %v1387_v12 = vsel %vm1377_vm0, %v1384_v55, %v1386_v24  ;;  %v1389_v2 = vsel %vm1379_vm12, %v1375_v34, 1326507024  ;;  %v994_v21 = vsub.s32 0, %v9156_v13 }
  0xed   : > { %v1390_v20 = vsel %vm1378_vm15, %v1372_v49, %v1389_v2  ;;  %v9165_v32 = vmul.u32.u64.low %v9137_v38, %v1387_v12  ;;  %v9166_v8 = vmul.u32.u64.high %v9137_v38, %v1387_v12, %v9165_v32  ;;  %v902_v33 = vshll.u32 %v9120_v16, 23 }
  0xee   : > { %v1391_v35 = vsel %vm1377_vm0, %v1388_v50, %v1390_v20  ;;  %v1243_v19 = vand.u32 2139095040, %v9146_v41  ;;  %v9174_v39 = vmul.f32 %v8910_v26, %v760_v25  ;;  %v1219_v28 = vmul.f32 %v1218_v61, %v1216_v57 }
  0xef   : > { %v7402_v9 = vmin.u32 %v994_v21, %v9156_v13  ;;  %v9178_v22 = vmul.u32.u64.low %v9137_v38, %v1391_v35  ;;  %v9179_v49 = vmul.u32.u64.high %v9137_v38, %v1391_v35, %v9178_v22  ;;  %vm9183_vm1 = vcmp.le.f32.partialorder %v1032_v30, 0.7853982 }
  0xf0   : > { %11651 = vst [vmem:[#allocation3_spill] sm:$0xff] %v9174_v39  ;;  %v1383_v16 = vsel %vm1377_vm0, %v1380_v14, %v1382_v62  ;;  %v1240_v52 = vand.u32 2147483647, %v9146_v41  ;;  %v1244_v23 = vshrl.u32 %v1243_v19, 23  ;;  %v1118_v61 = vsub.s32 4, %v9008_v37 }
  0xf1   : > { %v899_v56 = vor.u32 %v9117_v58, %v897_v48  ;;  %v996_v34 = vclz %v7402_v9  ;;  %v1402_v7 = vadd.s32 1, %v9166_v8  ;;  %v1117_v30 = vsel %vm1034_vm13, %v1116_v11, %v9098_v18 }
  0xf2   : > { %v903_v45 = vor.u32 4788187, %v902_v33  ;;  %v7413_v57 = vadd.s32 4294967169, %v1244_v23  ;;  %v1555_v55 = vand.u32 2139095040, %v9174_v39  ;;  %v1220_v54 = vxor.u32 2147483648, %v1219_v28  ;;  %v755_v33 = vpop.permute.xlu0 %754 }
  0xf3   : > { %v7403_v24 = vadd.s32 4294967294, %v996_v34  ;;  %v1399_v50 = vmul.u32 %v9137_v38, %v1383_v16  ;;  %vm1401_vm2 = vc.u32 %v9179_v49, %v9165_v32  ;;  %v1247_v42 = vand.u32 8388607, %v1240_v52 }
  0xf4   : > { %v1403_v27 = vsel %vm1401_vm2, %v1402_v7, %v9166_v8  ;;  %v1250_v48 = vadd.s32 1, %v7413_v57  ;;  %v11592_v58 = vand.u32 2147483647, %v9174_v39  ;;  %vm1138_vm3 = vcmp.lt.s32.totalorder %v8925_v36, 0 }
  0xf5   : > { %vm7404_vm4 = vcmp.lt.s32.totalorder %v7403_v24, 0  ;;  %v1404_v18 = vadd.s32 %v1403_v27, %v1399_v50  ;;  %v1556_v11 = vshrl.u32 %v1555_v55, 23  ;;  %v1119_v38 = vsel %vm1034_vm13, %v1118_v61, %v9008_v37 }
  0xf6   : > { %vm9215_vm5 = vcmp.le.f32.partialorder %v1136_v44, 0.7853982  ;;  %v9219_v14 = vsel %vm7404_vm4, 0, %v7403_v24  ;;  %vm1251_vm6 = vcmp.gt.s32.totalorder %v1250_v48, 0  ;;  %v9224_v62 = vsel %vm9183_vm1, %v8913_v1, %v1117_v30 }
  0xf7   : > { %v904_v12 = vand.u32 2147483647, %v903_v45  ;;  %v906_v2 = vcvt.s32.f32 %v899_v56  ;;  %v1405_v21 = vadd.s32 536870912, %v1404_v18  ;;  %v1221_v37 = vsel %vm1138_vm3, %v1220_v54, %v1219_v28 }
  0xf8   : > { %v1248_v20 = vor.u32 8388608, %v1247_v42  ;;  %v1252_v8 = vsel %vm1251_vm6, %v1250_v48, 0  ;;  %v9230_v44 = vand.u32 8388607, %v11592_v58  ;;  %v1000_v35 = vsub.s32 32, %v9219_v14 }
  0xf9   : > { %v1004_v19 = vsub.s32 4294967266, %v9219_v14  ;;  %v9234_v9 = vshrl.u32 %v1405_v21, 30  ;;  %v7425_v22 = vadd.s32 4294967169, %v1556_v11  ;;  %v9238_v16 = vsel %vm9183_vm1, 0, %v1119_v38 }
  0xfa   : > { %8207 = vcosq.f32 %v9224_v62  ;;  %v1222_v28 = vsub.s32 4, %v9079_v40  ;;  %v1254_v23 = vand.u32 31, %v1252_v8  ;;  %v9242_v61 = vmul.f32 %v906_v2, %v904_v12 }
  0xfb   : > { %v984_v56 = vadd.s32 %v9102_v46, %v9109_v3  ;;  %v1407_v34 = vshll.u32 %v9234_v9, 30  ;;  %v9248_v7 = vmul.f32 %v8910_v26, %v755_v33  ;;  %v9253_v51 = vsel %vm9215_vm5, %v8925_v36, %v1221_v37 }
  0xfc   : > { %v1255_v30 = vsub.s32 32, %v1254_v23  ;;  %v9255_v45 = vshll.u32 %v1248_v20, 8  ;;  %v1560_v57 = vor.u32 8388608, %v9230_v44  ;;  %v1005_v54 = vadd.s32 127, %v1004_v19 }
  0xfd   : > { %v1002_v55 = vshrl.u32 %v984_v56, %v1000_v35  ;;  %v9258_v24 = vsub.s32 %v1404_v18, %v1407_v34  ;;  %v1562_v46 = vadd.s32 1, %v7425_v22  ;;  %v1257_v3 = vshll.u32 %v11604_v59, %v1254_v23 }
  0xfe   : > { %v1258_v26 = vshrl.u32 %v11600_v4, %v1255_v30  ;;  %v1260_v50 = vshll.u32 %v11600_v4, %v1254_v23  ;;  %v1261_v27 = vshrl.u32 %v11598_v6, %v1255_v30  ;;  %v1253_v48 = vshrl.u32 %v1252_v8, 5 }
  0xff   : > { %v1410_v42 = vsub.s32 0, %v9258_v24  ;;  %v1263_v11 = vshll.u32 %v11598_v6, %v1254_v23  ;;  %v1264_v38 = vshrl.u32 %v11596_v10, %v1255_v30  ;;  %v1266_v18 = vshll.u32 %v11596_v10, %v1254_v23 }
 0x100   : > { %v1259_v12 = vor.u32 %v1258_v26, %v1257_v3  ;;  %v1262_v2 = vor.u32 %v1261_v27, %v1260_v50  ;;  %v1267_v21 = vshrl.u32 %v11602_v63, %v1255_v30  ;;  %v1269_v44 = vshll.u32 %v11602_v63, %v1254_v23 }
 0x101   : > { %v7418_v37 = vmin.u32 %v1410_v42, %v9258_v24  ;;  %v1265_v20 = vor.u32 %v1264_v38, %v1263_v11  ;;  %v1270_v33 = vshrl.u32 %v11593_v17, %v1255_v30  ;;  %v1006_v35 = vshll.u32 %v1005_v54, 23 }
 0x102   : > { %v1256_v8 = vshrl.u32 %v11604_v59, %v1255_v30  ;;  %v1268_v19 = vor.u32 %v1267_v21, %v1266_v18  ;;  %vm1563_vm7 = vcmp.gt.s32.totalorder %v1562_v46, 0  ;;  %vm1272_vm8 = vcmp.lt.s32.totalorder %v1253_v48, 1 }
 0x103   : > { %v1412_v22 = vclz %v7418_v37  ;;  %v1271_v56 = vor.u32 %v1270_v33, %v1269_v44  ;;  %vm1275_vm9 = vcmp.lt.s32.totalorder %v1253_v48, 4  ;;  %vm1274_vm10 = vcmp.lt.s32.totalorder %v1253_v48, 3 }
 0x104   : > { %v1277_v34 = vsel %vm1275_vm9, %v1265_v20, 2102212464  ;;  %v1280_v3 = vsel %vm1272_vm8, %v1259_v12, %v1262_v2  ;;  %v1281_v26 = vsel %vm1275_vm9, %v1268_v19, 920167782  ;;  %vm1273_vm11 = vcmp.lt.s32.totalorder %v1253_v48, 2 }
 0x105   : > { %v7419_v50 = vadd.s32 4294967294, %v1412_v22  ;;  %v1276_v27 = vsel %vm1272_vm8, %v1256_v8, %v1259_v12  ;;  %v1282_v42 = vsel %vm1274_vm10, %v1265_v20, %v1281_v26  ;;  %v1278_v23 = vsel %vm1274_vm10, %v1262_v2, %v1277_v34 }
 0x106   : > { %v1283_v11 = vsel %vm1273_vm11, %v1280_v3, %v1282_v42  ;;  %v1284_v54 = vsel %vm1272_vm8, %v1262_v2, %v1265_v20  ;;  %v1285_v38 = vsel %vm1275_vm9, %v1271_v56, 1326507024  ;;  %v9281_v44 = vor.u32 4788187, %v1006_v35 }
 0x107   : > { %v9274_v30 = vpop.eup %8207  ;;  %vm7420_vm12 = vcmp.lt.s32.totalorder %v7419_v50, 0  ;;  %v1286_v18 = vsel %vm1274_vm10, %v1268_v19, %v1285_v38  ;;  %v9277_v21 = vmul.u32.u64.low %v9255_v45, %v1283_v11  ;;  %v9278_v37 = vmul.u32.u64.high %v9255_v45, %v1283_v11, %v9277_v21 }
 0x108   : > { %v1415_v33 = vsel %vm7420_vm12, 0, %v7419_v50  ;;  %v1287_v12 = vsel %vm1273_vm11, %v1284_v54, %v1286_v18  ;;  %v1564_v8 = vsel %vm1563_vm7, %v1562_v46, 0  ;;  %v1400_v2 = vadd.s32 %v9165_v32, %v9179_v49 }
 0x109   : > { %v1416_v20 = vsub.s32 32, %v1415_v33  ;;  %v1420_v22 = vsub.s32 4294967266, %v1415_v33  ;;  %v1279_v56 = vsel %vm1273_vm11, %v1276_v27, %v1278_v23  ;;  %v1001_v19 = vshll.u32 %v9156_v13, %v9219_v14 }
 0x10a   : > { %v9291_v34 = vmul.u32.u64.low %v9255_v45, %v1287_v12  ;;  %v9292_v3 = vmul.u32.u64.high %v9255_v45, %v1287_v12, %v9291_v34  ;;  %v1566_v35 = vand.u32 31, %v1564_v8  ;;  %v1298_v50 = vadd.s32 1, %v9278_v37 }
 0x10b   : > { %v1421_v26 = vadd.s32 127, %v1420_v22  ;;  %v9295_v42 = vshll.u32 %v1560_v57, 8  ;;  %v1451_v46 = vand.u32 2139095040, %v9248_v7  ;;  %v9298_v32 = vor.u32 %v1002_v55, %v1001_v19 }
 0x10c   : > { %v1008_v49 = vand.u32 2147483647, %v9281_v44  ;;  %v1295_v48 = vmul.u32 %v9255_v45, %v1279_v56  ;;  %v1567_v27 = vsub.s32 32, %v1566_v35  ;;  %v1417_v13 = vshll.u32 %v9258_v24, %v1415_v33  ;;  %v9366_v44 = vld [vmem:[%s11649_s0] ss:$0 sm:$0xff] }
 0x10d   : > { %v1418_v14 = vshrl.u32 %v1400_v2, %v1416_v20  ;;  %v1565_v23 = vshrl.u32 %v1564_v8, 5  ;;  %v1569_v11 = vshll.u32 %v11604_v59, %v1566_v35  ;;  %v1422_v54 = vshll.u32 %v1421_v26, 23 }
 0x10e   : > { %vm1297_vm13 = vc.u32 %v9292_v3, %v9277_v21  ;;  %v1570_v57 = vshrl.u32 %v11600_v4, %v1567_v27  ;;  %v1572_v55 = vshll.u32 %v11600_v4, %v1566_v35  ;;  %v1573_v18 = vshrl.u32 %v11598_v6, %v1567_v27 }
 0x10f   : > { %v1299_v38 = vsel %vm1297_vm13, %v1298_v50, %v9278_v37  ;;  %v1575_v45 = vshll.u32 %v11598_v6, %v1566_v35  ;;  %v1578_v24 = vshll.u32 %v11596_v10, %v1566_v35  ;;  %v1576_v8 = vshrl.u32 %v11596_v10, %v1567_v27 }
 0x110   : > { %v1300_v33 = vadd.s32 %v1299_v38, %v1295_v48  ;;  %v1571_v12 = vor.u32 %v1570_v57, %v1569_v11  ;;  %v1579_v2 = vshrl.u32 %v11602_v63, %v1567_v27  ;;  %v1574_v20 = vor.u32 %v1573_v18, %v1572_v55 }
 0x111   : > { %v1581_v22 = vshll.u32 %v11602_v63, %v1566_v35  ;;  %v1582_v56 = vshrl.u32 %v11593_v17, %v1567_v27  ;;  %v1452_v19 = vshrl.u32 %v1451_v46, 23  ;;  %v1423_v34 = vor.u32 4788187, %v1422_v54 }
 0x112   : > { %v1301_v37 = vadd.s32 536870912, %v1300_v33  ;;  %v1577_v26 = vor.u32 %v1576_v8, %v1575_v45  ;;  %v1580_v50 = vor.u32 %v1579_v2, %v1578_v24  ;;  %v1419_v0 = vor.u32 %v1418_v14, %v1417_v13 }
 0x113   : > { %v1583_v60 = vor.u32 %v1582_v56, %v1581_v22  ;;  %vm1584_vm14 = vcmp.lt.s32.totalorder %v1565_v23, 1  ;;  %vm1587_vm15 = vcmp.lt.s32.totalorder %v1565_v23, 4  ;;  %vm1586_vm0 = vcmp.lt.s32.totalorder %v1565_v23, 3 }
 0x114   : > { %v9316_v48 = vshrl.u32 %v1301_v37, 30  ;;  %v1592_v11 = vsel %vm1584_vm14, %v1571_v12, %v1574_v20  ;;  %v1593_v57 = vsel %vm1587_vm15, %v1580_v50, 920167782  ;;  %v1568_v55 = vshrl.u32 %v11604_v59, %v1567_v27 }
 0x115   : > { %vm1585_vm1 = vcmp.lt.s32.totalorder %v1565_v23, 2  ;;  %v1589_v35 = vsel %vm1587_vm15, %v1577_v26, 2102212464  ;;  %v1594_v46 = vsel %vm1586_vm0, %v1577_v26, %v1593_v57  ;;  %vm1346_vm2 = vcmp.lt.s32.totalorder %v9058_v5, 0 }
 0x116   : > { %v1424_v54 = vand.u32 2147483647, %v1423_v34  ;;  %v1303_v13 = vshll.u32 %v9316_v48, 30  ;;  %v1595_v14 = vsel %vm1585_vm1, %v1592_v11, %v1594_v46  ;;  %v1596_v38 = vsel %vm1584_vm14, %v1574_v20, %v1577_v26  ;;  %v770_v26 = vpop.permute.xlu1 %769 }
 0x117   : > { %v1426_v18 = vcvt.s32.f32 %v1419_v0  ;;  %v1597_v45 = vsel %vm1587_vm15, %v1583_v60, 1326507024  ;;  %v9326_v24 = vmul.u32.u64.low %v9295_v42, %v1595_v14  ;;  %v9327_v8 = vmul.u32.u64.high %v9295_v42, %v1595_v14, %v9326_v24 }
 0x118   : > { %vm826_vm4 = vcmp.lt.s32.totalorder %v8916_v29, 0  ;;  %v9331_v27 = vsub.s32 %v1300_v33, %v1303_v13  ;;  %v1588_v2 = vsel %vm1584_vm14, %v1568_v55, %v1571_v12  ;;  %v1590_v22 = vsel %vm1586_vm0, %v1574_v20, %v1589_v35 }
 0x119   : > { %v1598_v56 = vsel %vm1586_vm0, %v1580_v50, %v1597_v45  ;;  %v1010_v34 = vcvt.s32.f32 %v9298_v32  ;;  %v1430_v0 = vsub.s32 4, %v9234_v9  ;;  %v11591_v37 = vand.u32 2147483647, %v9248_v7 }
 0x11a   : > { %v1599_v60 = vsel %vm1585_vm1, %v1596_v38, %v1598_v56  ;;  %vm930_vm6 = vcmp.lt.s32.totalorder %v8932_v53, 0  ;;  %vm9343_vm7 = vcmp.le.f32.partialorder %v1344_v43, 0.7853982  ;;  %v1427_v12 = vmul.f32 %v1426_v18, %v1424_v54 }
 0x11b   : > { %v1306_v20 = vsub.s32 0, %v9331_v27  ;;  %v9349_v32 = vmul.u32.u64.low %v9295_v42, %v1599_v60  ;;  %v9350_v50 = vmul.u32.u64.high %v9295_v42, %v1599_v60, %v9349_v32  ;;  %v1011_v11 = vmul.f32 %v1010_v34, %v1008_v49 }
 0x11c   : > { %v1591_v57 = vsel %vm1585_vm1, %v1588_v2, %v1590_v22  ;;  %v1610_v55 = vadd.s32 1, %v9327_v8  ;;  %v7421_v35 = vadd.s32 4294967169, %v1452_v19  ;;  %8209 = vsinq.f32 %v9224_v62 }
 0x11d   : > { %v1223_v43 = vsel %vm1138_vm3, %v1222_v28, %v9079_v40  ;;  %v7414_v46 = vmin.u32 %v1306_v20, %v9331_v27  ;;  %v9369_v49 = vmul.f32 %v9366_v44, %v770_v26  ;;  %v908_v23 = vxor.u32 2147483648, %v9242_v61 }
 0x11e   : > { %8211 = vcosq.f32 %v9253_v51  ;;  %v1455_v62 = vand.u32 8388607, %v11591_v37  ;;  %v1458_v19 = vadd.s32 1, %v7421_v35  ;;  %v1428_v54 = vxor.u32 2147483648, %v1427_v12 }
 0x11f   : > { %11658 = vst [vmem:[#allocation4_spill] sm:$0xff] %v9369_v49  ;;  %v1308_v40 = vclz %v7414_v46  ;;  %v1607_v28 = vmul.u32 %v9295_v42, %v1591_v57  ;;  %vm1609_vm3 = vc.u32 %v9350_v50, %v9326_v24  ;;  %v1012_v13 = vxor.u32 2147483648, %v1011_v11 }
 0x120   : > { %v1431_v14 = vsel %vm1346_vm2, %v1430_v0, %v9234_v9  ;;  %v1611_v38 = vsel %vm1609_vm3, %v1610_v55, %v9327_v8  ;;  %vm1459_vm8 = vcmp.gt.s32.totalorder %v1458_v19, 0  ;;  %v1763_v22 = vand.u32 2139095040, %v9369_v49 }
 0x121   : > { %v7415_v18 = vadd.s32 4294967294, %v1308_v40  ;;  %v1612_v45 = vadd.s32 %v1611_v38, %v1607_v28  ;;  %v1460_v2 = vsel %vm1459_vm8, %v1458_v19, 0  ;;  %v9386_v42 = vsel %vm826_vm4, %v908_v23, %v9242_v61 }
 0x122   : > { %v9390_v56 = vsel %vm9215_vm5, 0, %v1223_v43  ;;  %8213 = vsinq.f32 %v9253_v51  ;;  %v1462_v9 = vand.u32 31, %v1460_v2  ;;  %v1429_v8 = vsel %vm1346_vm2, %v1428_v54, %v1427_v12 }
 0x123   : > { %vm7416_vm9 = vcmp.lt.s32.totalorder %v7415_v18, 0  ;;  %v1613_v34 = vadd.s32 536870912, %v1612_v45  ;;  %v1456_v0 = vor.u32 8388608, %v1455_v62  ;;  %v9397_v60 = vsel %vm930_vm6, %v1012_v13, %v1011_v11 }
 0x124   : > { %v9401_v61 = vsel %vm9343_vm7, 0, %v1431_v14  ;;  %v9403_v25 = vsel %vm7416_vm9, 0, %v7415_v18  ;;  %v1463_v26 = vsub.s32 32, %v1462_v9  ;;  %v1296_v51 = vadd.s32 %v9277_v21, %v9292_v3 }
 0x125   : > { %11659 = vst [vmem:[#allocation5_spill] sm:$0xff] %v9401_v61  ;;  %v1316_v20 = vsub.s32 4294967266, %v9403_v25  ;;  %v9408_v12 = vshrl.u32 %v1613_v34, 30  ;;  %v1764_v32 = vshrl.u32 %v1763_v22, 23  ;;  %v9413_v11 = vsel %vm9343_vm7, %v9058_v5, %v1429_v8 }
 0x126   : > { %v1326_v57 = vsub.s32 4, %v9316_v48  ;;  %v1466_v55 = vshrl.u32 %v11600_v4, %v1463_v26  ;;  %v1469_v35 = vshrl.u32 %v11598_v6, %v1463_v26  ;;  %v1465_v21 = vshll.u32 %v11604_v59, %v1462_v9 }
 0x127   : > { %v1615_v43 = vshll.u32 %v9408_v12, 30  ;;  %v9420_v3 = vshll.u32 %v1456_v0, 8  ;;  %v11595_v46 = vand.u32 2147483647, %v9369_v49  ;;  %v1317_v23 = vadd.s32 127, %v1316_v20 }
 0x128   : > { %v1468_v62 = vshll.u32 %v11600_v4, %v1462_v9  ;;  %v1471_v33 = vshll.u32 %v11598_v6, %v1462_v9  ;;  %v1472_v19 = vshrl.u32 %v11596_v10, %v1463_v26  ;;  %v1461_v40 = vshrl.u32 %v1460_v2, 5 }
 0x129   : > { %v9426_v54 = vsub.s32 %v1612_v45, %v1615_v43  ;;  %v1467_v28 = vor.u32 %v1466_v55, %v1465_v21  ;;  %v7433_v13 = vadd.s32 4294967169, %v1764_v32  ;;  %v9428_v14 = vpop.eup %8209  ;;  %vm1242_vm5 = vcmp.lt.s32.totalorder %v9146_v41, 0 }
 0x12a   : > { %v1470_v38 = vor.u32 %v1469_v35, %v1468_v62  ;;  %v1473_v18 = vor.u32 %v1472_v19, %v1471_v33  ;;  %v1474_v22 = vshll.u32 %v11596_v10, %v1462_v9  ;;  %v1475_v8 = vshrl.u32 %v11602_v63, %v1463_v26 }
 0x12b   : > { %v9433_v34 = vpop.eup %8211  ;;  %v1312_v0 = vsub.s32 32, %v9403_v25  ;;  %v1618_v45 = vsub.s32 0, %v9426_v54  ;;  %v1477_v2 = vshll.u32 %v11602_v63, %v1462_v9  ;;  %v1478_v20 = vshrl.u32 %v11593_v17, %v1463_v26 }
 0x12c   : > { %v1313_v32 = vshll.u32 %v9331_v27, %v9403_v25  ;;  %v1318_v55 = vshll.u32 %v1317_v23, 23  ;;  %v1464_v35 = vshrl.u32 %v11604_v59, %v1463_v26  ;;  %v1476_v43 = vor.u32 %v1475_v8, %v1474_v22 }
 0x12d   : > { %v7426_v21 = vmin.u32 %v1618_v45, %v9426_v54  ;;  %v1479_v62 = vor.u32 %v1478_v20, %v1477_v2  ;;  %vm1480_vm10 = vcmp.lt.s32.totalorder %v1461_v40, 1  ;;  %vm1483_vm11 = vcmp.lt.s32.totalorder %v1461_v40, 4 }
 0x12e   : > { %vm1482_vm12 = vcmp.lt.s32.totalorder %v1461_v40, 3  ;;  %v1485_v33 = vsel %vm1483_vm11, %v1473_v18, 2102212464  ;;  %v1488_v19 = vsel %vm1480_vm10, %v1467_v28, %v1470_v38  ;;  %v1489_v31 = vsel %vm1483_vm11, %v1476_v43, 920167782 }
 0x12f   : > { %v9444_v9 = vpop.eup %8213  ;;  %v1314_v37 = vshrl.u32 %v1296_v51, %v1312_v0  ;;  %v1620_v58 = vclz %v7426_v21  ;;  %vm1481_vm13 = vcmp.lt.s32.totalorder %v1461_v40, 2  ;;  %v1490_v27 = vsel %vm1482_vm12, %v1473_v18, %v1489_v31  ;;  %v780_v21 = vpop.permute.xlu1 %779 }
 0x130   : > { %v1319_v25 = vor.u32 4788187, %v1318_v55  ;;  %v1491_v26 = vsel %vm1481_vm13, %v1488_v19, %v1490_v27  ;;  %v1492_v23 = vsel %vm1480_vm10, %v1470_v38, %v1473_v18  ;;  %v1493_v22 = vsel %vm1483_vm11, %v1479_v62, 1326507024  ;;  %v765_v55 = vpop.permute.xlu0 %764 }
 0x131   : > { %v7427_v8 = vadd.s32 4294967294, %v1620_v58  ;;  %v1484_v45 = vsel %vm1480_vm10, %v1464_v35, %v1467_v28  ;;  %v1486_v2 = vsel %vm1482_vm12, %v1470_v38, %v1485_v33  ;;  %v1494_v20 = vsel %vm1482_vm12, %v1476_v43, %v1493_v22 }
 0x132   : > { %v1495_v17 = vsel %vm1481_vm13, %v1492_v23, %v1494_v20  ;;  %v9454_v51 = vmul.u32.u64.low %v9420_v3, %v1491_v26  ;;  %v9455_v0 = vmul.u32.u64.high %v9420_v3, %v1491_v26, %v9454_v51  ;;  %v1770_v31 = vadd.s32 1, %v7433_v13 }
 0x133   : > { %v9461_v18 = vsel %vm1242_vm5, %v1326_v57, %v9316_v48  ;;  %vm7428_vm14 = vcmp.lt.s32.totalorder %v7427_v8, 0  ;;  %v9464_v58 = vmul.u32.u64.low %v9420_v3, %v1495_v17  ;;  %v9465_v28 = vmul.u32.u64.high %v9420_v3, %v1495_v17, %v9464_v58 }
 0x134   : > { %v1315_v38 = vor.u32 %v1314_v37, %v1313_v32  ;;  %v1623_v35 = vsel %vm7428_vm14, 0, %v7427_v8  ;;  %v1487_v43 = vsel %vm1481_vm13, %v1484_v45, %v1486_v2  ;;  %vm1771_vm15 = vcmp.gt.s32.totalorder %v1770_v31, 0 }
 0x135   : > { %8215 = vcosq.f32 %v9413_v11  ;;  %v1628_v13 = vsub.s32 4294967266, %v1623_v35  ;;  %v1767_v62 = vand.u32 8388607, %v11595_v46  ;;  %v9472_v48 = vmul.f32 %v9366_v44, %v765_v55 }
 0x136   : > { %v1320_v57 = vand.u32 2147483647, %v1319_v25  ;;  %v1624_v33 = vsub.s32 32, %v1623_v35  ;;  %v1506_v17 = vadd.s32 1, %v9455_v0  ;;  %v1772_v19 = vsel %vm1771_vm15, %v1770_v31, 0 }
 0x137   : > { %11660 = vst [vmem:[#allocation6_spill] sm:$0xff] %v9472_v48  ;;  %v1629_v37 = vadd.s32 127, %v1628_v13  ;;  %v1503_v40 = vmul.u32 %v9420_v3, %v1487_v43  ;;  %vm1505_vm0 = vc.u32 %v9465_v28, %v9454_v51  ;;  %v9479_v32 = vmul.f32 %v9366_v44, %v780_v21 }
 0x138   : > { %v1322_v27 = vcvt.s32.f32 %v1315_v38  ;;  %v1608_v26 = vadd.s32 %v9326_v24, %v9350_v50  ;;  %v1507_v23 = vsel %vm1505_vm0, %v1506_v17, %v9455_v0  ;;  %v1774_v25 = vand.u32 31, %v1772_v19 }
 0x139   : > { %11661 = vst [vmem:[#allocation7_spill] sm:$0xff] %v9479_v32  ;;  %v1630_v22 = vshll.u32 %v1629_v37, 23  ;;  %v1508_v8 = vadd.s32 %v1507_v23, %v1503_v40  ;;  %v1768_v45 = vor.u32 8388608, %v1767_v62  ;;  %v11606_v2 = vand.u32 2147483647, %v9472_v48 }
 0x13a   : > { %v1323_v20 = vmul.f32 %v1322_v27, %v1320_v57  ;;  %v1625_v3 = vshll.u32 %v9426_v54, %v1623_v35  ;;  %v1626_v31 = vshrl.u32 %v1608_v26, %v1624_v33  ;;  %v1775_v55 = vsub.s32 32, %v1774_v25 }
 0x13b   : > { %v1509_v58 = vadd.s32 536870912, %v1508_v8  ;;  %v9486_v43 = vshrl.u32 %v1772_v19, 5  ;;  %v1777_v38 = vshll.u32 %v11604_v59, %v1774_v25  ;;  %v1780_v24 = vshll.u32 %v11600_v4, %v1774_v25 }
 0x13c   : > { %v1631_v50 = vor.u32 4788187, %v1630_v22  ;;  %v1778_v0 = vshrl.u32 %v11600_v4, %v1775_v55  ;;  %v1781_v21 = vshrl.u32 %v11598_v6, %v1775_v55  ;;  %v1784_v13 = vshrl.u32 %v11596_v10, %v1775_v55 }
 0x13d   : > { %v9493_v62 = vshrl.u32 %v1509_v58, 30  ;;  %v1783_v54 = vshll.u32 %v11598_v6, %v1774_v25  ;;  %v1786_v35 = vshll.u32 %v11596_v10, %v1774_v25  ;;  %v1787_v57 = vshrl.u32 %v11602_v63, %v1775_v55 }
 0x13e   : > { %vm9500_vm1 = vcmp.le.f32.partialorder %v1240_v52, 0.7853982  ;;  %v1627_v17 = vor.u32 %v1626_v31, %v1625_v3  ;;  %v1779_v19 = vor.u32 %v1778_v0, %v1777_v38  ;;  %v1782_v37 = vor.u32 %v1781_v21, %v1780_v24 }
 0x13f   : > { %v11664_v40 = vmov 1326507024   ;;  %vm1554_vm2 = vcmp.lt.s32.totalorder %v9174_v39, 0  ;;  %v1511_v26 = vshll.u32 %v9493_v62, 30  ;;  %v1785_v23 = vor.u32 %v1784_v13, %v1783_v54 }
 0x140   : > { %v1790_v27 = vshrl.u32 %v11664_v40, %v1775_v55  ;;  %v1788_v22 = vor.u32 %v1787_v57, %v1786_v35  ;;  %v1789_v58 = vshll.u32 %v11602_v63, %v1774_v25  ;;  %v1324_v46 = vxor.u32 2147483648, %v1323_v20 }
 0x141   : > { %v1632_v10 = vand.u32 2147483647, %v1631_v50  ;;  %v1638_v52 = vsub.s32 4, %v9408_v12  ;;  %v1808_v6 = vshll.u32 %v1768_v45, 8  ;;  %v9509_v4 = vsub.s32 %v1508_v8, %v1511_v26 }
 0x142   : > { %v1791_v3 = vor.u32 %v1790_v27, %v1789_v58  ;;  %vm1792_vm7 = vcmp.lt.s32.totalorder %v9486_v43, 1  ;;  %v1659_v31 = vand.u32 2139095040, %v9472_v48  ;;  %v9513_v38 = vpop.eup %8215  ;;  %v11666_v24 = vand.u32 2147483647, %v9174_v39 }
 0x143   : > { %11665 = vst [vmem:[#allocation8_spill] sm:$0xff] %v9513_v38  ;;  %v1634_v25 = vcvt.s32.f32 %v1627_v17  ;;  %v1776_v50 = vshrl.u32 %v11604_v59, %v1775_v55  ;;  %vm1795_vm8 = vcmp.lt.s32.totalorder %v9486_v43, 4  ;;  %v1800_v8 = vsel %vm1792_vm7, %v1779_v19, %v1782_v37 }
 0x144   : > { %vm9517_vm3 = vcmp.le.f32.partialorder %v11666_v24, 0.7853982  ;;  %v1514_v45 = vsub.s32 0, %v9509_v4  ;;  %vm1794_vm9 = vcmp.lt.s32.totalorder %v9486_v43, 3  ;;  %v1797_v21 = vsel %vm1795_vm8, %v1785_v23, 2102212464 }
 0x145   : > { %v1801_v13 = vsel %vm1795_vm8, %v1788_v22, 920167782  ;;  %v1635_v54 = vmul.f32 %v1634_v25, %v1632_v10  ;;  %vm1793_vm10 = vcmp.lt.s32.totalorder %v9486_v43, 2  ;;  %v1804_v57 = vsel %vm1792_vm7, %v1782_v37, %v1785_v23 }
 0x146   : > { %v1802_v35 = vsel %vm1794_vm9, %v1785_v23, %v1801_v13  ;;  %v7422_v55 = vmin.u32 %v1514_v45, %v9509_v4  ;;  %v1796_v17 = vsel %vm1792_vm7, %v1776_v50, %v1779_v19  ;;  %v1805_v26 = vsel %vm1795_vm8, %v1791_v3, 1326507024 }
 0x147   : > { %v1803_v27 = vsel %vm1793_vm10, %v1800_v8, %v1802_v35  ;;  %v1798_v58 = vsel %vm1794_vm9, %v1782_v37, %v1797_v21  ;;  %v1806_v24 = vsel %vm1794_vm9, %v1788_v22, %v1805_v26  ;;  %v9542_v10 = vsel %vm9500_vm1, 0, %v9461_v18  ;;  %v775_v8 = vpop.permute.xlu0 %774 }
 0x148   : > { %v9535_v63 = vmul.u32.u64.low %v1808_v6, %v1803_v27  ;;  %v9536_v59 = vmul.u32.u64.high %v1808_v6, %v1803_v27, %v9535_v63  ;;  %11669 = vst [vmem:[#allocation9_spill] sm:$0xff] %v9542_v10  ;;  %v1516_v23 = vclz %v7422_v55  ;;  %v1807_v25 = vsel %vm1793_vm10, %v1804_v57, %v1806_v24 }
 0x149   : > { %v1660_v19 = vshrl.u32 %v1659_v31, 23  ;;  %v1325_v50 = vsel %vm1242_vm5, %v1324_v46, %v1323_v20  ;;  %v1639_v37 = vsel %vm1554_vm2, %v1638_v52, %v9408_v12  ;;  %vm1450_vm11 = vcmp.lt.s32.totalorder %v9248_v7, 0 }
 0x14a   : > { %v9552_v22 = vmul.u32.u64.low %v1808_v6, %v1807_v25  ;;  %v9553_v3 = vmul.u32.u64.high %v1808_v6, %v1807_v25, %v9552_v22  ;;  %v1636_v18 = vxor.u32 2147483648, %v1635_v54  ;;  %v7423_v45 = vadd.s32 4294967294, %v1516_v23 }
 0x14b   : > { %v1799_v21 = vsel %vm1793_vm10, %v1796_v17, %v1798_v58  ;;  %v7429_v13 = vadd.s32 4294967169, %v1660_v19  ;;  %8217 = vsinq.f32 %v9413_v11  ;;  %v1818_v46 = vadd.s32 1, %v9536_v59 }
 0x14c   : > { %v1663_v20 = vand.u32 8388607, %v11606_v2  ;;  %v1971_v12 = vand.u32 2139095040, %v9479_v32  ;;  %v9564_v52 = vsel %vm9517_vm3, 0, %v1639_v37  ;;  %vm7424_vm5 = vcmp.lt.s32.totalorder %v7423_v45, 0 }
 0x14d   : > { %11670 = vst [vmem:[#allocation10_spill] sm:$0xff] %v9564_v52  ;;  %v1666_v31 = vadd.s32 1, %v7429_v13  ;;  %v9567_v35 = vmul.f32 %v9366_v44, %v775_v8  ;;  %v1328_v11 = vsel %vm9500_vm1, %v9146_v41, %v1325_v50  ;;  %v1519_v43 = vsel %vm7424_vm5, 0, %v7423_v45 }
 0x14e   : > { %v1815_v57 = vmul.u32 %v1808_v6, %v1799_v21  ;;  %vm1817_vm12 = vc.u32 %v9553_v3, %v9535_v63  ;;  %v1637_v55 = vsel %vm1554_vm2, %v1636_v18, %v1635_v54  ;;  %v1524_v17 = vsub.s32 4294967266, %v1519_v43 }
 0x14f   : > { %11671 = vst [vmem:[#allocation11_spill] sm:$0xff] %v9567_v35  ;;  %v1534_v27 = vsub.s32 4, %v9493_v62  ;;  %v1819_v26 = vsel %vm1817_vm12, %v1818_v46, %v9536_v59  ;;  %v1664_v24 = vor.u32 8388608, %v1663_v20  ;;  %vm1667_vm13 = vcmp.gt.s32.totalorder %v1666_v31, 0 }
 0x150   : > { %v1820_v58 = vadd.s32 %v1819_v26, %v1815_v57  ;;  %v1972_v23 = vshrl.u32 %v1971_v12, 23  ;;  %8219 = vcosq.f32 %v1328_v11  ;;  %v1520_v33 = vsub.s32 32, %v1519_v43 }
 0x151   : > { %v1525_v25 = vadd.s32 127, %v1524_v17  ;;  %v1668_v19 = vsel %vm1667_vm13, %v1666_v31, 0  ;;  %8221 = vsinq.f32 %v1328_v11  ;;  %v1504_v6 = vadd.s32 %v9454_v51, %v9465_v28 }
 0x152   : > { %v1821_v50 = vadd.s32 536870912, %v1820_v58  ;;  %v1670_v37 = vand.u32 31, %v1668_v19  ;;  %v9583_v54 = vsel %vm9517_vm3, %v9174_v39, %v1637_v55  ;;  %v9588_v22 = vsel %vm1450_vm11, %v1534_v27, %v9493_v62 }
 0x153   : > { %v1526_v59 = vshll.u32 %v1525_v25, 23  ;;  %v11613_v8 = vand.u32 2147483647, %v9479_v32  ;;  %v9593_v21 = vshll.u32 %v1664_v24, 8  ;;  %v7441_v51 = vadd.s32 4294967169, %v1972_v23 }
 0x154   : > { %v9591_v18 = vshrl.u32 %v1821_v50, 30  ;;  %v1671_v45 = vsub.s32 32, %v1670_v37  ;;  %v1521_v28 = vshll.u32 %v9509_v4, %v1519_v43  ;;  %v1522_v13 = vshrl.u32 %v1504_v6, %v1520_v33 }
 0x155   : > { %v1669_v0 = vshrl.u32 %v1668_v19, 5  ;;  %v11672_v46 = vmov 683565275   ;;  %v1527_v12 = vor.u32 4788187, %v1526_v59  ;;  %v1978_v19 = vadd.s32 1, %v7441_v51 }
 0x156   : > { %v1673_v20 = vshll.u32 %v11672_v46, %v1670_v37  ;;  %v1823_v31 = vshll.u32 %v9591_v18, 30  ;;  %v11673_v11 = vmov 2475754826   ;;  %v11674_v55 = vmov 2131351028  }
 0x157   : > { %v1674_v62 = vshrl.u32 %v11673_v11, %v1671_v45  ;;  %v1676_v57 = vshll.u32 %v11673_v11, %v1670_v37  ;;  %v1677_v17 = vshrl.u32 %v11674_v55, %v1671_v45  ;;  %v1679_v27 = vshll.u32 %v11674_v55, %v1670_v37 }
 0x158   : > { %v11675_v26 = vmov 2102212464   ;;  %v11676_v23 = vmov 920167782   ;;  %v9604_v4 = vsub.s32 %v1820_v58, %v1823_v31  ;;  %v9609_v33 = vand.u32 8388607, %v11613_v8  ;;  %v9611_v6 = vpop.eup %8217 }
 0x159   : > { %v1680_v24 = vshrl.u32 %v11675_v26, %v1671_v45  ;;  %v1683_v25 = vshrl.u32 %v11676_v23, %v1671_v45  ;;  %v1682_v43 = vshll.u32 %v11675_v26, %v1670_v37  ;;  %11677 = vst [vmem:[#allocation12_spill] sm:$0xff] %v9611_v6  ;;  %v1523_v50 = vor.u32 %v1522_v13, %v1521_v28 }
 0x15a   : > { %v1675_v59 = vor.u32 %v1674_v62, %v1673_v20  ;;  %v1678_v2 = vor.u32 %v1677_v17, %v1676_v57  ;;  %v1826_v39 = vsub.s32 0, %v9604_v4  ;;  %v1685_v10 = vshll.u32 %v11676_v23, %v1670_v37 }
 0x15b   : > { %v1681_v52 = vor.u32 %v1680_v24, %v1679_v27  ;;  %v1684_v61 = vor.u32 %v1683_v25, %v1682_v43  ;;  %v1686_v58 = vshrl.u32 %v11664_v40, %v1671_v45  ;;  %v1528_v31 = vand.u32 2147483647, %v1527_v12 }
 0x15c   : > { %v1672_v38 = vshrl.u32 %v11672_v46, %v1671_v45  ;;  %vm1688_vm14 = vcmp.lt.s32.totalorder %v1669_v0, 1  ;;  %vm1691_vm15 = vcmp.lt.s32.totalorder %v1669_v0, 4  ;;  %v7434_v51 = vmin.u32 %v1826_v39, %v9604_v4 }
 0x15d   : > { %v1687_v8 = vor.u32 %v1686_v58, %v1685_v10  ;;  %vm1690_vm0 = vcmp.lt.s32.totalorder %v1669_v0, 3  ;;  %v1693_v28 = vsel %vm1691_vm15, %v1681_v52, 2102212464  ;;  %v1696_v62 = vsel %vm1688_vm14, %v1675_v59, %v1678_v2  ;;  %v9623_v57 = vpop.eup %8219 }
 0x15e   : > { %v1692_v13 = vsel %vm1688_vm14, %v1672_v38, %v1675_v59  ;;  %v1694_v20 = vsel %vm1690_vm0, %v1678_v2, %v1693_v28  ;;  %v1697_v37 = vsel %vm1691_vm15, %v1684_v61, 920167782  ;;  %11678 = vst [vmem:[#allocation13_spill] sm:$0xff] %v9623_v57  ;;  %v1530_v12 = vcvt.s32.f32 %v1523_v50  ;;  %v9626_v39 = vpop.eup %8221 }
 0x15f   : > { %v1828_v45 = vclz %v7434_v51  ;;  %vm1689_vm1 = vcmp.lt.s32.totalorder %v1669_v0, 2  ;;  %v1698_v17 = vsel %vm1690_vm0, %v1681_v52, %v1697_v37  ;;  %v1700_v27 = vsel %vm1688_vm14, %v1678_v2, %v1681_v52 }
 0x160   : > { %v1699_v10 = vsel %vm1689_vm1, %v1696_v62, %v1698_v17  ;;  %v1701_v38 = vsel %vm1691_vm15, %v1687_v8, 1326507024  ;;  %v1531_v25 = vmul.f32 %v1530_v12, %v1528_v31  ;;  %v1695_v59 = vsel %vm1689_vm1, %v1692_v13, %v1694_v20 }
 0x161   : > { %v7435_v43 = vadd.s32 4294967294, %v1828_v45  ;;  %v1702_v58 = vsel %vm1690_vm0, %v1684_v61, %v1701_v38  ;;  %v9633_v50 = vmul.u32.u64.low %v9593_v21, %v1699_v10  ;;  %v9634_v51 = vmul.u32.u64.high %v9593_v21, %v1699_v10, %v9633_v50 }
 0x162   : > { %v1703_v28 = vsel %vm1689_vm1, %v1700_v27, %v1702_v58  ;;  %vm1979_vm2 = vcmp.gt.s32.totalorder %v1978_v19, 0  ;;  %vm1762_vm3 = vcmp.lt.s32.totalorder %v9369_v49, 0  ;;  %v1816_v8 = vadd.s32 %v9535_v63, %v9553_v3 }
 0x163   : > { %vm7436_vm7 = vcmp.lt.s32.totalorder %v7435_v43, 0  ;;  %v9638_v62 = vmul.u32.u64.low %v9593_v21, %v1703_v28  ;;  %v9639_v2 = vmul.u32.u64.high %v9593_v21, %v1703_v28, %v9638_v62  ;;  %v1980_v52 = vsel %vm1979_vm2, %v1978_v19, 0 }
 0x164   : > { %v1831_v0 = vsel %vm7436_vm7, 0, %v7435_v43  ;;  %v1976_v61 = vor.u32 8388608, %v9609_v33  ;;  %v1982_v31 = vand.u32 31, %v1980_v52  ;;  %v1846_v37 = vsub.s32 4, %v9591_v18 }
 0x165   : > { %v1832_v13 = vsub.s32 32, %v1831_v0  ;;  %v1836_v20 = vsub.s32 4294967266, %v1831_v0  ;;  %v1867_v12 = vand.u32 2139095040, %v9567_v35  ;;  %v1532_v45 = vxor.u32 2147483648, %v1531_v25 }
 0x166   : > { %v1711_v17 = vmul.u32 %v9593_v21, %v1695_v59  ;;  %v1714_v19 = vadd.s32 1, %v9634_v51  ;;  %v1983_v10 = vsub.s32 32, %v1982_v31  ;;  %v1833_v27 = vshll.u32 %v9604_v4, %v1831_v0 }
 0x167   : > { %v1834_v38 = vshrl.u32 %v1816_v8, %v1832_v13  ;;  %v1837_v63 = vadd.s32 127, %v1836_v20  ;;  %vm1713_vm8 = vc.u32 %v9639_v2, %v9633_v50  ;;  %v1985_v33 = vshll.u32 %v11672_v46, %v1982_v31 }
 0x168   : > { %v1715_v3 = vsel %vm1713_vm8, %v1714_v19, %v9634_v51  ;;  %v1986_v43 = vshrl.u32 %v11673_v11, %v1983_v10  ;;  %v1989_v58 = vshrl.u32 %v11674_v55, %v1983_v10  ;;  %v1981_v59 = vshrl.u32 %v1980_v52, 5 }
 0x169   : > { %v1838_v28 = vshll.u32 %v1837_v63, 23  ;;  %v1716_v21 = vadd.s32 %v1715_v3, %v1711_v17  ;;  %v1988_v62 = vshll.u32 %v11673_v11, %v1982_v31  ;;  %v1835_v24 = vor.u32 %v1834_v38, %v1833_v27 }
 0x16a   : > { %v1987_v4 = vor.u32 %v1986_v43, %v1985_v33  ;;  %v1991_v8 = vshll.u32 %v11674_v55, %v1982_v31  ;;  %v1992_v0 = vshrl.u32 %v11675_v26, %v1983_v10  ;;  %v11679_v13 = vand.u32 2147483647, %v9248_v7 }
 0x16b   : > { %v1839_v20 = vor.u32 4788187, %v1838_v28  ;;  %v1717_v19 = vadd.s32 536870912, %v1716_v21  ;;  %v1994_v63 = vshll.u32 %v11675_v26, %v1982_v31  ;;  %v1995_v52 = vshrl.u32 %v11676_v23, %v1983_v10 }
 0x16c   : > { %vm9661_vm9 = vcmp.le.f32.partialorder %v11679_v13, 0.7853982  ;;  %v1990_v17 = vor.u32 %v1989_v58, %v1988_v62  ;;  %v1993_v3 = vor.u32 %v1992_v0, %v1991_v8  ;;  %v1997_v27 = vshll.u32 %v11676_v23, %v1982_v31 }
 0x16d   : > { %v1998_v38 = vshrl.u32 %v11664_v40, %v1983_v10  ;;  %v1847_v33 = vsel %vm1762_vm3, %v1846_v37, %v9591_v18  ;;  %v1718_v43 = vshrl.u32 %v1717_v19, 30  ;;  %v1996_v13 = vor.u32 %v1995_v52, %v1994_v63 }
 0x16e   : > { %v2016_v6 = vshll.u32 %v1976_v61, 8  ;;  %v1533_v28 = vsel %vm1450_vm11, %v1532_v45, %v1531_v25  ;;  %v11682_v5 = vand.u32 2147483647, %v9369_v49  ;;  %v1840_v58 = vand.u32 2147483647, %v1839_v20 }
 0x16f   : > { %v1999_v31 = vor.u32 %v1998_v38, %v1997_v27  ;;  %v1868_v62 = vshrl.u32 %v1867_v12, 23  ;;  %v1719_v8 = vshll.u32 %v1718_v43, 30  ;;  %v1984_v0 = vshrl.u32 %v11672_v46, %v1983_v10 }
 0x170   : > { %vm9676_vm10 = vcmp.le.f32.partialorder %v11682_v5, 0.7853982  ;;  %vm2000_vm5 = vcmp.lt.s32.totalorder %v1981_v59, 1  ;;  %vm2003_vm12 = vcmp.lt.s32.totalorder %v1981_v59, 4  ;;  %v1842_v18 = vcvt.s32.f32 %v1835_v24 }
 0x171   : > { %vm1658_vm13 = vcmp.lt.s32.totalorder %v9472_v48, 0  ;;  %v2005_v61 = vsel %vm2003_vm12, %v1993_v3, 2102212464  ;;  %v2008_v37 = vsel %vm2000_vm5, %v1987_v4, %v1990_v17  ;;  %v2009_v25 = vsel %vm2003_vm12, %v1996_v13, 920167782 }
 0x172   : > { %v9682_v45 = vsub.s32 %v1716_v21, %v1719_v8  ;;  %vm2001_vm11 = vcmp.lt.s32.totalorder %v1981_v59, 2  ;;  %vm2002_vm14 = vcmp.lt.s32.totalorder %v1981_v59, 3  ;;  %v2012_v5 = vsel %vm2000_vm5, %v1990_v17, %v1993_v3 }
 0x173   : > { %v1843_v19 = vmul.f32 %v1842_v18, %v1840_v58  ;;  %v2004_v20 = vsel %vm2000_vm5, %v1984_v0, %v1987_v4  ;;  %v2010_v63 = vsel %vm2002_vm14, %v1993_v3, %v2009_v25  ;;  %v2013_v12 = vsel %vm2003_vm12, %v1999_v31, 1326507024 }
 0x174   : > { %v11685_v52 = vand.u32 2147483647, %v9472_v48  ;;  %v1722_v24 = vsub.s32 0, %v9682_v45  ;;  %v2006_v27 = vsel %vm2002_vm14, %v1990_v17, %v2005_v61  ;;  %v2011_v38 = vsel %vm2001_vm11, %v2008_v37, %v2010_v63  ;;  %v790_v63 = vpop.permute.xlu1 %789 }
 0x175   : > { %v2014_v21 = vsel %vm2002_vm14, %v1996_v13, %v2013_v12  ;;  %v1536_v8 = vsel %vm9661_vm9, %v9248_v7, %v1533_v28  ;;  %v9696_v3 = vmul.u32.u64.low %v2016_v6, %v2011_v38  ;;  %v9697_v58 = vmul.u32.u64.high %v2016_v6, %v2011_v38, %v9696_v3 }
 0x176   : > { %vm9686_vm15 = vcmp.le.f32.partialorder %v11685_v52, 0.7853982  ;;  %v2015_v4 = vsel %vm2001_vm11, %v2012_v5, %v2014_v21  ;;  %v7430_v31 = vmin.u32 %v1722_v24, %v9682_v45  ;;  %v1742_v0 = vsub.s32 4, %v1718_v43 }
 0x177   : > { %v9701_v18 = vmul.u32.u64.low %v2016_v6, %v2015_v4  ;;  %v9702_v25 = vmul.u32.u64.high %v2016_v6, %v2015_v4, %v9701_v18  ;;  %8223 = vcosq.f32 %v9583_v54  ;;  %v1844_v17 = vxor.u32 2147483648, %v1843_v19 }
 0x178   : > { %v2007_v13 = vsel %vm2001_vm11, %v2004_v20, %v2006_v27  ;;  %v7437_v61 = vadd.s32 4294967169, %v1868_v62  ;;  %8225 = vsinq.f32 %v9583_v54  ;;  %v9710_v28 = vsel %vm9661_vm9, 0, %v9588_v22 }
 0x179   : > { %11688 = vst [vmem:[#allocation14_spill] sm:$0xff] %v9710_v28  ;;  %v9714_v37 = vsel %vm9676_vm10, 0, %v1847_v33  ;;  %v1724_v5 = vclz %v7430_v31  ;;  %8227 = vcosq.f32 %v1536_v8  ;;  %v2026_v12 = vadd.s32 1, %v9697_v58  ;;  %v7963_v28 = vld [vmem:[%s11696_s1] sm:$0xff]  }
 0x17a   : > { %11689 = vst [vmem:[#allocation15_spill] sm:$0xff] %v9714_v37  ;;  %v11690_v59 = vand.u32 2147483647, %v9567_v35  ;;  %v1874_v62 = vadd.s32 1, %v7437_v61  ;;  %v1743_v54 = vsel %vm1658_vm13, %v1742_v0, %v1718_v43  ;;  %v2023_v51 = vmul.u32 %v2016_v6, %v2007_v13  ;;  %7803 = vmatprep.subr.bf16.mxu0 %v7963_v28 }
 0x17b   : > { %v7431_v52 = vadd.s32 4294967294, %v1724_v5  ;;  %vm2025_vm0 = vc.u32 %v9702_v25, %v9696_v3  ;;  %v1845_v22 = vsel %vm1762_vm3, %v1844_v17, %v1843_v19  ;;  %v9727_v24 = vmul.f32 %v9366_v44, %v790_v63  ;;  %7804 = vmatpush3.bf16.msra.mxu0 %v7963_v28 }
 0x17c   : > { %v1871_v20 = vand.u32 8388607, %v11690_v59  ;;  %v2027_v33 = vsel %vm2025_vm0, %v2026_v12, %v9697_v58  ;;  %vm1875_vm1 = vcmp.gt.s32.totalorder %v1874_v62, 0  ;;  %8229 = vsinq.f32 %v1536_v8 }
 0x17d   : > { %vm7432_vm2 = vcmp.lt.s32.totalorder %v7431_v52, 0  ;;  %v2028_v27 = vadd.s32 %v2027_v33, %v2023_v51  ;;  %v1876_v38 = vsel %vm1875_vm1, %v1874_v62, 0  ;;  %v1712_v43 = vadd.s32 %v9633_v50, %v9639_v2 }
 0x17e   : > { %v1727_v6 = vsel %vm7432_vm2, 0, %v7431_v52  ;;  %v9733_v21 = vsel %vm9686_vm15, 0, %v1743_v54  ;;  %v1878_v4 = vand.u32 31, %v1876_v38  ;;  %v9738_v19 = vsel %vm9676_vm10, %v9369_v49, %v1845_v22 }
 0x17f   : > { %11691 = vst [vmem:[#allocation16_spill] sm:$0xff] %v9733_v21  ;;  %v1728_v58 = vsub.s32 32, %v1727_v6  ;;  %v1732_v31 = vsub.s32 4294967266, %v1727_v6  ;;  %v2029_v8 = vadd.s32 536870912, %v2028_v27  ;;  %v1872_v0 = vor.u32 8388608, %v1871_v20 }
 0x180   : > { %v9740_v18 = vshrl.u32 %v1876_v38, 5  ;;  %v1879_v17 = vsub.s32 32, %v1878_v4  ;;  %v2179_v50 = vand.u32 2139095040, %v9727_v24  ;;  %v1729_v2 = vshll.u32 %v9682_v45, %v1727_v6 }
 0x181   : > { %v1730_v13 = vshrl.u32 %v1712_v43, %v1728_v58  ;;  %v1733_v61 = vadd.s32 127, %v1732_v31  ;;  %v9744_v5 = vshrl.u32 %v2029_v8, 30  ;;  %v1881_v63 = vshll.u32 %v11672_v46, %v1878_v4 }
 0x182   : > { %v1882_v57 = vshrl.u32 %v11673_v11, %v1879_v17  ;;  %v1885_v12 = vshrl.u32 %v11674_v55, %v1879_v17  ;;  %v1888_v59 = vshrl.u32 %v11675_v26, %v1879_v17  ;;  %v1884_v52 = vshll.u32 %v11673_v11, %v1878_v4 }
 0x183   : > { %v1734_v20 = vshll.u32 %v1733_v61, 23  ;;  %v2031_v62 = vshll.u32 %v9744_v5, 30  ;;  %v1887_v54 = vshll.u32 %v11674_v55, %v1878_v4  ;;  %v1731_v45 = vor.u32 %v1730_v13, %v1729_v2 }
 0x184   : > { %v1883_v51 = vor.u32 %v1882_v57, %v1881_v63  ;;  %v1890_v22 = vshll.u32 %v11675_v26, %v1878_v4  ;;  %v1891_v33 = vshrl.u32 %v11676_v23, %v1879_v17  ;;  %v9755_v38 = vpop.eup %8223  ;;  %v1886_v58 = vor.u32 %v1885_v12, %v1884_v52 }
 0x185   : > { %11692 = vst [vmem:[#allocation17_spill] sm:$0xff] %v9755_v38  ;;  %v1735_v43 = vor.u32 4788187, %v1734_v20  ;;  %v9757_v6 = vsub.s32 %v2028_v27, %v2031_v62  ;;  %v1889_v31 = vor.u32 %v1888_v59, %v1887_v54  ;;  %v9759_v8 = vpop.eup %8225  ;;  %v1893_v49 = vshll.u32 %v11676_v23, %v1878_v4  ;;  %v785_v27 = vpop.permute.xlu0 %784 }
 0x186   : > { %11693 = vst [vmem:[#allocation18_spill] sm:$0xff] %v9759_v8  ;;  %v1892_v61 = vor.u32 %v1891_v33, %v1890_v22  ;;  %v1894_v37 = vshrl.u32 %v11664_v40, %v1879_v17  ;;  %v9763_v2 = vshll.u32 %v1872_v0, 8  ;;  %v9765_v13 = vpop.eup %8227  ;;  %v1880_v57 = vshrl.u32 %v11672_v46, %v1879_v17  ;;  %v800_v38 = vpop.permute.xlu1 %799 }
 0x187   : > { %11694 = vst [vmem:[#allocation19_spill] sm:$0xff] %v9765_v13  ;;  %v2034_v63 = vsub.s32 0, %v9757_v6  ;;  %v2180_v20 = vshrl.u32 %v2179_v50, 23  ;;  %v1738_v12 = vcvt.s32.f32 %v1731_v45  ;;  %vm1896_vm7 = vcmp.lt.s32.totalorder %v9740_v18, 1 }
 0x188   : > { %v1895_v59 = vor.u32 %v1894_v37, %v1893_v49  ;;  %vm1899_vm3 = vcmp.lt.s32.totalorder %v9740_v18, 4  ;;  %v1736_v4 = vand.u32 2147483647, %v1735_v43  ;;  %v1904_v52 = vsel %vm1896_vm7, %v1883_v51, %v1886_v58 }
 0x189   : > { %v7442_v62 = vmin.u32 %v2034_v63, %v9757_v6  ;;  %v1901_v0 = vsel %vm1899_vm3, %v1889_v31, 2102212464  ;;  %v9773_v54 = vpop.eup %8229  ;;  %vm1898_vm8 = vcmp.lt.s32.totalorder %v9740_v18, 3  ;;  %v1905_v22 = vsel %vm1899_vm3, %v1892_v61, 920167782 }
 0x18a   : > { %11695 = vst [vmem:[#allocation20_spill] sm:$0xff] %v9773_v54  ;;  %v1908_v17 = vsel %vm1896_vm7, %v1886_v58, %v1889_v31  ;;  %v1909_v33 = vsel %vm1899_vm3, %v1895_v59, 1326507024  ;;  %vm1897_vm9 = vcmp.lt.s32.totalorder %v9740_v18, 2  ;;  %v1900_v49 = vsel %vm1896_vm7, %v1880_v57, %v1883_v51  ;;  %v7964_v59 = vld [vmem:[%s11697_s28] sm:$0xff]  }
 0x18b   : > { %v2036_v50 = vclz %v7442_v62  ;;  %v1906_v37 = vsel %vm1898_vm8, %v1889_v31, %v1905_v22  ;;  %v1902_v45 = vsel %vm1898_vm8, %v1886_v58, %v1901_v0  ;;  %v1910_v63 = vsel %vm1898_vm8, %v1892_v61, %v1909_v33  ;;  %7821 = vmatprep.subr.bf16.mxu1 %v7964_v59 }
 0x18c   : > { %v1907_v43 = vsel %vm1897_vm9, %v1904_v52, %v1906_v37  ;;  %v7449_v21 = vadd.s32 4294967169, %v2180_v20  ;;  %8231 = vcosq.f32 %v9738_v19  ;;  %v1911_v51 = vsel %vm1897_vm9, %v1908_v17, %v1910_v63  ;;  %7822 = vmatpush3.bf16.msra.mxu1 %v7964_v59 }
 0x18d   : > { %v7443_v62 = vadd.s32 4294967294, %v2036_v50  ;;  %v9789_v58 = vmul.f32 %v9366_v44, %v785_v27  ;;  %v1739_v31 = vmul.f32 %v1738_v12, %v1736_v4  ;;  %v1903_v0 = vsel %vm1897_vm9, %v1900_v49, %v1902_v45 }
 0x18e   : > { %v9792_v61 = vmul.u32.u64.low %v9763_v2, %v1911_v51  ;;  %v9793_v57 = vmul.u32.u64.high %v9763_v2, %v1911_v51, %v9792_v61  ;;  %v2186_v20 = vadd.s32 1, %v7449_v21  ;;  %v2024_v44 = vadd.s32 %v9696_v3, %v9702_v25 }
 0x18f   : > { %vm7444_vm10 = vcmp.lt.s32.totalorder %v7443_v62, 0  ;;  %v9798_v52 = vmul.u32.u64.low %v9763_v2, %v1907_v43  ;;  %v9799_v22 = vmul.u32.u64.high %v9763_v2, %v1907_v43, %v9798_v52  ;;  %v11698_v12 = vand.u32 2147483647, %v9727_v24 }
 0x190   : > { %v2039_v27 = vsel %vm7444_vm10, 0, %v7443_v62  ;;  %vm2187_vm5 = vcmp.gt.s32.totalorder %v2186_v20, 0  ;;  %vm1970_vm12 = vcmp.lt.s32.totalorder %v9479_v32, 0  ;;  %v2054_v17 = vsub.s32 4, %v9744_v5 }
 0x191   : > { %v9806_v21 = vand.u32 8388607, %v11698_v12  ;;  %v2040_v18 = vsub.s32 32, %v2039_v27  ;;  %v2044_v4 = vsub.s32 4294967266, %v2039_v27  ;;  %v2188_v33 = vsel %vm2187_vm5, %v2186_v20, 0 }
 0x192   : > { %v1740_v50 = vxor.u32 2147483648, %v1739_v31  ;;  %v1919_v28 = vmul.u32 %v9763_v2, %v1903_v0  ;;  %vm1921_vm11 = vc.u32 %v9793_v57, %v9798_v52  ;;  %v2190_v3 = vand.u32 31, %v2188_v33 }
 0x193   : > { %v2041_v25 = vshll.u32 %v9757_v6, %v2039_v27  ;;  %v2042_v49 = vshrl.u32 %v2024_v44, %v2040_v18  ;;  %v2045_v37 = vadd.s32 127, %v2044_v4  ;;  %v1922_v45 = vadd.s32 1, %v9799_v22 }
 0x194   : > { %v9815_v43 = vshrl.u32 %v2188_v33, 5  ;;  %v2191_v63 = vsub.s32 32, %v2190_v3  ;;  %v2193_v59 = vshll.u32 %v11672_v46, %v2190_v3  ;;  %v2196_v62 = vshll.u32 %v11673_v11, %v2190_v3 }
 0x195   : > { %v2043_v51 = vor.u32 %v2042_v49, %v2041_v25  ;;  %v2046_v61 = vshll.u32 %v2045_v37, 23  ;;  %v1923_v2 = vsel %vm1921_vm11, %v1922_v45, %v9799_v22  ;;  %v2199_v20 = vshll.u32 %v11674_v55, %v2190_v3 }
 0x196   : > { %v1924_v0 = vadd.s32 %v1923_v2, %v1919_v28  ;;  %v2194_v6 = vshrl.u32 %v11673_v11, %v2191_v63  ;;  %v2197_v44 = vshrl.u32 %v11674_v55, %v2191_v63  ;;  %v2202_v27 = vshll.u32 %v11675_v26, %v2190_v3 }
 0x197   : > { %v2047_v12 = vor.u32 4788187, %v2046_v61  ;;  %v2050_v18 = vcvt.s32.f32 %v2043_v51  ;;  %v2200_v4 = vshrl.u32 %v11675_v26, %v2191_v63  ;;  %v2203_v33 = vshrl.u32 %v11676_v23, %v2191_v63 }
 0x198   : > { %v1925_v25 = vadd.s32 536870912, %v1924_v0  ;;  %v2195_v49 = vor.u32 %v2194_v6, %v2193_v59  ;;  %v2198_v37 = vor.u32 %v2197_v44, %v2196_v62  ;;  %v2205_v22 = vshll.u32 %v11676_v23, %v2190_v3  ;;  %v8560_v3 = vld [vmem:[%s11649_s0] ss:$0 sm:$0xff] }
 0x199   : > { %v2048_v45 = vand.u32 2147483647, %v2047_v12  ;;  %v2201_v28 = vor.u32 %v2200_v4, %v2199_v20  ;;  %v2204_v2 = vor.u32 %v2203_v33, %v2202_v27  ;;  %v2206_v8 = vshrl.u32 %v11664_v40, %v2191_v63  ;;  %v9828_v13 = vpop.eup %8231 }
 0x19a   : > { %v1741_v51 = vsel %vm1658_vm13, %v1740_v50, %v1739_v31  ;;  %v2055_v61 = vsel %vm1970_vm12, %v2054_v17, %v9744_v5  ;;  %v9835_v54 = vshrl.u32 %v1925_v25, 30  ;;  %v9840_v59 = vmul.f32 %v8560_v3, %v800_v38 }
 0x19b   : > { %v11699_v62 = vand.u32 2147483647, %v9479_v32  ;;  %v2051_v6 = vmul.f32 %v2050_v18, %v2048_v45  ;;  %v2184_v31 = vor.u32 8388608, %v9806_v21  ;;  %v2207_v50 = vor.u32 %v2206_v8, %v2205_v22 }
 0x19c   : > { %vm2208_vm13 = vcmp.lt.s32.totalorder %v9815_v43, 1  ;;  %v1927_v5 = vshll.u32 %v9835_v54, 30  ;;  %v2192_v17 = vshrl.u32 %v11672_v46, %v2191_v63  ;;  %vm2211_vm0 = vcmp.lt.s32.totalorder %v9815_v43, 4 }
 0x19d   : > { %vm9844_vm14 = vcmp.le.f32.partialorder %v11699_v62, 0.7853982  ;;  %v2216_v38 = vsel %vm2208_vm13, %v2195_v49, %v2198_v37  ;;  %vm2209_vm1 = vcmp.lt.s32.totalorder %v9815_v43, 2  ;;  %vm2210_vm2 = vcmp.lt.s32.totalorder %v9815_v43, 3 }
 0x19e   : > { %v2213_v44 = vsel %vm2211_vm0, %v2201_v28, 2102212464  ;;  %v2217_v27 = vsel %vm2211_vm0, %v2204_v2, 920167782  ;;  %v2052_v12 = vxor.u32 2147483648, %v2051_v6  ;;  %v9857_v21 = vsub.s32 %v1924_v0, %v1927_v5  ;;  %v795_v5 = vpop.permute.xlu0 %794 }
 0x19f   : > { %v2218_v8 = vsel %vm2210_vm2, %v2201_v28, %v2217_v27  ;;  %v2220_v18 = vsel %vm2208_vm13, %v2198_v37, %v2201_v28  ;;  %v1744_v63 = vsel %vm9686_vm15, %v9472_v48, %v1741_v51  ;;  %v2221_v33 = vsel %vm2211_vm0, %v2207_v50, 1326507024 }
 0x1a0   : > { %v2219_v4 = vsel %vm2209_vm1, %v2216_v38, %v2218_v8  ;;  %v2224_v25 = vshll.u32 %v2184_v31, 8  ;;  %vm1866_vm7 = vcmp.lt.s32.totalorder %v9567_v35, 0  ;;  %v1930_v22 = vsub.s32 0, %v9857_v21 }
 0x1a1   : > { %v2212_v0 = vsel %vm2208_vm13, %v2192_v17, %v2195_v49  ;;  %v2214_v45 = vsel %vm2210_vm2, %v2198_v37, %v2213_v44  ;;  %v2222_v62 = vsel %vm2210_vm2, %v2204_v2, %v2221_v33  ;;  %v11628_v38 = vand.u32 2147483647, %v9789_v58 }
 0x1a2   : > { %v2223_v28 = vsel %vm2209_vm1, %v2220_v18, %v2222_v62  ;;  %v9872_v10 = vmul.u32.u64.low %v2224_v25, %v2219_v4  ;;  %v9873_v51 = vmul.u32.u64.high %v2224_v25, %v2219_v4, %v9872_v10  ;;  %v2053_v31 = vsel %vm1970_vm12, %v2052_v12, %v2051_v6 }
 0x1a3   : > { %v7438_v50 = vmin.u32 %v1930_v22, %v9857_v21  ;;  %v9879_v27 = vmul.u32.u64.low %v2224_v25, %v2223_v28  ;;  %v9880_v8 = vmul.u32.u64.high %v2224_v25, %v2223_v28, %v9879_v27  ;;  %8233 = vsinq.f32 %v9738_v19 }
 0x1a4   : > { %v2215_v49 = vsel %vm2209_vm1, %v2212_v0, %v2214_v45  ;;  %v2075_v37 = vand.u32 2139095040, %v9789_v58  ;;  %v9886_v2 = vmul.f32 %v8560_v3, %v795_v5  ;;  %8235 = vcosq.f32 %v1744_v63 }
 0x1a5   : > { %v9890_v17 = vsel %vm9844_vm14, 0, %v2055_v61  ;;  %v11703_v6 = vand.u32 2147483647, %v9567_v35  ;;  %v1932_v12 = vclz %v7438_v50  ;;  %v2387_v19 = vand.u32 2139095040, %v9840_v59 }
 0x1a6   : > { %11702 = vst [vmem:[#allocation21_spill] sm:$0xff] %v9890_v17  ;;  %v2056_v43 = vsel %vm9844_vm14, %v9479_v32, %v2053_v31  ;;  %v1950_v3 = vsub.s32 4, %v9835_v54  ;;  %v2234_v18 = vadd.s32 1, %v9873_v51  ;;  %v2076_v4 = vshrl.u32 %v2075_v37, 23 }
 0x1a7   : > { %vm9894_vm15 = vcmp.le.f32.partialorder %v11703_v6, 0.7853982  ;;  %v7439_v61 = vadd.s32 4294967294, %v1932_v12  ;;  %v2231_v33 = vmul.u32 %v2224_v25, %v2215_v49  ;;  %vm2233_vm3 = vc.u32 %v9880_v8, %v9872_v10 }
 0x1a8   : > { %v2079_v22 = vand.u32 8388607, %v11628_v38  ;;  %v2235_v0 = vsel %vm2233_vm3, %v2234_v18, %v9873_v51  ;;  %v7445_v45 = vadd.s32 4294967169, %v2076_v4  ;;  %v11627_v62 = vand.u32 2147483647, %v9840_v59 }
 0x1a9   : > { %v2388_v5 = vshrl.u32 %v2387_v19, 23  ;;  %8237 = vsinq.f32 %v1744_v63  ;;  %v1920_v20 = vadd.s32 %v9798_v52, %v9793_v57  ;;  %vm7440_vm8 = vcmp.lt.s32.totalorder %v7439_v61, 0 }
 0x1aa   : > { %v2236_v28 = vadd.s32 %v2235_v0, %v2231_v33  ;;  %8239 = vcosq.f32 %v2056_v43  ;;  %v1935_v31 = vsel %vm7440_vm8, 0, %v7439_v61  ;;  %v1951_v25 = vsel %vm1866_vm7, %v1950_v3, %v9835_v54 }
 0x1ab   : > { %v2082_v50 = vadd.s32 1, %v7445_v45  ;;  %v1936_v27 = vsub.s32 32, %v1935_v31  ;;  %v1940_v49 = vsub.s32 4294967266, %v1935_v31  ;;  %v2080_v37 = vor.u32 8388608, %v2079_v22 }
 0x1ac   : > { %v2237_v51 = vadd.s32 536870912, %v2236_v28  ;;  %v1937_v6 = vshll.u32 %v9857_v21, %v1935_v31  ;;  %v7457_v63 = vadd.s32 4294967169, %v2388_v5  ;;  %v9917_v57 = vand.u32 8388607, %v11627_v62 }
 0x1ad   : > { %vm2083_vm9 = vcmp.gt.s32.totalorder %v2082_v50, 0  ;;  %v1938_v52 = vshrl.u32 %v1920_v20, %v1936_v27  ;;  %v1941_v12 = vadd.s32 127, %v1940_v49  ;;  %8241 = vsinq.f32 %v2056_v43 }
 0x1ae   : > { %v9919_v19 = vshrl.u32 %v2237_v51, 30  ;;  %v2084_v18 = vsel %vm2083_vm9, %v2082_v50, 0  ;;  %v9923_v54 = vsel %vm9894_vm15, 0, %v1951_v25  ;;  %v9926_v3 = vadd.s32 %v9872_v10, %v9880_v8 }
 0x1af   : > { %11706 = vst [vmem:[#allocation22_spill] sm:$0xff] %v9923_v54  ;;  %v2086_v21 = vand.u32 31, %v2084_v18  ;;  %v1939_v4 = vor.u32 %v1938_v52, %v1937_v6  ;;  %v1942_v61 = vshll.u32 %v1941_v12, 23  ;;  %v9929_v22 = vshll.u32 %v2080_v37, 8 }
 0x1b0   : > { %v2239_v33 = vshll.u32 %v9919_v19, 30  ;;  %v9931_v0 = vshrl.u32 %v2084_v18, 5  ;;  %v2394_v43 = vadd.s32 1, %v7457_v63  ;;  %v9934_v20 = vpop.eup %8233  ;;  %vm2178_vm10 = vcmp.lt.s32.totalorder %v9727_v24, 0 }
 0x1b1   : > { %v2087_v45 = vsub.s32 32, %v2086_v21  ;;  %v1943_v31 = vor.u32 4788187, %v1942_v61  ;;  %v2089_v10 = vshll.u32 %v11672_v46, %v2086_v21  ;;  %v2092_v8 = vshll.u32 %v11673_v11, %v2086_v21  ;;  %v9940_v50 = vpop.eup %8235 }
 0x1b2   : > { %v9936_v25 = vsub.s32 %v2236_v28, %v2239_v33  ;;  %v1946_v27 = vcvt.s32.f32 %v1939_v4  ;;  %v2095_v37 = vshll.u32 %v11674_v55, %v2086_v21  ;;  %v2098_v52 = vshll.u32 %v11675_v26, %v2086_v21 }
 0x1b3   : > { %v2090_v49 = vshrl.u32 %v11673_v11, %v2087_v45  ;;  %v2093_v51 = vshrl.u32 %v11674_v55, %v2087_v45  ;;  %v1944_v6 = vand.u32 2147483647, %v1943_v31  ;;  %v2096_v28 = vshrl.u32 %v11675_v26, %v2087_v45 }
 0x1b4   : > { %v2242_v63 = vsub.s32 0, %v9936_v25  ;;  %v2099_v61 = vshrl.u32 %v11676_v23, %v2087_v45  ;;  %v2101_v4 = vshll.u32 %v11676_v23, %v2086_v21  ;;  %v2102_v5 = vshrl.u32 %v11664_v40, %v2087_v45 }
 0x1b5   : > { %v2091_v12 = vor.u32 %v2090_v49, %v2089_v10  ;;  %v2094_v18 = vor.u32 %v2093_v51, %v2092_v8  ;;  %v1947_v33 = vmul.f32 %v1946_v27, %v1944_v6  ;;  %v2097_v38 = vor.u32 %v2096_v28, %v2095_v37 }
 0x1b6   : > { %v7450_v62 = vmin.u32 %v2242_v63, %v9936_v25  ;;  %v9953_v32 = vpop.eup %8237  ;;  %v2262_v31 = vsub.s32 4, %v9919_v19  ;;  %v2088_v17 = vshrl.u32 %v11672_v46, %v2087_v45  ;;  %v2100_v54 = vor.u32 %v2099_v61, %v2098_v52 }
 0x1b7   : > { %vm2104_vm5 = vcmp.lt.s32.totalorder %v9931_v0, 1  ;;  %v9958_v10 = vpop.eup %8239  ;;  %v1948_v8 = vxor.u32 2147483648, %v1947_v33  ;;  %v11708_v21 = vand.u32 2147483647, %v9727_v24  ;;  %v2103_v51 = vor.u32 %v2102_v5, %v2101_v4 }
 0x1b8   : > { %11707 = vst [vmem:[#allocation23_spill] sm:$0xff] %v9958_v10  ;;  %v2244_v49 = vclz %v7450_v62  ;;  %vm2107_vm11 = vcmp.lt.s32.totalorder %v9931_v0, 4  ;;  %vm2106_vm14 = vcmp.lt.s32.totalorder %v9931_v0, 3  ;;  %v2112_v37 = vsel %vm2104_vm5, %v2091_v12, %v2094_v18 }
 0x1b9   : > { %vm9962_vm12 = vcmp.le.f32.partialorder %v11708_v21, 0.7853982  ;;  %v2109_v45 = vsel %vm2107_vm11, %v2097_v38, 2102212464  ;;  %v2113_v6 = vsel %vm2107_vm11, %v2100_v54, 920167782  ;;  %v1949_v63 = vsel %vm1866_vm7, %v1948_v8, %v1947_v33 }
 0x1ba   : > { %v7451_v28 = vadd.s32 4294967294, %v2244_v49  ;;  %v2114_v62 = vsel %vm2106_vm14, %v2097_v38, %v2113_v6  ;;  %vm2395_vm13 = vcmp.gt.s32.totalorder %v2394_v43, 0  ;;  %vm2105_vm0 = vcmp.lt.s32.totalorder %v9931_v0, 2  ;;  %v9985_v4 = vpop.eup %8241 }
 0x1bb   : > { %v2108_v5 = vsel %vm2104_vm5, %v2088_v17, %v2091_v12  ;;  %v2110_v52 = vsel %vm2106_vm14, %v2094_v18, %v2109_v45  ;;  %v2116_v61 = vsel %vm2104_vm5, %v2094_v18, %v2097_v38  ;;  %11711 = vst [vmem:[#allocation24_spill] sm:$0xff] %v9985_v4  ;;  %v2263_v33 = vsel %vm2178_vm10, %v2262_v31, %v9919_v19 }
 0x1bc   : > { %vm7452_vm1 = vcmp.lt.s32.totalorder %v7451_v28, 0  ;;  %v2115_v8 = vsel %vm2105_vm0, %v2112_v37, %v2114_v62  ;;  %v2117_v21 = vsel %vm2107_vm11, %v2103_v51, 1326507024  ;;  %v1952_v17 = vsel %vm9894_vm15, %v9567_v35, %v1949_v63 }
 0x1bd   : > { %v2247_v12 = vsel %vm7452_vm1, 0, %v7451_v28  ;;  %v2118_v38 = vsel %vm2106_vm14, %v2100_v54, %v2117_v21  ;;  %v2396_v18 = vsel %vm2395_vm13, %v2394_v43, 0  ;;  %v2111_v19 = vsel %vm2105_vm0, %v2108_v5, %v2110_v52 }
 0x1be   : > { %v2248_v49 = vsub.s32 32, %v2247_v12  ;;  %v2252_v45 = vsub.s32 4294967266, %v2247_v12  ;;  %v2119_v31 = vsel %vm2105_vm0, %v2116_v61, %v2118_v38  ;;  %v2249_v54 = vshll.u32 %v9936_v25, %v2247_v12 }
 0x1bf   : > { %v10004_v37 = vmul.u32.u64.low %v9929_v22, %v2119_v31  ;;  %v10005_v51 = vmul.u32.u64.high %v9929_v22, %v2119_v31, %v10004_v37  ;;  %v10008_v44 = vmul.u32.u64.low %v9929_v22, %v2115_v8  ;;  %v10009_v6 = vmul.u32.u64.high %v9929_v22, %v2115_v8, %v10008_v44 }
 0x1c0   : > { %v2250_v43 = vshrl.u32 %v9926_v3, %v2248_v49  ;;  %v2253_v63 = vadd.s32 127, %v2252_v45  ;;  %v2398_v28 = vand.u32 31, %v2396_v18  ;;  %v10016_v62 = vsel %vm9962_vm12, 0, %v2263_v33 }
 0x1c1   : > { %11712 = vst [vmem:[#allocation25_spill] sm:$0xff] %v10016_v62  ;;  %v11713_v0 = vor.u32 8388608, %v9917_v57  ;;  %v2283_v61 = vand.u32 2139095040, %v9886_v2  ;;  %8243 = vcosq.f32 %v1952_v17  ;;  %v2127_v3 = vmul.u32 %v9929_v22, %v2111_v19 }
 0x1c2   : > { %v2251_v8 = vor.u32 %v2250_v43, %v2249_v54  ;;  %v2254_v21 = vshll.u32 %v2253_v63, 23  ;;  %v2399_v25 = vsub.s32 32, %v2398_v28  ;;  %vm2129_vm2 = vc.u32 %v10005_v51, %v10008_v44 }
 0x1c3   : > { %v10020_v5 = vshll.u32 %v11713_v0, 8  ;;  %v2130_v33 = vadd.s32 1, %v10009_v6  ;;  %v2397_v12 = vshrl.u32 %v2396_v18, 5  ;;  %v2401_v57 = vshll.u32 %v11672_v46, %v2398_v28 }
 0x1c4   : > { %v2255_v38 = vor.u32 4788187, %v2254_v21  ;;  %v2402_v49 = vshrl.u32 %v11673_v11, %v2399_v25  ;;  %v2404_v45 = vshll.u32 %v11673_v11, %v2398_v28  ;;  %v2405_v37 = vshrl.u32 %v11674_v55, %v2399_v25 }
 0x1c5   : > { %v2131_v31 = vsel %vm2129_vm2, %v2130_v33, %v10009_v6  ;;  %v2407_v54 = vshll.u32 %v11674_v55, %v2398_v28  ;;  %v2408_v22 = vshrl.u32 %v11675_v26, %v2399_v25  ;;  %v2258_v43 = vcvt.s32.f32 %v2251_v8 }
 0x1c6   : > { %v2256_v19 = vand.u32 2147483647, %v2255_v38  ;;  %v2132_v63 = vadd.s32 %v2131_v31, %v2127_v3  ;;  %v2403_v0 = vor.u32 %v2402_v49, %v2401_v57  ;;  %v2406_v18 = vor.u32 %v2405_v37, %v2404_v45 }
 0x1c7   : > { %v2409_v21 = vor.u32 %v2408_v22, %v2407_v54  ;;  %v2410_v52 = vshll.u32 %v11675_v26, %v2398_v28  ;;  %v2411_v62 = vshrl.u32 %v11676_v23, %v2399_v25  ;;  %v2413_v6 = vshll.u32 %v11676_v23, %v2398_v28 }
 0x1c8   : > { %v2259_v35 = vmul.f32 %v2258_v43, %v2256_v19  ;;  %v2133_v10 = vadd.s32 536870912, %v2132_v63  ;;  %v2414_v33 = vshrl.u32 %v11664_v40, %v2399_v25  ;;  %8245 = vsinq.f32 %v1952_v17 }
 0x1c9   : > { %v2412_v4 = vor.u32 %v2411_v62, %v2410_v52  ;;  %vm2416_vm7 = vcmp.lt.s32.totalorder %v2397_v12, 1  ;;  %v2284_v48 = vshrl.u32 %v2283_v61, 23  ;;  %vm2074_vm15 = vcmp.lt.s32.totalorder %v9789_v58, 0 }
 0x1ca   : > { %v2260_v38 = vxor.u32 2147483648, %v2259_v35  ;;  %v2134_v8 = vshrl.u32 %v2133_v10, 30  ;;  %v2415_v3 = vor.u32 %v2414_v33, %v2413_v6  ;;  %vm2419_vm3 = vcmp.lt.s32.totalorder %v2397_v12, 4 }
 0x1cb   : > { %v2400_v57 = vshrl.u32 %v11672_v46, %v2399_v25  ;;  %v2424_v49 = vsel %vm2416_vm7, %v2403_v0, %v2406_v18  ;;  %v2425_v45 = vsel %vm2419_vm3, %v2412_v4, 920167782  ;;  %v11714_v31 = vand.u32 2147483647, %v9886_v2 }
 0x1cc   : > { %v2261_v17 = vsel %vm2178_vm10, %v2260_v38, %v2259_v35  ;;  %v2135_v62 = vshll.u32 %v2134_v8, 30  ;;  %vm2418_vm8 = vcmp.lt.s32.totalorder %v2397_v12, 3  ;;  %v2421_v52 = vsel %vm2419_vm3, %v2409_v21, 2102212464 }
 0x1cd   : > { %v2287_v28 = vand.u32 8388607, %v11714_v31  ;;  %vm2417_vm9 = vcmp.lt.s32.totalorder %v2397_v12, 2  ;;  %v2426_v61 = vsel %vm2418_vm8, %v2409_v21, %v2425_v45  ;;  %v2428_v10 = vsel %vm2416_vm7, %v2406_v18, %v2409_v21 }
 0x1ce   : > { %v2429_v37 = vsel %vm2419_vm3, %v2415_v3, 1326507024  ;;  %v10047_v54 = vsub.s32 %v2132_v63, %v2135_v62  ;;  %v2420_v25 = vsel %vm2416_vm7, %v2400_v57, %v2403_v0  ;;  %v2427_v22 = vsel %vm2417_vm9, %v2424_v49, %v2426_v61  ;;  %v10052_v43 = vpop.eup %8243 }
 0x1cf   : > { %v910_v19 = vsub.s32 4, %v9033_v15  ;;  %v2264_v35 = vsel %vm9962_vm12, %v9727_v24, %v2261_v17  ;;  %v2158_v6 = vsub.s32 4, %v2134_v8  ;;  %v2422_v33 = vsel %vm2418_vm8, %v2406_v18, %v2421_v52 }
 0x1d0   : > { %v2430_v38 = vsel %vm2418_vm8, %v2412_v4, %v2429_v37  ;;  %v2138_v21 = vsub.s32 0, %v10047_v54  ;;  %v10060_v3 = vmul.u32.u64.low %v10020_v5, %v2427_v22  ;;  %v10061_v0 = vmul.u32.u64.high %v10020_v5, %v2427_v22, %v10060_v3 }
 0x1d1   : > { %v2431_v63 = vsel %vm2417_vm9, %v2428_v10, %v2430_v38  ;;  %v7453_v45 = vadd.s32 4294967169, %v2284_v48  ;;  %v2288_v31 = vor.u32 8388608, %v2287_v28  ;;  %v2128_v27 = vadd.s32 %v10008_v44, %v10005_v51 }
 0x1d2   : > { %v10064_v57 = vmul.u32.u64.low %v10020_v5, %v2431_v63  ;;  %v10065_v49 = vmul.u32.u64.high %v10020_v5, %v2431_v63, %v10064_v57  ;;  %v7446_v18 = vmin.u32 %v2138_v21, %v10047_v54  ;;  %v2423_v4 = vsel %vm2417_vm9, %v2420_v25, %v2422_v33 }
 0x1d3   : > { %v11715_v17 = vand.u32 2147483647, %v8916_v29  ;;  %8247 = vcosq.f32 %v2264_v35  ;;  %v10079_v52 = vsel %vm2074_vm15, %v2158_v6, %v2134_v8  ;;  %v2290_v48 = vadd.s32 1, %v7453_v45 }
 0x1d4   : > { %8249 = vsinq.f32 %v2264_v35  ;;  %v2140_v44 = vclz %v7446_v18  ;;  %v2442_v12 = vadd.s32 1, %v10061_v0  ;;  %v911_v28 = vsel %vm826_vm4, %v910_v19, %v9033_v15 }
 0x1d5   : > { %vm10073_vm10 = vcmp.le.f32.partialorder %v11715_v17, 0.7853982  ;;  %v2439_v61 = vmul.u32 %v10020_v5, %v2423_v4  ;;  %vm2441_vm5 = vc.u32 %v10065_v49, %v10060_v3  ;;  %vm2291_vm12 = vcmp.gt.s32.totalorder %v2290_v48, 0  ;;  %v10093_v10 = vpop.eup %8245 }
 0x1d6   : > { %v912_v51 = vsel %vm10073_vm10, %v8916_v29, %v9386_v42  ;;  %v10091_v8 = vshll.u32 %v2288_v31, 8  ;;  %v7447_v37 = vadd.s32 4294967294, %v2140_v44  ;;  %v2443_v42 = vsel %vm2441_vm5, %v2442_v12, %v10061_v0 }
 0x1d7   : > { %v2292_v25 = vsel %vm2291_vm12, %v2290_v48, 0  ;;  %8251 = vcosq.f32 %v912_v51  ;;  %v2444_v22 = vadd.s32 %v2443_v42, %v2439_v61  ;;  %v10098_v6 = vsel %vm10073_vm10, 0, %v911_v28 }
 0x1d8   : > { %v2294_v35 = vand.u32 31, %v2292_v25  ;;  %8253 = vsinq.f32 %v912_v51  ;;  %vm7448_vm4 = vcmp.lt.s32.totalorder %v7447_v37, 0  ;;  %v10101_v15 = vadd.s32 %v10060_v3, %v10065_v49 }
 0x1d9   : > { %v11718_v5 = vand.u32 2147483647, %v8932_v53  ;;  %v1014_v33 = vsub.s32 4, %v9139_v47  ;;  %v2143_v38 = vsel %vm7448_vm4, 0, %v7447_v37  ;;  %v2445_v21 = vadd.s32 536870912, %v2444_v22 }
 0x1da   : > { %v2295_v63 = vsub.s32 32, %v2294_v35  ;;  %v2144_v57 = vsub.s32 32, %v2143_v38  ;;  %v2148_v3 = vsub.s32 4294967266, %v2143_v38  ;;  %v10116_v49 = vshrl.u32 %v2292_v25, 5 }
 0x1db   : > { %vm10105_vm11 = vcmp.le.f32.partialorder %v11718_v5, 0.7853982  ;;  %v2297_v45 = vshll.u32 %v11672_v46, %v2294_v35  ;;  %v2145_v31 = vshll.u32 %v10047_v54, %v2143_v38  ;;  %v2446_v18 = vshrl.u32 %v2445_v21, 30 }
 0x1dc   : > { %v10114_v0 = vsel %vm10105_vm11, %v8932_v53, %v9397_v60  ;;  %v2298_v4 = vshrl.u32 %v11673_v11, %v2295_v63  ;;  %v2301_v17 = vshrl.u32 %v11674_v55, %v2295_v63  ;;  %v2146_v62 = vshrl.u32 %v2128_v27, %v2144_v57 }
 0x1dd   : > { %v2149_v48 = vadd.s32 127, %v2148_v3  ;;  %v2300_v51 = vshll.u32 %v11673_v11, %v2294_v35  ;;  %v2304_v60 = vshrl.u32 %v11675_v26, %v2295_v63  ;;  %v2447_v44 = vshll.u32 %v2446_v18, 30 }
 0x1de   : > { %v2296_v12 = vshrl.u32 %v11672_v46, %v2295_v63  ;;  %v2303_v28 = vshll.u32 %v11674_v55, %v2294_v35  ;;  %8255 = vcosq.f32 %v10114_v0  ;;  %v2147_v61 = vor.u32 %v2146_v62, %v2145_v31 }
 0x1df   : > { %v2150_v54 = vshll.u32 %v2149_v48, 23  ;;  %v2299_v37 = vor.u32 %v2298_v4, %v2297_v45  ;;  %v2302_v42 = vor.u32 %v2301_v17, %v2300_v51  ;;  %v10127_v25 = vsub.s32 %v2444_v22, %v2447_v44 }
 0x1e0   : > { %v2305_v5 = vor.u32 %v2304_v60, %v2303_v28  ;;  %v2306_v27 = vshll.u32 %v11675_v26, %v2294_v35  ;;  %v2307_v11 = vshrl.u32 %v11676_v23, %v2295_v63  ;;  %v10131_v38 = vpop.eup %8247  ;;  %vm2386_vm14 = vcmp.lt.s32.totalorder %v9840_v59, 0 }
 0x1e1   : > { %v2151_v21 = vor.u32 4788187, %v2150_v54  ;;  %v2470_v46 = vsub.s32 4, %v2446_v18  ;;  %v2309_v55 = vshll.u32 %v11676_v23, %v2294_v35  ;;  %v2310_v57 = vshrl.u32 %v11664_v40, %v2295_v63  ;;  %v10136_v3 = vpop.eup %8249 }
 0x1e2   : > { %v2154_v45 = vcvt.s32.f32 %v2147_v61  ;;  %v2450_v22 = vsub.s32 0, %v10127_v25  ;;  %v2308_v31 = vor.u32 %v2307_v11, %v2306_v27  ;;  %vm2312_vm13 = vcmp.lt.s32.totalorder %v10116_v49, 1 }
 0x1e3   : > { %v11721_v26 = vand.u32 2147483647, %v9789_v58  ;;  %v2152_v17 = vand.u32 2147483647, %v2151_v21  ;;  %v2311_v62 = vor.u32 %v2310_v57, %v2309_v55  ;;  %vm2313_vm1 = vcmp.lt.s32.totalorder %v10116_v49, 2 }
 0x1e4   : > { %vm2315_vm2 = vcmp.lt.s32.totalorder %v10116_v49, 4  ;;  %v10148_v40 = vpop.eup %8251  ;;  %v7458_v23 = vmin.u32 %v2450_v22, %v10127_v25  ;;  %vm2314_vm7 = vcmp.lt.s32.totalorder %v10116_v49, 3  ;;  %v2320_v63 = vsel %vm2312_vm13, %v2299_v37, %v2302_v42 }
 0x1e5   : > { %vm10142_vm0 = vcmp.le.f32.partialorder %v11721_v26, 0.7853982  ;;  %v2317_v35 = vsel %vm2315_vm2, %v2305_v5, 2102212464  ;;  %v10152_v48 = vpop.eup %8253  ;;  %v2155_v51 = vmul.f32 %v2154_v45, %v2152_v17  ;;  %v2316_v60 = vsel %vm2312_vm13, %v2296_v12, %v2299_v37 }
 0x1e6   : > { %v2321_v44 = vsel %vm2315_vm2, %v2308_v31, 920167782  ;;  %v2324_v28 = vsel %vm2312_vm13, %v2302_v42, %v2305_v5  ;;  %v2452_v61 = vclz %v7458_v23  ;;  %v2318_v54 = vsel %vm2314_vm7, %v2302_v42, %v2317_v35 }
 0x1e7   : > { %v2322_v27 = vsel %vm2314_vm7, %v2305_v5, %v2321_v44  ;;  %v2325_v11 = vsel %vm2315_vm2, %v2311_v62, 1326507024  ;;  %v2156_v21 = vxor.u32 2147483648, %v2155_v51  ;;  %v1015_v22 = vsel %vm930_vm6, %v1014_v33, %v9139_v47 }
 0x1e8   : > { %v2323_v55 = vsel %vm2313_vm1, %v2320_v63, %v2322_v27  ;;  %v2326_v57 = vsel %vm2314_vm7, %v2308_v31, %v2325_v11  ;;  %v11724_v45 = vand.u32 2147483647, %v9840_v59  ;;  %v7459_v37 = vadd.s32 4294967294, %v2452_v61 }
 0x1e9   : > { %v2327_v42 = vsel %vm2313_vm1, %v2324_v28, %v2326_v57  ;;  %v10170_v5 = vmul.u32.u64.low %v10091_v8, %v2323_v55  ;;  %v10171_v26 = vmul.u32.u64.high %v10091_v8, %v2323_v55, %v10170_v5  ;;  %v2157_v31 = vsel %vm2074_vm15, %v2156_v21, %v2155_v51 }
 0x1ea   : > { %vm10163_vm3 = vcmp.le.f32.partialorder %v11724_v45, 0.7853982  ;;  %v2319_v47 = vsel %vm2313_vm1, %v2316_v60, %v2318_v54  ;;  %v10178_v33 = vmul.u32.u64.low %v10091_v8, %v2327_v42  ;;  %v10179_v17 = vmul.u32.u64.high %v10091_v8, %v2327_v42, %v10178_v33 }
 0x1eb   : > { %vm7460_vm6 = vcmp.lt.s32.totalorder %v7459_v37, 0  ;;  %v2471_v62 = vsel %vm2386_vm14, %v2470_v46, %v2446_v18  ;;  %v1017_v23 = vsel %vm10105_vm11, 0, %v1015_v22  ;;  %8257 = vsinq.f32 %v10114_v0  ;;  %v10186_v35 = vpop.eup %8255 }
 0x1ec   : > { %v2455_v63 = vsel %vm7460_vm6, 0, %v7459_v37  ;;  %v921_v51 = vxor.u32 2147483648, %v10152_v48  ;;  %v924_v49 = vxor.u32 2147483648, %v10148_v40  ;;  %v2581_v60 = vand.u32 3, %v10098_v6 }
 0x1ed   : > { %v2160_v44 = vsel %vm10142_vm0, %v9789_v58, %v2157_v31  ;;  %v2456_v28 = vsub.s32 32, %v2455_v63  ;;  %v2460_v18 = vsub.s32 4294967266, %v2455_v63  ;;  %v2335_v19 = vmul.u32 %v10091_v8, %v2319_v47 }
 0x1ee   : > { %v2457_v46 = vshll.u32 %v10127_v25, %v2455_v63  ;;  %vm2337_vm15 = vc.u32 %v10179_v17, %v10170_v5  ;;  %v2338_v0 = vadd.s32 1, %v10171_v26  ;;  %vm2582_vm8 = vcmp.lt.s32.totalorder %v2581_v60, 2 }
 0x1ef   : > { %v2458_v61 = vshrl.u32 %v10101_v15, %v2456_v28  ;;  %v2461_v54 = vadd.s32 127, %v2460_v18  ;;  %vm2583_vm9 = vcmp.eq.s32.totalorder %v2581_v60, 0  ;;  %vm2586_vm10 = vcmp.eq.s32.totalorder %v2581_v60, 2 }
 0x1f0   : > { %v2339_v27 = vsel %vm2337_vm15, %v2338_v0, %v10171_v26  ;;  %v2585_v11 = vsel %vm2583_vm9, %v10148_v40, %v921_v51  ;;  %v2588_v21 = vsel %vm2586_vm10, %v924_v49, %v10152_v48  ;;  %v2684_v55 = vand.u32 3, %v1017_v23 }
 0x1f1   : > { %v2459_v8 = vor.u32 %v2458_v61, %v2457_v46  ;;  %v2462_v57 = vshll.u32 %v2461_v54, 23  ;;  %v2340_v25 = vadd.s32 %v2339_v27, %v2335_v19  ;;  %v2589_v22 = vsel %vm2582_vm8, %v2585_v11, %v2588_v21 }
 0x1f2   : > { %v10205_v45 = vsel %vm10142_vm0, 0, %v10079_v52  ;;  %8259 = vcosq.f32 %v2160_v44  ;;  %v10209_v15 = vsel %vm10163_vm3, 0, %v2471_v62  ;;  %vm916_vm5 = vweird.f32 %v8916_v29 }
 0x1f3   : > { %8261 = vsinq.f32 %v2160_v44  ;;  %v2463_v37 = vor.u32 4788187, %v2462_v57  ;;  %v2341_v42 = vadd.s32 536870912, %v2340_v25  ;;  %v1028_v26 = vxor.u32 2147483648, %v10186_v35 }
 0x1f4   : > { %vm2282_vm12 = vcmp.lt.s32.totalorder %v9886_v2, 0  ;;  %v10215_v31 = vadd.s32 %v10170_v5, %v10179_v17  ;;  %vm1020_vm4 = vweird.f32 %v8932_v53  ;;  %v2590_v52 = vsel %vm916_vm5, nan, %v2589_v22 }
 0x1f5   : > { %v917_v4 = vadd.s32 3, %v10098_v6  ;;  %v1021_v47 = vadd.s32 3, %v1017_v23  ;;  %v2464_v33 = vand.u32 2147483647, %v2463_v37  ;;  %v2466_v62 = vcvt.s32.f32 %v2459_v8 }
 0x1f6   : > { %v2342_v63 = vshrl.u32 %v2341_v42, 30  ;;  %vm2685_vm11 = vcmp.lt.s32.totalorder %v2684_v55, 2  ;;  %vm2686_vm13 = vcmp.eq.s32.totalorder %v2684_v55, 0  ;;  %vm2689_vm0 = vcmp.eq.s32.totalorder %v2684_v55, 2 }
 0x1f7   : > { %vm4162_vm1 = vcmask 130048   ;;  %v918_v60 = vand.u32 3, %v917_v4  ;;  %v2467_v44 = vmul.f32 %v2466_v62, %v2464_v33  ;;  %v1129_v5 = vxor.u32 2147483648, %v9428_v14 }
 0x1f8   : > { %v2343_v28 = vshll.u32 %v2342_v63, 30  ;;  %v1132_v17 = vxor.u32 2147483648, %v9274_v30  ;;  %v8258_v18 = vpop.eup %8257  ;;  %v2366_v19 = vsub.s32 4, %v2342_v63  ;;  %v1022_v46 = vand.u32 3, %v1021_v47 }
 0x1f9   : > { %vm919_vm2 = vcmp.lt.s32.totalorder %v918_v60, 2  ;;  %v1233_v6 = vxor.u32 2147483648, %v9444_v9  ;;  %v1025_v0 = vxor.u32 2147483648, %v8258_v18  ;;  %vm920_vm7 = vcmp.eq.s32.totalorder %v918_v60, 0 }
 0x1fa   : > { %v10224_v23 = vsub.s32 %v2340_v25, %v2343_v28  ;;  %vm923_vm6 = vcmp.eq.s32.totalorder %v918_v60, 2  ;;  %v2468_v61 = vxor.u32 2147483648, %v2467_v44  ;;  %v2691_v54 = vsel %vm2689_vm0, %v1028_v26, %v8258_v18 }
 0x1fb   : > { %v922_v27 = vsel %vm920_vm7, %v10148_v40, %v921_v51  ;;  %v925_v11 = vsel %vm923_vm6, %v924_v49, %v10152_v48  ;;  %v2688_v8 = vsel %vm2686_vm13, %v10186_v35, %v1025_v0  ;;  %v2787_v22 = vand.u32 3, %v9238_v16 }
 0x1fc   : > { %v2346_v21 = vsub.s32 0, %v10224_v23  ;;  %v926_v57 = vsel %vm919_vm2, %v922_v27, %v925_v11  ;;  %v2692_v25 = vsel %vm2685_vm11, %v2688_v8, %v2691_v54  ;;  %vm1023_vm15 = vcmp.lt.s32.totalorder %v1022_v46, 2 }
 0x1fd   : > { %vm1024_vm8 = vcmp.eq.s32.totalorder %v1022_v46, 0  ;;  %vm1124_vm9 = vweird.f32 %v8913_v1  ;;  %v1236_v37 = vxor.u32 2147483648, %v9433_v34  ;;  %v10239_v48 = vsel %vm2282_vm12, %v2366_v19, %v2342_v63 }
 0x1fe   : > { %v7454_v40 = vmin.u32 %v2346_v21, %v10224_v23  ;;  %v2693_v51 = vsel %vm1020_vm4, nan, %v2692_v25  ;;  %v1026_v49 = vsel %vm1024_vm8, %v10186_v35, %v1025_v0  ;;  %vm1228_vm10 = vweird.f32 %v8925_v36 }
 0x1ff   : > { %v2469_v55 = vsel %vm2386_vm14, %v2468_v61, %v2467_v44  ;;  %v4146_v42 = vpack.c.bf16 %v2693_v51, %v2590_v52  ;;  %v927_v4 = vsel %vm916_vm5, nan, %v926_v57  ;;  %vm1027_vm11 = vcmp.eq.s32.totalorder %v1022_v46, 2  ;;  %v10249_v47 = vpop.eup %8259 }
 0x200   : > { %v2348_v33 = vclz %v7454_v40  ;;  %v1029_v62 = vsel %vm1027_vm11, %v1028_v26, %v8258_v18  ;;  %vm2789_vm13 = vcmp.eq.s32.totalorder %v2787_v22, 0  ;;  %vm2792_vm0 = vcmp.eq.s32.totalorder %v2787_v22, 2  ;;  %v10251_v63 = vpop.eup %8261 }
 0x201   : > { %7805 = vmatprep.mubr.msk.bf16.mxu0 %vm4162_vm1, %v4146_v42  ;;  %v1030_v35 = vsel %vm1023_vm15, %v1026_v49, %v1029_v62  ;;  %v2791_v52 = vsel %vm2789_vm13, %v9274_v30, %v1129_v5  ;;  %v2794_v29 = vsel %vm2792_vm0, %v1132_v17, %v9428_v14  ;;  %v2890_v60 = vand.u32 3, %v9390_v56 }
 0x202   : > { %v7455_v44 = vadd.s32 4294967294, %v2348_v33  ;;  %v1031_v26 = vsel %vm1020_vm4, nan, %v1030_v35  ;;  %vm2788_vm14 = vcmp.lt.s32.totalorder %v2787_v22, 2  ;;  %v1125_v28 = vadd.s32 3, %v9238_v16 }
 0x203   : > { %v10268_v18 = vsel %vm10163_vm3, %v9840_v59, %v2469_v55  ;;  %v4136_v19 = vpack.c.bf16 %v1031_v26, %v927_v4  ;;  %v2795_v46 = vsel %vm2788_vm14, %v2791_v52, %v2794_v29  ;;  %vm2892_vm5 = vcmp.eq.s32.totalorder %v2890_v60, 0  ;;  %v11727_v4 = vld [vmem:[#allocation13_spill] sm:$0xff]  ;;  %v11733_v26 = vld [vmem:[#allocation8_spill] sm:$0xff] }
 0x204   : > { %vm7456_vm2 = vcmp.lt.s32.totalorder %v7455_v44, 0  ;;  %v2894_v0 = vsel %vm2892_vm5, %v9433_v34, %v1233_v6  ;;  %vm2895_vm7 = vcmp.eq.s32.totalorder %v2890_v60, 2  ;;  %v1126_v61 = vand.u32 3, %v1125_v28 }
 0x205   : > { %v2351_v53 = vsel %vm7456_vm2, 0, %v7455_v44  ;;  %7823 = vmatprep.mubr.msk.bf16.mxu1 %vm4162_vm1, %v4136_v19  ;;  %vm2891_vm4 = vcmp.lt.s32.totalorder %v2890_v60, 2  ;;  %v2897_v16 = vsel %vm2895_vm7, %v1236_v37, %v9444_v9  ;;  %v1229_v12 = vadd.s32 3, %v9390_v56  ;;  %v11732_v60 = vld [vmem:[#allocation12_spill] sm:$0xff]  ;;  %v11734_v19 = vld [vmem:[#allocation9_spill] sm:$0xff] }
 0x206   : > { %v2352_v54 = vsub.s32 32, %v2351_v53  ;;  %v2356_v27 = vsub.s32 4294967266, %v2351_v53  ;;  %v2796_v11 = vsel %vm1124_vm9, nan, %v2795_v46  ;;  %v2898_v21 = vsel %vm2891_vm4, %v2894_v0, %v2897_v16 }
 0x207   : > { %v2353_v8 = vshll.u32 %v10224_v23, %v2351_v53  ;;  %v2899_v57 = vsel %vm1228_vm10, nan, %v2898_v21  ;;  %vm1128_vm3 = vcmp.eq.s32.totalorder %v1126_v61, 0  ;;  %vm1131_vm6 = vcmp.eq.s32.totalorder %v1126_v61, 2 }
 0x208   : > { %v2354_v22 = vshrl.u32 %v10215_v31, %v2352_v54  ;;  %v2357_v25 = vadd.s32 127, %v2356_v27  ;;  %v4147_v40 = vpack.c.bf16 %v2899_v57, %v2796_v11  ;;  %v1130_v56 = vsel %vm1128_vm3, %v9274_v30, %v1129_v5  ;;  %v11728_v30 = vld [vmem:[#allocation2_spill] sm:$0xff] }
 0x209   : > { %vm1127_vm15 = vcmp.lt.s32.totalorder %v1126_v61, 2  ;;  %v1133_v51 = vsel %vm1131_vm6, %v1132_v17, %v9428_v14  ;;  %v1230_v49 = vand.u32 3, %v1229_v12  ;;  %vm1332_vm8 = vweird.f32 %v9146_v41  ;;  %v11735_v61 = vld [vmem:[#allocation5_spill] sm:$0xff] }
 0x20a   : > { %v1337_v23 = vxor.u32 2147483648, %v9626_v39  ;;  %v2355_v55 = vor.u32 %v2354_v22, %v2353_v8  ;;  %v2358_v42 = vshll.u32 %v2357_v25, 23  ;;  %7806 = vmatmul.mubr.msk.bf16.vlgmr.msra.gmra.mxu0 %vm4162_vm1, %v4147_v40  ;;  %v1134_v31 = vsel %vm1127_vm15, %v1130_v56, %v1133_v51 }
 0x20b   : > { %v1340_v33 = vxor.u32 2147483648, %v11727_v4  ;;  %v1135_v5 = vsel %vm1124_vm9, nan, %v1134_v31  ;;  %vm1231_vm11 = vcmp.lt.s32.totalorder %v1230_v49, 2  ;;  %vm1232_vm13 = vcmp.eq.s32.totalorder %v1230_v49, 0 }
 0x20c   : > { %vm1235_vm0 = vcmp.eq.s32.totalorder %v1230_v49, 2  ;;  %vm1436_vm14 = vweird.f32 %v11728_v30  ;;  %v2359_v14 = vor.u32 4788187, %v2358_v42  ;;  %v2362_v17 = vcvt.s32.f32 %v2355_v55 }
 0x20d   : > { %v1234_v62 = vsel %vm1232_vm13, %v9433_v34, %v1233_v6  ;;  %v1237_v35 = vsel %vm1235_vm0, %v1236_v37, %v9444_v9  ;;  %v11729_v52 = vand.u32 2147483647, %v9886_v2  ;;  %v1441_v44 = vxor.u32 2147483648, %v11732_v60 }
 0x20e   : > { %v1238_v29 = vsel %vm1231_vm11, %v1234_v62, %v1237_v35  ;;  %v1444_v28 = vxor.u32 2147483648, %v11733_v26  ;;  %v2993_v46 = vand.u32 3, %v11734_v19  ;;  %v2360_v0 = vand.u32 2147483647, %v2359_v14  ;;  %v11738_v14 = vld [vmem:[#allocation3_spill] sm:$0xff]  ;;  %v11740_v62 = vld [vmem:[#allocation17_spill] sm:$0xff] }
 0x20f   : > { %vm10305_vm5 = vcmp.le.f32.partialorder %v11729_v52, 0.7853982  ;;  %v1239_v6 = vsel %vm1228_vm10, nan, %v1238_v29  ;;  %v3096_v34 = vand.u32 3, %v11735_v61  ;;  %v1333_v9 = vadd.s32 3, %v11734_v19  ;;  %v11741_v52 = vld [vmem:[#allocation14_spill] sm:$0xff] }
 0x210   : > { %v4137_v37 = vpack.c.bf16 %v1239_v6, %v1135_v5  ;;  %vm2994_vm9 = vcmp.lt.s32.totalorder %v2993_v46, 2  ;;  %vm2995_vm2 = vcmp.eq.s32.totalorder %v2993_v46, 0  ;;  %vm2998_vm7 = vcmp.eq.s32.totalorder %v2993_v46, 2  ;;  %v11742_v19 = vld [vmem:[#allocation10_spill] sm:$0xff] }
 0x211   : > { %v2363_v53 = vmul.f32 %v2362_v17, %v2360_v0  ;;  %v2997_v16 = vsel %vm2995_vm2, %v11727_v4, %v1337_v23  ;;  %v3000_v12 = vsel %vm2998_vm7, %v1340_v33, %v9626_v39  ;;  %vm3097_vm4 = vcmp.lt.s32.totalorder %v3096_v34, 2 }
 0x212   : > { %7824 = vmatmul.mubr.msk.bf16.vlgmr.msra.gmra.mxu1 %vm4162_vm1, %v4137_v37  ;;  %v3001_v54 = vsel %vm2994_vm9, %v2997_v16, %v3000_v12  ;;  %vm3098_vm3 = vcmp.eq.s32.totalorder %v3096_v34, 0  ;;  %vm3101_vm6 = vcmp.eq.s32.totalorder %v3096_v34, 2  ;;  %v1334_v36 = vand.u32 3, %v1333_v9 }
 0x213   : > { %v2364_v27 = vxor.u32 2147483648, %v2363_v53  ;;  %v3002_v11 = vsel %vm1332_vm8, nan, %v3001_v54  ;;  %v3100_v21 = vsel %vm3098_vm3, %v11733_v26, %v1441_v44  ;;  %v3103_v8 = vsel %vm3101_vm6, %v1444_v28, %v11732_v60 }
 0x214   : > { %v3104_v57 = vsel %vm3097_vm4, %v3100_v21, %v3103_v8  ;;  %vm1335_vm10 = vcmp.lt.s32.totalorder %v1334_v36, 2  ;;  %vm1336_vm15 = vcmp.eq.s32.totalorder %v1334_v36, 0  ;;  %vm1339_vm11 = vcmp.eq.s32.totalorder %v1334_v36, 2 }
 0x215   : > { %v2365_v22 = vsel %vm2282_vm12, %v2364_v27, %v2363_v53  ;;  %v3105_v25 = vsel %vm1436_vm14, nan, %v3104_v57  ;;  %v1338_v40 = vsel %vm1336_vm15, %v11727_v4, %v1337_v23  ;;  %v1341_v56 = vsel %vm1339_vm11, %v1340_v33, %v9626_v39  ;;  %v11736_v23 = vld [vmem:[#allocation20_spill] sm:$0xff]  ;;  %v11737_v33 = vld [vmem:[#allocation19_spill] sm:$0xff] }
 0x216   : > { %8263 = vcosq.f32 %v10268_v18  ;;  %v4148_v51 = vpack.c.bf16 %v3105_v25, %v3002_v11  ;;  %v1342_v49 = vsel %vm1335_vm10, %v1338_v40, %v1341_v56  ;;  %v1437_v55 = vadd.s32 3, %v11735_v61  ;;  %v11743_v56 = vld [vmem:[#allocation16_spill] sm:$0xff] }
 0x217   : > { %8265 = vsinq.f32 %v10268_v18  ;;  %v10335_v42 = vsel %vm10305_vm5, %v9886_v2, %v2365_v22  ;;  %v1343_v31 = vsel %vm1332_vm8, nan, %v1342_v49  ;;  %vm1540_vm12 = vweird.f32 %v9248_v7  ;;  %v11739_v18 = vld [vmem:[#allocation18_spill] sm:$0xff] }
 0x218   : > { %7809 = vmatprep.mubr.msk.bf16.mxu0 %vm4162_vm1, %v4148_v51  ;;  %v1438_v39 = vand.u32 3, %v1437_v55  ;;  %v1545_v4 = vxor.u32 2147483648, %v11736_v23  ;;  %v1548_v5 = vxor.u32 2147483648, %v11737_v33  ;;  %vm1644_vm13 = vweird.f32 %v11738_v14 }
 0x219   : > { %v1649_v17 = vxor.u32 2147483648, %v11739_v18  ;;  %v1652_v35 = vxor.u32 2147483648, %v11740_v62  ;;  %v3199_v29 = vand.u32 3, %v11741_v52  ;;  %v3302_v41 = vand.u32 3, %v11742_v19 }
 0x21a   : > { %vm1439_vm8 = vcmp.lt.s32.totalorder %v1438_v39, 2  ;;  %vm1440_vm0 = vcmp.eq.s32.totalorder %v1438_v39, 0  ;;  %vm1443_vm9 = vcmp.eq.s32.totalorder %v1438_v39, 2  ;;  %v1541_v46 = vadd.s32 3, %v11741_v52 }
 0x21b   : > { %v1442_v0 = vsel %vm1440_vm0, %v11733_v26, %v1441_v44  ;;  %v1445_v6 = vsel %vm1443_vm9, %v1444_v28, %v11732_v60  ;;  %vm3200_vm2 = vcmp.lt.s32.totalorder %v3199_v29, 2  ;;  %vm3201_vm7 = vcmp.eq.s32.totalorder %v3199_v29, 0 }
 0x21c   : > { %v1446_v61 = vsel %vm1439_vm8, %v1442_v0, %v1445_v6  ;;  %v3203_v34 = vsel %vm3201_vm7, %v11737_v33, %v1545_v4  ;;  %vm3204_vm4 = vcmp.eq.s32.totalorder %v3199_v29, 2  ;;  %vm3303_vm3 = vcmp.lt.s32.totalorder %v3302_v41, 2 }
 0x21d   : > { %v1447_v9 = vsel %vm1436_vm14, nan, %v1446_v61  ;;  %v3206_v37 = vsel %vm3204_vm4, %v1548_v5, %v11736_v23  ;;  %vm3304_vm6 = vcmp.eq.s32.totalorder %v3302_v41, 0  ;;  %vm3307_vm10 = vcmp.eq.s32.totalorder %v3302_v41, 2 }
 0x21e   : > { %v4138_v53 = vpack.c.bf16 %v1447_v9, %v1343_v31  ;;  %v3207_v16 = vsel %vm3200_vm2, %v3203_v34, %v3206_v37  ;;  %v3306_v44 = vsel %vm3304_vm6, %v11740_v62, %v1649_v17  ;;  %v3309_v60 = vsel %vm3307_vm10, %v1652_v35, %v11739_v18 }
 0x21f   : > { %v3208_v26 = vsel %vm1540_vm12, nan, %v3207_v16  ;;  %v3310_v28 = vsel %vm3303_vm3, %v3306_v44, %v3309_v60  ;;  %v1542_v12 = vand.u32 3, %v1541_v46  ;;  %v1645_v54 = vadd.s32 3, %v11742_v19 }
 0x220   : > { %v10363_v30 = vsel %vm10305_vm5, 0, %v10239_v48  ;;  %8267 = vsinq.f32 %v10335_v42  ;;  %7827 = vmatprep.mubr.msk.bf16.mxu1 %vm4162_vm1, %v4138_v53  ;;  %v3311_v36 = vsel %vm1644_vm13, nan, %v3310_v28  ;;  %v1753_v27 = vxor.u32 2147483648, %v9953_v32 }
 0x221   : > { %v4149_v11 = vpack.c.bf16 %v3311_v36, %v3208_v26  ;;  %vm1544_vm14 = vcmp.eq.s32.totalorder %v1542_v12, 0  ;;  %vm1547_vm15 = vcmp.eq.s32.totalorder %v1542_v12, 2  ;;  %v1756_v21 = vxor.u32 2147483648, %v9940_v50 }
 0x222   : > { %vm1543_vm11 = vcmp.lt.s32.totalorder %v1542_v12, 2  ;;  %v1546_v8 = vsel %vm1544_vm14, %v11737_v33, %v1545_v4  ;;  %v1549_v48 = vsel %vm1547_vm15, %v1548_v5, %v11736_v23  ;;  %v1646_v1 = vand.u32 3, %v1645_v54  ;;  %v11744_v33 = vld [vmem:[#allocation15_spill] sm:$0xff] }
 0x223   : > { %v10373_v57 = vpop.eup %8263  ;;  %7810 = vmatmul.mubr.msk.bf16.gmra.mxu0 %vm4162_vm1, %v4149_v11  ;;  %v1550_v22 = vsel %vm1543_vm11, %v1546_v8, %v1549_v48  ;;  %v1857_v25 = vxor.u32 2147483648, %v9934_v20  ;;  %v1860_v40 = vxor.u32 2147483648, %v9828_v13  ;;  %v3405_v51 = vand.u32 3, %v11743_v56  ;;  %v11749_v8 = vld [vmem:[#allocation22_spill] sm:$0xff] }
 0x224   : > { %v10379_v49 = vpop.eup %8265  ;;  %v1551_v55 = vsel %vm1540_vm12, nan, %v1550_v22  ;;  %vm1647_vm5 = vcmp.lt.s32.totalorder %v1646_v1, 2  ;;  %vm1648_vm8 = vcmp.eq.s32.totalorder %v1646_v1, 0  ;;  %vm1651_vm0 = vcmp.eq.s32.totalorder %v1646_v1, 2  ;;  %v11750_v1 = vld [vmem:[#allocation21_spill] sm:$0xff] }
 0x225   : > { %v1650_v31 = vsel %vm1648_vm8, %v11740_v62, %v1649_v17  ;;  %v1653_v39 = vsel %vm1651_vm0, %v1652_v35, %v11739_v18  ;;  %vm3406_vm9 = vcmp.lt.s32.totalorder %v3405_v51, 2  ;;  %vm3407_vm2 = vcmp.eq.s32.totalorder %v3405_v51, 0  ;;  %v11745_v62 = vld [vmem:[#allocation6_spill] sm:$0xff]  ;;  %v11746_v35 = vld [vmem:[#allocation4_spill] sm:$0xff] }
 0x226   : > { %v1654_v23 = vsel %vm1647_vm5, %v1650_v31, %v1653_v39  ;;  %v3409_v4 = vsel %vm3407_vm2, %v9940_v50, %v1753_v27  ;;  %vm3410_vm7 = vcmp.eq.s32.totalorder %v3405_v51, 2  ;;  %v3508_v5 = vand.u32 3, %v11744_v33 }
 0x227   : > { %v1655_v52 = vsel %vm1644_vm13, nan, %v1654_v23  ;;  %v3412_v7 = vsel %vm3410_vm7, %v1756_v21, %v9953_v32  ;;  %v1749_v29 = vadd.s32 3, %v11743_v56  ;;  %v1853_v19 = vadd.s32 3, %v11744_v33  ;;  %v11752_v23 = vld [vmem:[#allocation7_spill] sm:$0xff] }
 0x228   : > { %v4139_v17 = vpack.c.bf16 %v1655_v52, %v1551_v55  ;;  %vm1748_vm12 = vweird.f32 %v11745_v62  ;;  %v3413_v18 = vsel %vm3406_vm9, %v3409_v4, %v3412_v7  ;;  %vm3510_vm4 = vcmp.eq.s32.totalorder %v3508_v5, 0 }
 0x229   : > { %vm1852_vm3 = vweird.f32 %v11746_v35  ;;  %v3512_v41 = vsel %vm3510_vm4, %v9828_v13, %v1857_v25  ;;  %vm3513_vm6 = vcmp.eq.s32.totalorder %v3508_v5, 2  ;;  %v1750_v46 = vand.u32 3, %v1749_v29 }
 0x22a   : > { %7828 = vmatmul.mubr.msk.bf16.gmra.mxu1 %vm4162_vm1, %v4139_v17  ;;  %v3414_v14 = vsel %vm1748_vm12, nan, %v3413_v18  ;;  %vm3509_vm13 = vcmp.lt.s32.totalorder %v3508_v5, 2  ;;  %v3515_v0 = vsel %vm3513_vm6, %v1860_v40, %v9934_v20  ;;  %v1854_v6 = vand.u32 3, %v1853_v19 }
 0x22b   : > { %v3516_v61 = vsel %vm3509_vm13, %v3512_v41, %v3515_v0  ;;  %vm1752_vm10 = vcmp.eq.s32.totalorder %v1750_v46, 0  ;;  %vm1755_vm14 = vcmp.eq.s32.totalorder %v1750_v46, 2  ;;  %v1961_v34 = vxor.u32 2147483648, %v10093_v10  ;;  %v11753_v0 = vld [vmem:[#allocation25_spill] sm:$0xff] }
 0x22c   : > { %v3517_v9 = vsel %vm1852_vm3, nan, %v3516_v61  ;;  %vm1751_vm15 = vcmp.lt.s32.totalorder %v1750_v46, 2  ;;  %v1754_v37 = vsel %vm1752_vm10, %v9940_v50, %v1753_v27  ;;  %v1757_v53 = vsel %vm1755_vm14, %v1756_v21, %v9953_v32  ;;  %v11747_v32 = vld [vmem:[#allocation24_spill] sm:$0xff]  ;;  %v11748_v27 = vld [vmem:[#allocation23_spill] sm:$0xff] }
 0x22d   : > { %v10404_v16 = vpop.eup %8267  ;;  %v4150_v44 = vpack.c.bf16 %v3517_v9, %v3414_v14  ;;  %v1758_v60 = vsel %vm1751_vm15, %v1754_v37, %v1757_v53  ;;  %vm1856_vm11 = vcmp.eq.s32.totalorder %v1854_v6, 0  ;;  %vm1859_vm5 = vcmp.eq.s32.totalorder %v1854_v6, 2 }
 0x22e   : > { %v1759_v26 = vsel %vm1748_vm12, nan, %v1758_v60  ;;  %vm1855_vm8 = vcmp.lt.s32.totalorder %v1854_v6, 2  ;;  %v1858_v28 = vsel %vm1856_vm11, %v9828_v13, %v1857_v25  ;;  %v1861_v12 = vsel %vm1859_vm5, %v1860_v40, %v9934_v20  ;;  %v11751_v25 = vld [vmem:[#allocation11_spill] sm:$0xff] }
 0x22f   : > { %7813 = vmatprep.mubr.msk.bf16.mxu0 %vm4162_vm1, %v4150_v44  ;;  %v1862_v54 = vsel %vm1855_vm8, %v1858_v28, %v1861_v12  ;;  %v1964_v50 = vxor.u32 2147483648, %v10052_v43  ;;  %v2065_v36 = vxor.u32 2147483648, %v11747_v32  ;;  %v2068_v11 = vxor.u32 2147483648, %v11748_v27 }
 0x230   : > { %v1863_v21 = vsel %vm1852_vm3, nan, %v1862_v54  ;;  %v3611_v48 = vand.u32 3, %v11749_v8  ;;  %v3714_v22 = vand.u32 3, %v11750_v1  ;;  %v1957_v13 = vadd.s32 3, %v11749_v8 }
 0x231   : > { %8269 = vcosq.f32 %v10335_v42  ;;  %v4140_v20 = vpack.c.bf16 %v1863_v21, %v1759_v26  ;;  %vm1956_vm0 = vweird.f32 %v11751_v25  ;;  %v2061_v40 = vadd.s32 3, %v11750_v1 }
 0x232   : > { %vm3612_vm9 = vcmp.lt.s32.totalorder %v3611_v48, 2  ;;  %vm3613_vm2 = vcmp.eq.s32.totalorder %v3611_v48, 0  ;;  %vm3616_vm7 = vcmp.eq.s32.totalorder %v3611_v48, 2  ;;  %vm3715_vm12 = vcmp.lt.s32.totalorder %v3714_v22, 2 }
 0x233   : > { %7831 = vmatprep.mubr.msk.bf16.mxu1 %vm4162_vm1, %v4140_v20  ;;  %v3615_v56 = vsel %vm3613_vm2, %v10052_v43, %v1961_v34  ;;  %v3618_v51 = vsel %vm3616_vm7, %v1964_v50, %v10093_v10  ;;  %vm3716_vm4 = vcmp.eq.s32.totalorder %v3714_v22, 0  ;;  %vm3719_vm3 = vcmp.eq.s32.totalorder %v3714_v22, 2 }
 0x234   : > { %v3619_v55 = vsel %vm3612_vm9, %v3615_v56, %v3618_v51  ;;  %v3718_v42 = vsel %vm3716_vm4, %v11748_v27, %v2065_v36  ;;  %v3721_v31 = vsel %vm3719_vm3, %v2068_v11, %v11747_v32  ;;  %v1958_v39 = vand.u32 3, %v1957_v13 }
 0x235   : > { %vm2060_vm6 = vweird.f32 %v11752_v23  ;;  %v3620_v4 = vsel %vm1956_vm0, nan, %v3619_v55  ;;  %v3722_v33 = vsel %vm3715_vm12, %v3718_v42, %v3721_v31  ;;  %v2062_v5 = vand.u32 3, %v2061_v40 }
 0x236   : > { %v3723_v52 = vsel %vm2060_vm6, nan, %v3722_v33  ;;  %vm1960_vm13 = vcmp.eq.s32.totalorder %v1958_v39, 0  ;;  %vm1963_vm10 = vcmp.eq.s32.totalorder %v1958_v39, 2  ;;  %vm2164_vm14 = vweird.f32 %v9789_v58 }
 0x237   : > { %v2169_v7 = vxor.u32 2147483648, %v10251_v63  ;;  %v4151_v29 = vpack.c.bf16 %v3723_v52, %v3620_v4  ;;  %vm1959_vm15 = vcmp.lt.s32.totalorder %v1958_v39, 2  ;;  %v1962_v19 = vsel %vm1960_vm13, %v10052_v43, %v1961_v34 }
 0x238   : > { %v1965_v17 = vsel %vm1963_vm10, %v1964_v50, %v10093_v10  ;;  %vm2064_vm11 = vcmp.eq.s32.totalorder %v2062_v5, 0  ;;  %vm2067_vm5 = vcmp.eq.s32.totalorder %v2062_v5, 2  ;;  %v2172_v18 = vxor.u32 2147483648, %v10249_v47 }
 0x239   : > { %v1966_v62 = vsel %vm1959_vm15, %v1962_v19, %v1965_v17  ;;  %7814 = vmatmul.mubr.msk.bf16.gmra.mxu0 %vm4162_vm1, %v4151_v29  ;;  %vm2063_vm8 = vcmp.lt.s32.totalorder %v2062_v5, 2  ;;  %v2066_v41 = vsel %vm2064_vm11, %v11748_v27, %v2065_v36  ;;  %v2069_v46 = vsel %vm2067_vm5, %v2068_v11, %v11747_v32 }
 0x23a   : > { %v1967_v35 = vsel %vm1956_vm0, nan, %v1966_v62  ;;  %v2070_v14 = vsel %vm2063_vm8, %v2066_v41, %v2069_v46  ;;  %v2273_v43 = vxor.u32 2147483648, %v10136_v3  ;;  %v3817_v10 = vand.u32 3, %v10205_v45 }
 0x23b   : > { %v3920_v6 = vand.u32 3, %v11753_v0  ;;  %v2071_v61 = vsel %vm2060_vm6, nan, %v2070_v14  ;;  %v2276_v34 = vxor.u32 2147483648, %v10131_v38  ;;  %v2165_v9 = vadd.s32 3, %v10205_v45  ;;  %v7969_v14 = vld [vmem:[%s8722_s23] sm:$0xff]  }
 0x23c   : > { %v2269_v37 = vadd.s32 3, %v11753_v0  ;;  %v4141_v53 = vpack.c.bf16 %v2071_v61, %v1967_v35  ;;  %vm2268_vm0 = vweird.f32 %v9727_v24  ;;  %vm3819_vm9 = vcmp.eq.s32.totalorder %v3817_v10, 0  ;;  %v7971_v0 = vld [vmem:[%s8722_s23 + $0x10] sm:$0xff]   ;;  %v7972_v61 = vld [vmem:[%s8722_s23 + $0x18] sm:$0xff]  }
 0x23d   : > { %vm3822_vm2 = vcmp.eq.s32.totalorder %v3817_v10, 2  ;;  %vm3818_vm7 = vcmp.lt.s32.totalorder %v3817_v10, 2  ;;  %v3821_v44 = vsel %vm3819_vm9, %v10249_v47, %v2169_v7  ;;  %vm3922_vm12 = vcmp.eq.s32.totalorder %v3920_v6, 0  ;;  %v7970_v10 = vld [vmem:[%s8722_s23 + $0x8] sm:$0xff]  }
 0x23e   : > { %v3824_v60 = vsel %vm3822_vm2, %v2172_v18, %v10251_v63  ;;  %v10453_v26 = vpop.eup %8269  ;;  %7832 = vmatmul.mubr.msk.bf16.gmra.mxu1 %vm4162_vm1, %v4141_v53  ;;  %v3924_v45 = vsel %vm3922_vm12, %v10131_v38, %v2273_v43  ;;  %vm3925_vm4 = vcmp.eq.s32.totalorder %v3920_v6, 2  ;;  %v2166_v12 = vand.u32 3, %v2165_v9  ;;  %v7974_v9 = vld [vmem:[%s8722_s23 + $0x28] sm:$0xff]  }
 0x23f   : > { %v3825_v28 = vsel %vm3818_vm7, %v3821_v44, %v3824_v60  ;;  %vm3921_vm3 = vcmp.lt.s32.totalorder %v3920_v6, 2  ;;  %v3927_v50 = vsel %vm3925_vm4, %v2276_v34, %v10136_v3  ;;  %v2270_v32 = vand.u32 3, %v2269_v37  ;;  %v7979_v6 = vld [vmem:[%s11576_s12 + $0x14] ss:$8 sps:$4 sm:$0xff]  }
 0x240   : > { %v3826_v54 = vsel %vm2164_vm14, nan, %v3825_v28  ;;  %v3928_v36 = vsel %vm3921_vm3, %v3924_v45, %v3927_v50  ;;  %vm2168_vm6 = vcmp.eq.s32.totalorder %v2166_v12, 0  ;;  %vm2171_vm13 = vcmp.eq.s32.totalorder %v2166_v12, 2  ;;  %v7975_v37 = vld [vmem:[%s8722_s23 + $0x30] sm:$0xff]   ;;  %v7976_v60 = vld [vmem:[%s8722_s23 + $0x38] sm:$0xff]  }
 0x241   : > { %v2377_v27 = vxor.u32 2147483648, %v10404_v16  ;;  %v3929_v11 = vsel %vm2268_vm0, nan, %v3928_v36  ;;  %vm2167_vm10 = vcmp.lt.s32.totalorder %v2166_v12, 2  ;;  %v2170_v21 = vsel %vm2168_vm6, %v10249_v47, %v2169_v7  ;;  %v10538_v28 = vld [vmem:[%s11570_s6] ss:$0 sm:$0xff] }
 0x242   : > { %v2173_v8 = vsel %vm2171_vm13, %v2172_v18, %v10251_v63  ;;  %v4152_v48 = vpack.c.bf16 %v3929_v11, %v3826_v54  ;;  %vm2272_vm15 = vcmp.eq.s32.totalorder %v2270_v32, 0  ;;  %vm2275_vm11 = vcmp.eq.s32.totalorder %v2270_v32, 2 }
 0x243   : > { %v2174_v1 = vsel %vm2167_vm10, %v2170_v21, %v2173_v8  ;;  %vm2271_vm5 = vcmp.lt.s32.totalorder %v2270_v32, 2  ;;  %v2274_v13 = vsel %vm2272_vm15, %v10131_v38, %v2273_v43  ;;  %v2277_v20 = vsel %vm2275_vm11, %v2276_v34, %v10136_v3  ;;  %v7973_v34 = vld [vmem:[%s8722_s23 + $0x20] sm:$0xff]  }
 0x244   : > { %v2175_v22 = vsel %vm2164_vm14, nan, %v2174_v1  ;;  %7817 = vmatprep.mubr.msk.bf16.mxu0 %vm4162_vm1, %v4152_v48  ;;  %v2278_v25 = vsel %vm2271_vm5, %v2274_v13, %v2277_v20  ;;  %v2380_v40 = vxor.u32 2147483648, %v10453_v26  ;;  %v2481_v47 = vxor.u32 2147483648, %v10379_v49 }
 0x245   : > { %v2484_v63 = vxor.u32 2147483648, %v10373_v57  ;;  %v2279_v56 = vsel %vm2268_vm0, nan, %v2278_v25  ;;  %v4023_v58 = vand.u32 3, %v10363_v30  ;;  %v4126_v51 = vand.u32 3, %v10209_v15 }
 0x246   : > { %v2373_v38 = vadd.s32 3, %v10363_v30  ;;  %v4142_v55 = vpack.c.bf16 %v2279_v56, %v2175_v22  ;;  %vm2372_vm14 = vweird.f32 %v9886_v2  ;;  %v2477_v3 = vadd.s32 3, %v10209_v15  ;;  %v7966_v2 = vld [vmem:[%s11571_s7 + $0x10] sm:$0xff]  }
 0x247   : > { %vm4024_vm8 = vcmp.lt.s32.totalorder %v4023_v58, 2  ;;  %vm4025_vm9 = vcmp.eq.s32.totalorder %v4023_v58, 0  ;;  %vm4028_vm2 = vcmp.eq.s32.totalorder %v4023_v58, 2  ;;  %vm4127_vm7 = vcmp.lt.s32.totalorder %v4126_v51, 2 }
 0x248   : > { %7835 = vmatprep.mubr.msk.bf16.mxu1 %vm4162_vm1, %v4142_v55  ;;  %v4027_v24 = vsel %vm4025_vm9, %v10453_v26, %v2377_v27  ;;  %v4030_v42 = vsel %vm4028_vm2, %v2380_v40, %v10404_v16  ;;  %vm4128_vm0 = vcmp.eq.s32.totalorder %v4126_v51, 0  ;;  %vm4131_vm12 = vcmp.eq.s32.totalorder %v4126_v51, 2 }
 0x249   : > { %v4031_v31 = vsel %vm4024_vm8, %v4027_v24, %v4030_v42  ;;  %v4130_v30 = vsel %vm4128_vm0, %v10373_v57, %v2481_v47  ;;  %v4133_v39 = vsel %vm4131_vm12, %v2484_v63, %v10379_v49  ;;  %v2374_v23 = vand.u32 3, %v2373_v38 }
 0x24a   : > { %vm2476_vm4 = vweird.f32 %v9840_v59  ;;  %v4032_v15 = vsel %vm2372_vm14, nan, %v4031_v31  ;;  %v4134_v4 = vsel %vm4127_vm7, %v4130_v30, %v4133_v39  ;;  %v2478_v33 = vand.u32 3, %v2477_v3  ;;  %v7967_v59 = vld [vmem:[%s11571_s7 + $0x8] sm:$0xff]  }
 0x24b   : > { %v4135_v5 = vsel %vm2476_vm4, nan, %v4134_v4  ;;  %vm2376_vm3 = vcmp.eq.s32.totalorder %v2374_v23, 0  ;;  %vm2379_vm6 = vcmp.eq.s32.totalorder %v2374_v23, 2  ;;  %vm2375_vm13 = vcmp.lt.s32.totalorder %v2374_v23, 2 }
 0x24c   : > { %v4153_v52 = vpack.c.bf16 %v4135_v5, %v4032_v15  ;;  %v2378_v7 = vsel %vm2376_vm3, %v10453_v26, %v2377_v27  ;;  %v2381_v29 = vsel %vm2379_vm6, %v2380_v40, %v10404_v16  ;;  %vm2480_vm10 = vcmp.eq.s32.totalorder %v2478_v33, 0  ;;  %v7965_v16 = vld [vmem:[%s11571_s7 + $0x18] sm:$0xff]  }
 0x24d   : > { %v2382_v19 = vsel %vm2375_vm13, %v2378_v7, %v2381_v29  ;;  %vm2483_vm15 = vcmp.eq.s32.totalorder %v2478_v33, 2  ;;  %vm2479_vm11 = vcmp.lt.s32.totalorder %v2478_v33, 2  ;;  %v2482_v62 = vsel %vm2480_vm10, %v10373_v57, %v2481_v47  ;;  %7839 = vmatprep.subr.bf16.mxu0 %v7965_v16  ;;  %v7968_v57 = vld [vmem:[%s11571_s7] sm:$0xff]  }
 0x24e   : > { %7818 = vmatmul.mubr.msk.bf16.gmra.mxu0 %vm4162_vm1, %v4153_v52  ;;  %v2383_v17 = vsel %vm2372_vm14, nan, %v2382_v19  ;;  %v2485_v18 = vsel %vm2483_vm15, %v2484_v63, %v10379_v49  ;;  %v4747_v49 = vld [vmem:[%s11573_s9] sm:$0xf]  ;;  %vm4795_vm5 = vcmask 64512   ;;  %v11754_v50 = vmov 0  }
 0x24f   : > { %v2486_v35 = vsel %vm2479_vm11, %v2482_v62, %v2485_v18  ;;  %7840 = vmatpush3.bf16.msra.mxu0 %v7965_v16  ;;  %vm4545_vm14 = vcmask 523264   ;;  %vm5034_vm8 = vcmask 261120  }
 0x250   : > { %v2487_v41 = vsel %vm2476_vm4, nan, %v2486_v35  ;;  %7841 = vmatprep.subr.bf16.mxu0 %v7966_v2 }
 0x251   : > { %v4143_v46 = vpack.c.bf16 %v2487_v41, %v2383_v17 }
 0x253   : > { %7836 = vmatmul.mubr.msk.bf16.gmra.mxu1 %vm4162_vm1, %v4143_v46  ;;  %7842 = vmatpush3.bf16.msra.mxu0 %v7966_v2  ;;  %vm4820_vm1 = vcmask 1043456  }
 0x254   : > { %7843 = vmatprep.subr.bf16.mxu0 %v7967_v59  ;;  %7881 = vmatprep.subr.msk.bf16.mxu1 %vm4820_vm1, %v4747_v49  ;;  %v4822_v43 = vsel %vm4820_vm1, %v4747_v49, 0 }
 0x255   : > { %7864 = vmatpush3.bf16.msra.mxu1 %v4822_v43  ;;  %7865 = vmatprep.mubr.msk.bf16.mxu1 %vm4795_vm5, %v7969_v14 }
 0x257   : > { %7844 = vmatpush3.bf16.msra.mxu0 %v7967_v59  ;;  %v7977_v59 = vld [vmem:[%s11576_s12 + $0x10] ss:$8 sps:$4 sm:$0xff]  }
 0x258   : > { %7845 = vmatprep.subr.bf16.mxu0 %v7968_v57 }
 0x25b   : > { %7846 = vmatpush3.bf16.msra.mxu0 %v7968_v57  ;;  %7866 = vmatmul.mubr.msk.bf16.vlgmr.msra.gmra.mxu1 %vm4795_vm5, %v7970_v10 }
 0x25c   : > { %5071 = vmatprep.subr.bf16.mxu0 %v7979_v6  ;;  %7869 = vmatprep.mubr.msk.bf16.mxu1 %vm4795_vm5, %v7971_v0 }
 0x263   : > { %7870 = vmatmul.mubr.msk.bf16.gmra.mxu1 %vm4795_vm5, %v7972_v61 }
 0x264   : > { %7873 = vmatprep.mubr.msk.bf16.mxu1 %vm4795_vm5, %v7973_v34 }
 0x26b   : > { %7874 = vmatmul.mubr.msk.bf16.gmra.mxu1 %vm4795_vm5, %v7974_v9 }
 0x26c   : > { %7877 = vmatprep.mubr.msk.bf16.mxu1 %vm4795_vm5, %v7975_v37 }
 0x273   : > { %7878 = vmatmul.mubr.msk.bf16.gmra.mxu1 %vm4795_vm5, %v7976_v60 }
 0x274   : > { %5279 = vmatprep.mubr.bf16.mxu1 %v11754_v50 }
 0x2ca   : > { %v7807_v53 = vpop.f32.mrf.mxu0 }
 0x2cc   : > { %v4221_v44 = vpop.f32.mrf.mxu0 }
 0x2ce   : > { %v7808_v45 = vpop.f32.mrf.mxu0 }
 0x2d0   : > { %v4224_v11 = vpop.f32.mrf.mxu0 }
 0x2d2   : > { %v7825_v26 = vpop.f32.mrf.mxu1 }
 0x2d3   : > { %v4357_v12 = vadd.f32 %v7825_v26, %v7807_v53 }
 0x2d4   : > { %v4348_v54 = vpop.f32.mrf.mxu1 }
 0x2d5   : > { %v4420_v32 = vadd.f32 %v10538_v28, %v4357_v12  ;;  %v4349_v36 = vadd.f32 %v4348_v54, %v4221_v44 }
 0x2d6   : > { %v7826_v27 = vpop.f32.mrf.mxu1 }
 0x2d7   : > { %v4418_v21 = vadd.f32 %v10538_v28, %v4349_v36  ;;  %v4360_v8 = vadd.f32 %v7826_v27, %v7808_v45  ;;  %v4436_v48 = vmul.f32 0.5, %v4420_v32 }
 0x2d8   : > { %v4351_v1 = vpop.f32.mrf.mxu1 }
 0x2d9   : > { %v4434_v22 = vmul.f32 0.5, %v4418_v21  ;;  %v4421_v13 = vadd.f32 %v10538_v28, %v4360_v8  ;;  %v4352_v20 = vadd.f32 %v4351_v1, %v4224_v11 }
 0x2db   : > { %8271 = vtanh.f32 %v4434_v22  ;;  %v4437_v25 = vmul.f32 0.5, %v4421_v13  ;;  %v4419_v40 = vadd.f32 %v10538_v28, %v4352_v20 }
 0x2dc   : > { %8273 = vtanh.f32 %v4436_v48 }
 0x2dd   : > { %8275 = vtanh.f32 %v4437_v25  ;;  %v4435_v47 = vmul.f32 0.5, %v4419_v40 }
 0x2df   : > { %8277 = vtanh.f32 %v4435_v47 }
 0x2e3   : > { %v7811_v63 = vpop.f32.mrf.mxu0 }
 0x2e5   : > { %v4237_v56 = vpop.f32.mrf.mxu0 }
 0x2e7   : > { %v7812_v3 = vpop.f32.mrf.mxu0 }
 0x2e8   : > { %v8272_v58 = vpop.eup %8271 }
 0x2e9   : > { %v8274_v51 = vpop.eup %8273  ;;  %v4466_v24 = vadd.f32 1.0, %v8272_v58  ;;  %v4240_v7 = vpop.f32.mrf.mxu0 }
 0x2ea   : > { %v8276_v38 = vpop.eup %8275  ;;  %v7829_v55 = vpop.f32.mrf.mxu1  ;;  %v4468_v39 = vadd.f32 1.0, %v8274_v51 }
 0x2eb   : > { %v4469_v42 = vadd.f32 1.0, %v8276_v38  ;;  %v4373_v31 = vadd.f32 %v7829_v55, %v7811_v63  ;;  %v4482_v29 = vmul.f32 %v4466_v24, %v4434_v22 }
 0x2ec   : > { %v8278_v30 = vpop.eup %8277  ;;  %v4364_v23 = vpop.f32.mrf.mxu1  ;;  %v4484_v62 = vmul.f32 %v4468_v39, %v4436_v48 }
 0x2ed   : > { %v4467_v15 = vadd.f32 1.0, %v8278_v30  ;;  %v4424_v4 = vadd.f32 %v10538_v28, %v4373_v31  ;;  %v4365_v33 = vadd.f32 %v4364_v23, %v4237_v56  ;;  %v4485_v5 = vmul.f32 %v4469_v42, %v4437_v25 }
 0x2ee   : > { %v7830_v52 = vpop.f32.mrf.mxu1 }
 0x2ef   : > { %v4483_v19 = vmul.f32 %v4467_v15, %v4435_v47  ;;  %v4422_v17 = vadd.f32 %v10538_v28, %v4365_v33  ;;  %v4440_v18 = vmul.f32 0.5, %v4424_v4  ;;  %v4376_v35 = vadd.f32 %v7830_v52, %v7812_v3 }
 0x2f0   : > { %v4367_v41 = vpop.f32.mrf.mxu1  ;;  %v4499_v57 = vpack.c.bf16 %v4485_v5, %v4484_v62 }
 0x2f1   : > { %v4438_v46 = vmul.f32 0.5, %v4422_v17  ;;  %v4368_v16 = vadd.f32 %v4367_v41, %v4240_v7  ;;  %v4498_v2 = vpack.c.bf16 %v4483_v19, %v4482_v29  ;;  %v4425_v49 = vadd.f32 %v10538_v28, %v4376_v35 }
 0x2f3   : > { %8279 = vtanh.f32 %v4438_v46  ;;  %v4423_v14 = vadd.f32 %v10538_v28, %v4368_v16  ;;  %7847 = vmatprep.mubr.msk.bf16.mxu0 %vm4545_vm14, %v4498_v2  ;;  %v4441_v43 = vmul.f32 0.5, %v4425_v49 }
 0x2f4   : > { %8281 = vtanh.f32 %v4440_v18  ;;  %7848 = vmatmul.mubr.msk.bf16.vlgmr.msra.gmra.mxu0 %vm4545_vm14, %v4499_v57 }
 0x2f5   : > { %v4439_v10 = vmul.f32 0.5, %v4423_v14  ;;  %5072 = vmatpush1.bf16.msra.mxu0 %v7977_v59  ;;  %8283 = vtanh.f32 %v4441_v43 }
 0x2f7   : > { %8285 = vtanh.f32 %v4439_v10 }
 0x2f9   : > { %v7815_v0 = vpop.f32.mrf.mxu0 }
 0x2fb   : > { %v4253_v6 = vpop.f32.mrf.mxu0 }
 0x2fd   : > { %v7816_v9 = vpop.f32.mrf.mxu0 }
 0x2fe   : > { %v7833_v61 = vpop.f32.mrf.mxu1 }
 0x2ff   : > { %v4389_v34 = vadd.f32 %v7833_v61, %v7815_v0  ;;  %v4256_v11 = vpop.f32.mrf.mxu0 }
 0x300   : > { %v8280_v37 = vpop.eup %8279  ;;  %v4380_v53 = vpop.f32.mrf.mxu1 }
 0x301   : > { %v8282_v44 = vpop.eup %8281  ;;  %v4428_v60 = vadd.f32 %v10538_v28, %v4389_v34  ;;  %v4381_v26 = vadd.f32 %v4380_v53, %v4253_v6  ;;  %v4470_v54 = vadd.f32 1.0, %v8280_v37 }
 0x302   : > { %v7834_v45 = vpop.f32.mrf.mxu1  ;;  %v8284_v12 = vpop.eup %8283  ;;  %v4472_v8 = vadd.f32 1.0, %v8282_v44 }
 0x303   : > { %v4444_v32 = vmul.f32 0.5, %v4428_v60  ;;  %v4426_v36 = vadd.f32 %v10538_v28, %v4381_v26  ;;  %v4392_v27 = vadd.f32 %v7834_v45, %v7816_v9  ;;  %v4473_v48 = vadd.f32 1.0, %v8284_v12 }
 0x304   : > { %v8286_v21 = vpop.eup %8285  ;;  %v4383_v1 = vpop.f32.mrf.mxu1  ;;  %v4486_v47 = vmul.f32 %v4470_v54, %v4438_v46  ;;  %v4488_v58 = vmul.f32 %v4472_v8, %v4440_v18 }
 0x305   : > { %v4471_v22 = vadd.f32 1.0, %v8286_v21  ;;  %v4442_v13 = vmul.f32 0.5, %v4426_v36  ;;  %v4429_v20 = vadd.f32 %v10538_v28, %v4392_v27  ;;  %v4489_v25 = vmul.f32 %v4473_v48, %v4441_v43  ;;  %v7980_v48 = vld [vmem:[%s11576_s12] ss:$8 sps:$4 sm:$0xff]  }
 0x306   : > { %v4384_v40 = vadd.f32 %v4383_v1, %v4256_v11  ;;  %8287 = vtanh.f32 %v4444_v32  ;;  %v7982_v1 = vld [vmem:[%s11576_s12 + $0x4] ss:$8 sps:$4 sm:$0xff]  }
 0x307   : > { %v4487_v63 = vmul.f32 %v4471_v22, %v4439_v10  ;;  %v4445_v56 = vmul.f32 0.5, %v4429_v20  ;;  %8289 = vtanh.f32 %v4442_v13  ;;  %v4501_v55 = vpack.c.bf16 %v4489_v25, %v4488_v58  ;;  %5073 = vmatprep.subr.bf16.mxu0 %v7982_v1  ;;  %v5001_v22 = vld [vmem:[%s11575_s11] sm:$0xff]  ;;  %v7991_v58 = vld [vmem:[%s8757_s3 + $0x18] sm:$0xff]  }
 0x308   : > { %v4427_v51 = vadd.f32 %v10538_v28, %v4384_v40  ;;  %5074 = vmatpush1.bf16.msra.mxu0 %v7980_v48  ;;  %v7594_v20 = vcombine.low %v5001_v22, %v5001_v22  ;;  %v7987_v40 = vld [vmem:[%s11577_s13 + $0x14] ss:$8 sps:$4 sm:$0xff]  }
 0x309   : > { %8291 = vtanh.f32 %v4445_v56  ;;  %v4500_v38 = vpack.c.bf16 %v4487_v63, %v4486_v47  ;;  %v7988_v47 = vld [vmem:[%s8757_s3] sm:$0xff]   ;;  %5428 = vmatprep.subr.bf16.mxu0 %v7987_v40  ;;  %v7989_v63 = vld [vmem:[%s8757_s3 + $0x8] sm:$0xff]  }
 0x30a   : > { %v4443_v3 = vmul.f32 0.5, %v4427_v51  ;;  %v5242_v25 = vsel %vm4820_vm1, %v7594_v20, 0  ;;  %v7995_v51 = vld [vmem:[%s8757_s3 + $0x20] sm:$0xff]  }
 0x30b   : > { %7851 = vmatprep.mubr.msk.bf16.mxu0 %vm4545_vm14, %v4500_v38 }
 0x30c   : > { %8293 = vtanh.f32 %v4443_v3  ;;  %7852 = vmatmul.mubr.msk.bf16.gmra.mxu0 %vm4545_vm14, %v4501_v55  ;;  %v10600_v55 = vld [vmem:[%s11572_s8] ss:$0 sm:$0xff] }
 0x30e   : > { %v7819_v24 = vpop.f32.mrf.mxu0 }
 0x310   : > { %v4269_v42 = vpop.f32.mrf.mxu0 }
 0x312   : > { %v7820_v23 = vpop.f32.mrf.mxu0 }
 0x313   : > { %v7837_v31 = vpop.f32.mrf.mxu1  ;;  %v8288_v30 = vpop.eup %8287 }
 0x314   : > { %v4405_v39 = vadd.f32 %v7837_v31, %v7819_v24  ;;  %v8290_v15 = vpop.eup %8289  ;;  %v4272_v35 = vpop.f32.mrf.mxu0  ;;  %v4476_v46 = vadd.f32 1.0, %v8288_v30 }
 0x315   : > { %v4396_v4 = vpop.f32.mrf.mxu1  ;;  %v4474_v19 = vadd.f32 1.0, %v8290_v15 }
 0x316   : > { %v8292_v33 = vpop.eup %8291  ;;  %v4432_v5 = vadd.f32 %v10538_v28, %v4405_v39  ;;  %v4397_v52 = vadd.f32 %v4396_v4, %v4269_v42  ;;  %v4492_v6 = vmul.f32 %v4476_v46, %v4444_v32  ;;  %v7996_v4 = vld [vmem:[%s8757_s3 + $0x28] sm:$0xff]  }
 0x317   : > { %v4477_v7 = vadd.f32 1.0, %v8292_v33  ;;  %v7838_v29 = vpop.f32.mrf.mxu1  ;;  %v4490_v43 = vmul.f32 %v4474_v19, %v4442_v13  ;;  %v7595_v13 = vcombine.high %v5001_v22, %v5001_v22 }
 0x318   : > { %v4448_v17 = vmul.f32 0.5, %v4432_v5  ;;  %v4430_v62 = vadd.f32 %v10538_v28, %v4397_v52  ;;  %v4408_v18 = vadd.f32 %v7838_v29, %v7820_v23 }
 0x319   : > { %v8294_v41 = vpop.eup %8293  ;;  %v4399_v16 = vpop.f32.mrf.mxu1  ;;  %v4493_v49 = vmul.f32 %v4477_v7, %v4445_v56  ;;  %7596 = vmatprep.subr.msk.bf16.mxu1 %vm4820_vm1, %v7595_v13  ;;  %v7990_v56 = vld [vmem:[%s8757_s3 + $0x10] sm:$0xff]  }
 0x31a   : > { %v4475_v2 = vadd.f32 1.0, %v8294_v41  ;;  %v4446_v59 = vmul.f32 0.5, %v4430_v62  ;;  %v4433_v57 = vadd.f32 %v10538_v28, %v4408_v18  ;;  %v4400_v14 = vadd.f32 %v4399_v16, %v4272_v35  ;;  %5262 = vmatpush1.bf16.msra.mxu1 %v5242_v25  ;;  %v7997_v7 = vld [vmem:[%s8757_s3 + $0x30] sm:$0xff]  }
 0x31b   : > { %8295 = vtanh.f32 %v4448_v17  ;;  %v4503_v9 = vpack.c.bf16 %v4493_v49, %v4492_v6 }
 0x31c   : > { %v4491_v10 = vmul.f32 %v4475_v2, %v4443_v3  ;;  %v4449_v0 = vmul.f32 0.5, %v4433_v57  ;;  %8297 = vtanh.f32 %v4446_v59  ;;  %v4431_v61 = vadd.f32 %v10538_v28, %v4400_v14  ;;  %v7985_v14 = vld [vmem:[%s11577_s13 + $0x10] ss:$8 sps:$4 sm:$0xff]  }
 0x31d   : > { %7597 = vmatmul.mubr.msk.bf16.vlgmr.msra.gmra.mxu1 %vm4795_vm5, %v7988_v47 }
 0x31e   : > { %8299 = vtanh.f32 %v4449_v0  ;;  %v4502_v34 = vpack.c.bf16 %v4491_v10, %v4490_v43  ;;  %v4447_v37 = vmul.f32 0.5, %v4431_v61  ;;  %5289 = vmatprep.mubr.bf16.mxu1 %v11754_v50  ;;  %v7994_v61 = vld [vmem:[%s11577_s13 + $0x4] ss:$8 sps:$4 sm:$0xff]  }
 0x320   : > { %7855 = vmatprep.mubr.msk.bf16.mxu0 %vm4545_vm14, %v4502_v34  ;;  %8301 = vtanh.f32 %v4447_v37 }
 0x321   : > { %7856 = vmatmul.mubr.msk.bf16.gmra.mxu0 %vm4545_vm14, %v4503_v9 }
 0x325   : > { %7598 = vmatmul.mubr.msk.bf16.gmra.mxu1 %vm4795_vm5, %v7989_v63 }
 0x326   : > { %5299 = vmatprep.mubr.bf16.mxu1 %v11754_v50 }
 0x328   : > { %v8296_v53 = vpop.eup %8295 }
 0x329   : > { %v8298_v44 = vpop.eup %8297  ;;  %v4480_v54 = vadd.f32 1.0, %v8296_v53 }
 0x32a   : > { %v4478_v45 = vadd.f32 1.0, %v8298_v44  ;;  %v7992_v44 = vld [vmem:[%s11577_s13] ss:$8 sps:$4 sm:$0xff]  }
 0x32b   : > { %v8300_v60 = vpop.eup %8299  ;;  %v4496_v11 = vmul.f32 %v4480_v54, %v4448_v17  ;;  %v7998_v17 = vld [vmem:[%s8757_s3 + $0x38] sm:$0xff]   ;;  %s11512_s3 = scalar_lea.vmem %s11585_s21, %s7389_s27 }
 0x32c   : > { %v4481_v26 = vadd.f32 1.0, %v8300_v60  ;;  %v4494_v27 = vmul.f32 %v4478_v45, %v4446_v59 }
 0x32d   : > { %v8302_v12 = vpop.eup %8301  ;;  %7599 = vmatmul.mubr.msk.bf16.gmra.mxu1 %vm4795_vm5, %v7990_v56 }
 0x32e   : > { %v4479_v32 = vadd.f32 1.0, %v8302_v12  ;;  %v4497_v36 = vmul.f32 %v4481_v26, %v4449_v0  ;;  %5309 = vmatprep.mubr.bf16.mxu1 %v11754_v50 }
 0x330   : > { %v4495_v28 = vmul.f32 %v4479_v32, %v4447_v37  ;;  %v4505_v8 = vpack.c.bf16 %v4497_v36, %v4496_v11 }
 0x332   : > { %v4504_v21 = vpack.c.bf16 %v4495_v28, %v4494_v27 }
 0x334   : > { %7859 = vmatprep.mubr.msk.bf16.mxu0 %vm4545_vm14, %v4504_v21 }
 0x335   : > { %7860 = vmatmul.mubr.msk.bf16.gmra.mxu0 %vm4545_vm14, %v4505_v8  ;;  %7600 = vmatmul.mubr.msk.bf16.gmra.mxu1 %vm4795_vm5, %v7991_v58 }
 0x336   : > { %5091 = vmatprep.mubr.bf16.mxu0 %v11754_v50  ;;  %5319 = vmatprep.mubr.bf16.mxu1 %v11754_v50 }
 0x33d   : > { %7601 = vmatmul.mubr.msk.bf16.gmra.mxu1 %vm4795_vm5, %v7995_v51 }
 0x33e   : > { %5329 = vmatprep.mubr.bf16.mxu1 %v11754_v50 }
 0x345   : > { %7602 = vmatmul.mubr.msk.bf16.gmra.mxu1 %vm4795_vm5, %v7996_v4 }
 0x346   : > { %5339 = vmatprep.mubr.bf16.mxu1 %v11754_v50 }
 0x34d   : > { %7603 = vmatmul.mubr.msk.bf16.gmra.mxu1 %vm4795_vm5, %v7997_v7 }
 0x34e   : > { %5349 = vmatprep.mubr.bf16.mxu1 %v11754_v50 }
 0x355   : > { %7604 = vmatmul.mubr.msk.bf16.gmra.mxu1 %vm4795_vm5, %v7998_v17 }
 0x3b4   : > { %v7849_v38 = vpop.f32.mrf.mxu0 }
 0x3b5   : > { %v4613_v23 = vadd.f32 %v7849_v38, %v10600_v55 }
 0x3b6   : > { %v4604_v3 = vpop.f32.mrf.mxu0 }
 0x3b7   : > { %v4605_v24 = vadd.f32 %v10600_v55, %v4604_v3  ;;  %v4669_v52 = vmul.f32 0.5, %v4613_v23 }
 0x3b8   : > { %v7850_v42 = vpop.f32.mrf.mxu0 }
 0x3b9   : > { %v4667_v31 = vmul.f32 0.5, %v4605_v24  ;;  %v4616_v30 = vadd.f32 %v7850_v42, %v10600_v55 }
 0x3ba   : > { %v4607_v39 = vpop.f32.mrf.mxu0 }
 0x3bb   : > { %8303 = vtanh.f32 %v4667_v31  ;;  %v4608_v15 = vadd.f32 %v10600_v55, %v4607_v39  ;;  %v4670_v33 = vmul.f32 0.5, %v4616_v30 }
 0x3bd   : > { %v4668_v5 = vmul.f32 0.5, %v4608_v15  ;;  %v7867_v15 = vpop.f32.mrf.mxu1 }
 0x3bf   : > { %8305 = vtanh.f32 %v4668_v5  ;;  %v4858_v7 = vpop.f32.mrf.mxu1 }
 0x3c0   : > { %8307 = vtanh.f32 %v4670_v33 }
 0x3c1   : > { %8309 = vtanh.f32 %v4669_v52 }
 0x3c8   : > { %v8304_v29 = vpop.eup %8303 }
 0x3c9   : > { %v4699_v19 = vadd.f32 1.0, %v8304_v29 }
 0x3cb   : > { %v4715_v16 = vmul.f32 %v4699_v19, %v4667_v31 }
 0x3cc   : > { %v8306_v62 = vpop.eup %8305  ;;  %v7853_v18 = vpop.f32.mrf.mxu0 }
 0x3cd   : > { %v4700_v35 = vadd.f32 1.0, %v8306_v62  ;;  %v8308_v41 = vpop.eup %8307  ;;  %v4629_v37 = vadd.f32 %v7853_v18, %v10600_v55 }
 0x3ce   : > { %v4620_v46 = vpop.f32.mrf.mxu0  ;;  %v8310_v57 = vpop.eup %8309  ;;  %v4702_v43 = vadd.f32 1.0, %v8308_v41 }
 0x3cf   : > { %v4716_v2 = vmul.f32 %v4700_v35, %v4668_v5  ;;  %v4621_v59 = vadd.f32 %v10600_v55, %v4620_v46  ;;  %v4701_v9 = vadd.f32 1.0, %v8310_v57  ;;  %v4673_v54 = vmul.f32 0.5, %v4629_v37 }
 0x3d0   : > { %v7854_v49 = vpop.f32.mrf.mxu0  ;;  %v4718_v60 = vmul.f32 %v4702_v43, %v4670_v33 }
 0x3d1   : > { %v5002_v10 = vpack.c.bf16 %v4716_v2, %v4715_v16  ;;  %v4671_v0 = vmul.f32 0.5, %v4621_v59  ;;  %v4632_v6 = vadd.f32 %v7854_v49, %v10600_v55  ;;  %v4717_v12 = vmul.f32 %v4701_v9, %v4669_v52  ;;  %v7868_v59 = vpop.f32.mrf.mxu1 }
 0x3d2   : > { %v4623_v34 = vpop.f32.mrf.mxu0 }
 0x3d3   : > { %8311 = vtanh.f32 %v4671_v0  ;;  %v4624_v53 = vadd.f32 %v10600_v55, %v4623_v34  ;;  %7578 = vmatmul.mubr.msk.bf16.vlgmr.msra.gmra.mxu0 %vm5034_vm8, %v5002_v10  ;;  %v4674_v26 = vmul.f32 0.5, %v4632_v6  ;;  %v5003_v32 = vpack.c.bf16 %v4718_v60, %v4717_v12  ;;  %v4861_v9 = vpop.f32.mrf.mxu1 }
 0x3d4   : > { %5429 = vmatpush1.bf16.msra.mxu0 %v7985_v14  ;;  %5101 = vmatprep.mubr.bf16.mxu0 %v11754_v50 }
 0x3d5   : > { %v4672_v45 = vmul.f32 0.5, %v4624_v53  ;;  %5430 = vmatprep.subr.bf16.mxu0 %v7994_v61  ;;  %v10648_v61 = vld [vmem:[%s11574_s10] ss:$0 sm:$0xff] }
 0x3d7   : > { %8313 = vtanh.f32 %v4672_v45 }
 0x3d8   : > { %5431 = vmatpush1.bf16.msra.mxu0 %v7992_v44  ;;  %8315 = vtanh.f32 %v4674_v26  ;;  %v4862_v44 = vadd.f32 %v10648_v61, %v4861_v9 }
 0x3d9   : > { %8317 = vtanh.f32 %v4673_v54 }
 0x3db   : > { %7579 = vmatmul.mubr.msk.bf16.gmra.mxu0 %vm5034_vm8, %v5003_v32 }
 0x3dc   : > { %5111 = vmatprep.mubr.bf16.mxu0 %v11754_v50 }
 0x3e0   : > { %v8312_v36 = vpop.eup %8311 }
 0x3e1   : > { %v7857_v27 = vpop.f32.mrf.mxu0  ;;  %v4703_v28 = vadd.f32 1.0, %v8312_v36 }
 0x3e2   : > { %v4645_v56 = vadd.f32 %v7857_v27, %v10600_v55  ;;  %v4867_v27 = vadd.f32 %v7867_v15, %v10648_v61 }
 0x3e3   : > { %v4636_v11 = vpop.f32.mrf.mxu0  ;;  %v4719_v25 = vmul.f32 %v4703_v28, %v4671_v0  ;;  %v4870_v28 = vadd.f32 %v7868_v59, %v10648_v61 }
 0x3e4   : > { %v8314_v21 = vpop.eup %8313  ;;  %v4637_v8 = vadd.f32 %v10600_v55, %v4636_v11  ;;  %v4677_v31 = vmul.f32 0.5, %v4645_v56 }
 0x3e5   : > { %v4704_v48 = vadd.f32 1.0, %v8314_v21  ;;  %v7858_v1 = vpop.f32.mrf.mxu0  ;;  %v8316_v22 = vpop.eup %8315 }
 0x3e6   : > { %v4675_v13 = vmul.f32 0.5, %v4637_v8  ;;  %v4648_v20 = vadd.f32 %v7858_v1, %v10600_v55  ;;  %v8318_v63 = vpop.eup %8317  ;;  %v4706_v51 = vadd.f32 1.0, %v8316_v22  ;;  %v4924_v22 = vmul.f32 0.5, %v4870_v28 }
 0x3e7   : > { %v4720_v40 = vmul.f32 %v4704_v48, %v4672_v45  ;;  %v4639_v47 = vpop.f32.mrf.mxu0  ;;  %v4705_v42 = vadd.f32 1.0, %v8318_v63  ;;  %v4923_v48 = vmul.f32 0.5, %v4867_v27 }
 0x3e8   : > { %8319 = vtanh.f32 %v4675_v13  ;;  %v4640_v58 = vadd.f32 %v10600_v55, %v4639_v47  ;;  %v4678_v3 = vmul.f32 0.5, %v4648_v20  ;;  %v4722_v30 = vmul.f32 %v4706_v51, %v4674_v26  ;;  %v7871_v26 = vpop.f32.mrf.mxu1 }
 0x3e9   : > { %v5004_v38 = vpack.c.bf16 %v4720_v40, %v4719_v25  ;;  %v4721_v39 = vmul.f32 %v4705_v42, %v4673_v54  ;;  %v4922_v54 = vmul.f32 0.5, %v4862_v44 }
 0x3ea   : > { %v4676_v24 = vmul.f32 0.5, %v4640_v58  ;;  %v4874_v32 = vpop.f32.mrf.mxu1 }
 0x3eb   : > { %7580 = vmatmul.mubr.msk.bf16.gmra.mxu0 %vm5034_vm8, %v5004_v38  ;;  %v5005_v23 = vpack.c.bf16 %v4722_v30, %v4721_v39  ;;  %v4875_v63 = vadd.f32 %v10648_v61, %v4874_v32 }
 0x3ec   : > { %8321 = vtanh.f32 %v4676_v24  ;;  %5121 = vmatprep.mubr.bf16.mxu0 %v11754_v50  ;;  %v7872_v11 = vpop.f32.mrf.mxu1 }
 0x3ed   : > { %8323 = vtanh.f32 %v4678_v3 }
 0x3ee   : > { %8325 = vtanh.f32 %v4677_v31  ;;  %v4877_v20 = vpop.f32.mrf.mxu1 }
 0x3ef   : > { %v4878_v51 = vadd.f32 %v10648_v61, %v4877_v20 }
 0x3f0   : > { %v7875_v38 = vpop.f32.mrf.mxu1 }
 0x3f1   : > { %v4926_v30 = vmul.f32 0.5, %v4878_v51 }
 0x3f3   : > { %7581 = vmatmul.mubr.msk.bf16.gmra.mxu0 %vm5034_vm8, %v5005_v23  ;;  %v4890_v23 = vpop.f32.mrf.mxu1 }
 0x3f4   : > { %5131 = vmatprep.mubr.bf16.mxu0 %v11754_v50 }
 0x3f5   : > { %v8320_v4 = vpop.eup %8319  ;;  %v7861_v33 = vpop.f32.mrf.mxu0 }
 0x3f6   : > { %v4707_v5 = vadd.f32 1.0, %v8320_v4  ;;  %v4661_v49 = vadd.f32 %v7861_v33, %v10600_v55  ;;  %v4883_v4 = vadd.f32 %v7871_v26, %v10648_v61  ;;  %v4886_v33 = vadd.f32 %v7872_v11, %v10648_v61 }
 0x3f7   : > { %v4652_v52 = vpop.f32.mrf.mxu0 }
 0x3f8   : > { %v4653_v19 = vadd.f32 %v10600_v55, %v4652_v52  ;;  %v4723_v46 = vmul.f32 %v4707_v5, %v4675_v13  ;;  %v4681_v37 = vmul.f32 0.5, %v4661_v49 }
 0x3f9   : > { %v8322_v29 = vpop.eup %8321  ;;  %v7862_v62 = vpop.f32.mrf.mxu0 }
 0x3fa   : > { %v4708_v17 = vadd.f32 1.0, %v8322_v29  ;;  %v8324_v18 = vpop.eup %8323  ;;  %v4679_v35 = vmul.f32 0.5, %v4653_v19  ;;  %v4664_v41 = vadd.f32 %v7862_v62, %v10600_v55  ;;  %v7876_v29 = vpop.f32.mrf.mxu1  ;;  %v4927_v19 = vmul.f32 0.5, %v4883_v4 }
 0x3fb   : > { %v4655_v2 = vpop.f32.mrf.mxu0  ;;  %v8326_v57 = vpop.eup %8325  ;;  %v4710_v43 = vadd.f32 1.0, %v8324_v18 }
 0x3fc   : > { %v4724_v16 = vmul.f32 %v4708_v17, %v4676_v24  ;;  %8327 = vtanh.f32 %v4679_v35  ;;  %v4656_v14 = vadd.f32 %v10600_v55, %v4655_v2  ;;  %v4682_v0 = vmul.f32 0.5, %v4664_v41 }
 0x3fd   : > { %v4709_v34 = vadd.f32 1.0, %v8326_v57  ;;  %v4726_v53 = vmul.f32 %v4710_v43, %v4678_v3  ;;  %v4859_v55 = vadd.f32 %v10648_v61, %v4858_v7  ;;  %v4925_v24 = vmul.f32 0.5, %v4875_v63 }
 0x3fe   : > { %v5006_v10 = vpack.c.bf16 %v4724_v16, %v4723_v46  ;;  %v4680_v6 = vmul.f32 0.5, %v4656_v14  ;;  %v4928_v17 = vmul.f32 0.5, %v4886_v33  ;;  %v4893_v46 = vpop.f32.mrf.mxu1  ;;  %v4891_v16 = vadd.f32 %v10648_v61, %v4890_v23 }
 0x3ff   : > { %v4725_v60 = vmul.f32 %v4709_v34, %v4677_v31  ;;  %v4921_v12 = vmul.f32 0.5, %v4859_v55  ;;  %v4894_v49 = vadd.f32 %v10648_v61, %v4893_v46  ;;  %v4902_v55 = vadd.f32 %v7876_v29, %v10648_v61 }
 0x400   : > { %7582 = vmatmul.mubr.msk.bf16.gmra.mxu0 %vm5034_vm8, %v5006_v10  ;;  %8329 = vtanh.f32 %v4680_v6  ;;  %v7879_v14 = vpop.f32.mrf.mxu1  ;;  %v4929_v43 = vmul.f32 0.5, %v4891_v16 }
 0x401   : > { %5141 = vmatprep.mubr.bf16.mxu0 %v11754_v50  ;;  %8331 = vtanh.f32 %v4682_v0  ;;  %v5007_v45 = vpack.c.bf16 %v4726_v53, %v4725_v60  ;;  %v4930_v34 = vmul.f32 0.5, %v4894_v49  ;;  %v4899_v53 = vadd.f32 %v7875_v38, %v10648_v61 }
 0x402   : > { %8333 = vtanh.f32 %v4681_v37  ;;  %v4932_v32 = vmul.f32 0.5, %v4902_v55  ;;  %v8014_v55 = vld [vmem:[%s11579_s15 + $0x20] ss:$8 sps:$4 sm:$0xff]  }
 0x403   : > { %8335 = vtanh.f32 %v4921_v12 }
 0x404   : > { %8337 = vtanh.f32 %v4922_v54 }
 0x405   : > { %8339 = vtanh.f32 %v4923_v48 }
 0x406   : > { %8341 = vtanh.f32 %v4924_v22 }
 0x407   : > { %8343 = vtanh.f32 %v4925_v24 }
 0x408   : > { %7583 = vmatmul.mubr.msk.bf16.gmra.mxu0 %vm5034_vm8, %v5007_v45  ;;  %8345 = vtanh.f32 %v4926_v30 }
 0x409   : > { %5151 = vmatprep.mubr.bf16.mxu0 %v11754_v50  ;;  %v8328_v36 = vpop.eup %8327  ;;  %8347 = vtanh.f32 %v4927_v19 }
 0x40a   : > { %v4711_v21 = vadd.f32 1.0, %v8328_v36  ;;  %8349 = vtanh.f32 %v4928_v17 }
 0x40b   : > { %8351 = vtanh.f32 %v4929_v43 }
 0x40c   : > { %v4727_v25 = vmul.f32 %v4711_v21, %v4679_v35  ;;  %8353 = vtanh.f32 %v4930_v34 }
 0x40d   : > { %v8330_v8 = vpop.eup %8329 }
 0x40e   : > { %v4712_v1 = vadd.f32 1.0, %v8330_v8  ;;  %v8332_v13 = vpop.eup %8331 }
 0x40f   : > { %v8334_v47 = vpop.eup %8333  ;;  %v4714_v56 = vadd.f32 1.0, %v8332_v13 }
 0x410   : > { %v4728_v40 = vmul.f32 %v4712_v1, %v4680_v6  ;;  %v4713_v3 = vadd.f32 1.0, %v8334_v47  ;;  %v8336_v42 = vpop.eup %8335 }
 0x411   : > { %v4730_v31 = vmul.f32 %v4714_v56, %v4682_v0  ;;  %v8338_v39 = vpop.eup %8337  ;;  %v4953_v52 = vadd.f32 1.0, %v8336_v42  ;;  %v4915_v56 = vadd.f32 %v7879_v14, %v10648_v61 }
 0x412   : > { %v5008_v58 = vpack.c.bf16 %v4728_v40, %v4727_v25  ;;  %v4729_v15 = vmul.f32 %v4713_v3, %v4681_v37  ;;  %v4954_v7 = vadd.f32 1.0, %v8338_v39  ;;  %v8340_v62 = vpop.eup %8339  ;;  %v4906_v37 = vpop.f32.mrf.mxu1 }
 0x413   : > { %v4969_v18 = vmul.f32 %v4953_v52, %v4921_v12  ;;  %v8342_v41 = vpop.eup %8341  ;;  %v4955_v2 = vadd.f32 1.0, %v8340_v62  ;;  %v4931_v12 = vmul.f32 0.5, %v4899_v53  ;;  %v4907_v21 = vadd.f32 %v10648_v61, %v4906_v37  ;;  %v8002_v52 = vld [vmem:[%s11579_s15 + $0x60] ss:$8 sps:$4 sm:$0xff]  }
 0x414   : > { %7584 = vmatmul.mubr.msk.bf16.gmra.mxu0 %vm5034_vm8, %v5008_v58  ;;  %v5009_v5 = vpack.c.bf16 %v4730_v31, %v4729_v15  ;;  %v4970_v35 = vmul.f32 %v4954_v7, %v4922_v54  ;;  %v4956_v59 = vadd.f32 1.0, %v8342_v41  ;;  %v8344_v10 = vpop.eup %8343  ;;  %v7880_v45 = vpop.f32.mrf.mxu1  ;;  %v4935_v42 = vmul.f32 0.5, %v4915_v56  ;;  %v7999_v15 = vld [vmem:[%s11579_s15 + $0x70] ss:$8 sps:$4 sm:$0xff]   ;;  %v8004_v7 = vld [vmem:[%s11579_s15 + $0x64] ss:$8 sps:$4 sm:$0xff]  }
 0x415   : > { %5161 = vmatprep.mubr.bf16.mxu0 %v11754_v50  ;;  %v4971_v0 = vmul.f32 %v4955_v2, %v4923_v48  ;;  %v8346_v9 = vpop.eup %8345  ;;  %v4957_v60 = vadd.f32 1.0, %v8344_v10  ;;  %8355 = vtanh.f32 %v4931_v12  ;;  %v4933_v13 = vmul.f32 0.5, %v4907_v21  ;;  %v8008_v2 = vld [vmem:[%s11579_s15 + $0x40] ss:$8 sps:$4 sm:$0xff]   ;;  %v8034_v21 = vld [vmem:[%s11579_s15 + $0xc4] ss:$8 sps:$4 sm:$0xff]  }
 0x416   : > { %v5360_v57 = vpack.c.bf16 %v4970_v35, %v4969_v18  ;;  %v4972_v6 = vmul.f32 %v4956_v59, %v4924_v22  ;;  %v4958_v26 = vadd.f32 1.0, %v8346_v9  ;;  %v8348_v54 = vpop.eup %8347  ;;  %v4909_v11 = vpop.f32.mrf.mxu1  ;;  %8357 = vtanh.f32 %v4932_v32  ;;  %v8005_v18 = vld [vmem:[%s11579_s15 + $0x50] ss:$8 sps:$4 sm:$0xff]   ;;  %v8007_v35 = vld [vmem:[%s11579_s15 + $0x54] ss:$8 sps:$4 sm:$0xff]  }
 0x417   : > { %v8350_v36 = vpop.eup %8349  ;;  %v4973_v27 = vmul.f32 %v4957_v60, %v4925_v24  ;;  %v4959_v8 = vadd.f32 1.0, %v8348_v54  ;;  %v4910_v22 = vadd.f32 %v10648_v61, %v4909_v11  ;;  %8359 = vtanh.f32 %v4933_v13  ;;  %v8010_v59 = vld [vmem:[%s11579_s15 + $0x44] ss:$8 sps:$4 sm:$0xff]   ;;  %v8013_v9 = vld [vmem:[%s11579_s15 + $0x34] ss:$8 sps:$4 sm:$0xff]  }
 0x418   : > { %v5361_v44 = vpack.c.bf16 %v4972_v6, %v4971_v0  ;;  %v4974_v28 = vmul.f32 %v4958_v26, %v4926_v30  ;;  %v4960_v48 = vadd.f32 1.0, %v8350_v36  ;;  %v8352_v20 = vpop.eup %8351  ;;  %v4918_v58 = vadd.f32 %v7880_v45, %v10648_v61  ;;  %v8001_v61 = vld [vmem:[%s11579_s15 + $0x74] ss:$8 sps:$4 sm:$0xff]   ;;  %v8017_v60 = vld [vmem:[%s11579_s15 + $0x10] ss:$8 sps:$4 sm:$0xff]  }
 0x419   : > { %v4975_v25 = vmul.f32 %v4959_v8, %v4927_v19  ;;  %v4934_v47 = vmul.f32 0.5, %v4910_v22  ;;  %v8354_v63 = vpop.eup %8353  ;;  %v4961_v38 = vadd.f32 1.0, %v8352_v20  ;;  %5953 = vmatprep.subr.bf16.mxu1 %v8001_v61  ;;  %v8019_v26 = vld [vmem:[%s11579_s15 + $0x14] ss:$8 sps:$4 sm:$0xff]   ;;  %v8020_v45 = vld [vmem:[%s11579_s15] ss:$8 sps:$4 sm:$0xff]  }
 0x41a   : > { %v5362_v1 = vpack.c.bf16 %v4974_v28, %v4973_v27  ;;  %v4976_v40 = vmul.f32 %v4960_v48, %v4928_v17  ;;  %v4962_v3 = vadd.f32 1.0, %v8354_v63  ;;  %v4936_v23 = vmul.f32 0.5, %v4918_v58  ;;  %5954 = vmatpush1.bf16.msra.mxu1 %v7999_v15  ;;  %v8023_v54 = vld [vmem:[%s11579_s15 + $0xf0] ss:$8 sps:$4 sm:$0xff]   ;;  %v8026_v36 = vld [vmem:[%s11579_s15 + $0xe0] ss:$8 sps:$4 sm:$0xff]  }
 0x41b   : > { %8361 = vtanh.f32 %v4934_v47  ;;  %v4977_v30 = vmul.f32 %v4961_v38, %v4929_v43  ;;  %5955 = vmatprep.subr.bf16.mxu1 %v8004_v7  ;;  %v8028_v27 = vld [vmem:[%s11579_s15 + $0xe4] ss:$8 sps:$4 sm:$0xff]   ;;  %v8031_v28 = vld [vmem:[%s11579_s15 + $0xd4] ss:$8 sps:$4 sm:$0xff]   ;;  %v8029_v11 = vld [vmem:[%s11579_s15 + $0xd0] ss:$8 sps:$4 sm:$0xff]  }
 0x41c   : > { %7585 = vmatmul.mubr.msk.bf16.gmra.mxu0 %vm5034_vm8, %v5009_v5  ;;  %v5363_v51 = vpack.c.bf16 %v4976_v40, %v4975_v25  ;;  %v4978_v39 = vmul.f32 %v4962_v3, %v4930_v34  ;;  %8363 = vtanh.f32 %v4935_v42  ;;  %v8011_v34 = vld [vmem:[%s11579_s15 + $0x30] ss:$8 sps:$4 sm:$0xff]   ;;  %v8032_v8 = vld [vmem:[%s11579_s15 + $0xc0] ss:$8 sps:$4 sm:$0xff]   ;;  %v8037_v48 = vld [vmem:[%s11579_s15 + $0xb4] ss:$8 sps:$4 sm:$0xff]  }
 0x41d   : > { %5448 = vmatprep.mubr.bf16.mxu0 %v11754_v50  ;;  %8365 = vtanh.f32 %v4936_v23  ;;  %v8038_v22 = vld [vmem:[%s11579_s15 + $0xa0] ss:$8 sps:$4 sm:$0xff]   ;;  %v8043_v25 = vld [vmem:[%s11579_s15 + $0x94] ss:$8 sps:$4 sm:$0xff]  }
 0x41e   : > { %v5364_v5 = vpack.c.bf16 %v4978_v39, %v4977_v30  ;;  %5956 = vmatpush1.bf16.msra.mxu1 %v8002_v52  ;;  %v8044_v58 = vld [vmem:[%s11579_s15 + $0x80] ss:$8 sps:$4 sm:$0xff]  }
 0x41f   : > { %5957 = vmatprep.subr.bf16.mxu1 %v8007_v35 }
 0x422   : > { %v8356_v24 = vpop.eup %8355  ;;  %5958 = vmatpush1.bf16.msra.mxu1 %v8005_v18 }
 0x423   : > { %v8358_v31 = vpop.eup %8357  ;;  %v4963_v4 = vadd.f32 1.0, %v8356_v24  ;;  %5959 = vmatprep.subr.bf16.mxu1 %v8010_v59  ;;  %v10797_v24 = vpop.f32.mrf.mxu1 }
 0x424   : > { %7609 = vmatmul.mubr.msk.bf16.vlgmr.msra.gmra.mxu0 %vm5034_vm8, %v5360_v57  ;;  %v4964_v33 = vadd.f32 1.0, %v8358_v31  ;;  %v8360_v29 = vpop.eup %8359 }
 0x425   : > { %5458 = vmatprep.mubr.bf16.mxu0 %v11754_v50  ;;  %v4979_v19 = vmul.f32 %v4963_v4, %v4931_v12  ;;  %v4965_v46 = vadd.f32 1.0, %v8360_v29  ;;  %v8022_v12 = vld [vmem:[%s11579_s15 + $0x4] ss:$8 sps:$4 sm:$0xff]   ;;  %v10801_v31 = vpop.f32.mrf.mxu1 }
 0x426   : > { %v4980_v17 = vmul.f32 %v4964_v33, %v4932_v32  ;;  %5960 = vmatpush1.bf16.msra.mxu1 %v8008_v2  ;;  %v8025_v32 = vld [vmem:[%s11579_s15 + $0xf4] ss:$8 sps:$4 sm:$0xff]  }
 0x427   : > { %v4981_v49 = vmul.f32 %v4965_v46, %v4933_v13  ;;  %5961 = vmatprep.subr.bf16.mxu1 %v8013_v9  ;;  %v8040_v13 = vld [vmem:[%s11579_s15 + $0xa4] ss:$8 sps:$4 sm:$0xff]   ;;  %v10805_v39 = vpop.f32.mrf.mxu1  ;;  %v8049_v46 = vld [vmem:[%s11581_s17 + $0x74] ss:$8 sps:$4 sm:$0xff]  }
 0x428   : > { %v8362_v62 = vpop.eup %8361  ;;  %v5365_v41 = vpack.c.bf16 %v4980_v17, %v4979_v19  ;;  %6414 = vmatprep.subr.bf16.mxu0 %v8049_v46  ;;  %v8071_v46 = vld [vmem:[%s11581_s17 + $0xf0] ss:$8 sps:$4 sm:$0xff]  }
 0x429   : > { %v4966_v16 = vadd.f32 1.0, %v8362_v62  ;;  %v8364_v57 = vpop.eup %8363  ;;  %v10811_v61 = vpop.f32.mrf.mxu1 }
 0x42a   : > { %v8366_v43 = vpop.eup %8365  ;;  %v4967_v10 = vadd.f32 1.0, %v8364_v57  ;;  %5962 = vmatpush1.bf16.msra.mxu1 %v8011_v34  ;;  %v8050_v57 = vld [vmem:[%s11581_s17 + $0x60] ss:$8 sps:$4 sm:$0xff]   ;;  %v8058_v34 = vld [vmem:[%s11581_s17 + $0x44] ss:$8 sps:$4 sm:$0xff]  }
 0x42b   : > { %v4982_v14 = vmul.f32 %v4966_v16, %v4934_v47  ;;  %v4968_v0 = vadd.f32 1.0, %v8366_v43  ;;  %v8041_v47 = vld [vmem:[%s11579_s15 + $0x90] ss:$8 sps:$4 sm:$0xff]   ;;  %v8052_v16 = vld [vmem:[%s11581_s17 + $0x64] ss:$8 sps:$4 sm:$0xff]  }
 0x42c   : > { %7610 = vmatmul.mubr.msk.bf16.gmra.mxu0 %vm5034_vm8, %v5361_v44  ;;  %v4983_v37 = vmul.f32 %v4967_v10, %v4935_v42 }
 0x42d   : > { %5468 = vmatprep.mubr.bf16.mxu0 %v11754_v50  ;;  %v5366_v6 = vpack.c.bf16 %v4982_v14, %v4981_v49  ;;  %v4984_v53 = vmul.f32 %v4968_v0, %v4936_v23  ;;  %v8055_v14 = vld [vmem:[%s11581_s17 + $0x54] ss:$8 sps:$4 sm:$0xff]   ;;  %v8053_v0 = vld [vmem:[%s11581_s17 + $0x50] ss:$8 sps:$4 sm:$0xff]  }
 0x42f   : > { %v5367_v44 = vpack.c.bf16 %v4984_v53, %v4983_v37  ;;  %v8056_v53 = vld [vmem:[%s11581_s17 + $0x40] ss:$8 sps:$4 sm:$0xff]  }
 0x434   : > { %7611 = vmatmul.mubr.msk.bf16.gmra.mxu0 %vm5034_vm8, %v5362_v1  ;;  %v8035_v1 = vld [vmem:[%s11579_s15 + $0xb0] ss:$8 sps:$4 sm:$0xff]  }
 0x435   : > { %5478 = vmatprep.mubr.bf16.mxu0 %v11754_v50 }
 0x43c   : > { %7612 = vmatmul.mubr.msk.bf16.gmra.mxu0 %vm5034_vm8, %v5363_v51  ;;  %v8046_v51 = vld [vmem:[%s11579_s15 + $0x84] ss:$8 sps:$4 sm:$0xff]  }
 0x43d   : > { %5488 = vmatprep.mubr.bf16.mxu0 %v11754_v50 }
 0x444   : > { %7613 = vmatmul.mubr.msk.bf16.gmra.mxu0 %vm5034_vm8, %v5364_v5  ;;  %v10817_v5 = vpop.f32.mrf.mxu1 }
 0x445   : > { %5498 = vmatprep.mubr.bf16.mxu0 %v11754_v50 }
 0x446   : > { %v10823_v29 = vpop.f32.mrf.mxu1 }
 0x448   : > { %v10827_v17 = vpop.f32.mrf.mxu1 }
 0x44a   : > { %v10831_v18 = vpop.f32.mrf.mxu1 }
 0x44c   : > { %7614 = vmatmul.mubr.msk.bf16.gmra.mxu0 %vm5034_vm8, %v5365_v41  ;;  %v8047_v41 = vld [vmem:[%s11581_s17 + $0x70] ss:$8 sps:$4 sm:$0xff]   ;;  %v10846_v59 = vpop.f32.mrf.mxu1 }
 0x44d   : > { %5508 = vmatprep.mubr.bf16.mxu0 %v11754_v50  ;;  %6415 = vmatpush1.bf16.msra.mxu0 %v8047_v41 }
 0x44e   : > { %6416 = vmatprep.subr.bf16.mxu0 %v8052_v16  ;;  %v10858_v10 = vpop.f32.mrf.mxu1 }
 0x450   : > { %v10870_v37 = vpop.f32.mrf.mxu1 }
 0x451   : > { %6417 = vmatpush1.bf16.msra.mxu0 %v8050_v57 }
 0x452   : > { %6418 = vmatprep.subr.bf16.mxu0 %v8055_v14  ;;  %v5561_v14 = vld [vmem:[%s11578_s14] sm:$0x3] }
 0x454   : > { %7615 = vmatmul.mubr.msk.bf16.gmra.mxu0 %vm5034_vm8, %v5366_v6 }
 0x455   : > { %5518 = vmatprep.mubr.bf16.mxu0 %v11754_v50  ;;  %v8016_v50 = vld [vmem:[%s11579_s15 + $0x24] ss:$8 sps:$4 sm:$0xff]   ;;  %6419 = vmatpush1.bf16.msra.mxu0 %v8053_v0 }
 0x456   : > { %5963 = vmatprep.subr.bf16.mxu1 %v8016_v50  ;;  %6420 = vmatprep.subr.bf16.mxu0 %v8058_v34 }
 0x457   : > { %5964 = vmatpush1.bf16.msra.mxu1 %v8014_v55  ;;  %v8061_v55 = vld [vmem:[%s11581_s17 + $0x34] ss:$8 sps:$4 sm:$0xff]  }
 0x458   : > { %5965 = vmatprep.subr.bf16.mxu1 %v8019_v26  ;;  %v8064_v26 = vld [vmem:[%s11581_s17 + $0x24] ss:$8 sps:$4 sm:$0xff]  }
 0x459   : > { %6421 = vmatpush1.bf16.msra.mxu0 %v8056_v53 }
 0x45a   : > { %6422 = vmatprep.subr.bf16.mxu0 %v8061_v55 }
 0x45b   : > { %5966 = vmatpush1.bf16.msra.mxu1 %v8017_v60  ;;  %v8059_v60 = vld [vmem:[%s11581_s17 + $0x30] ss:$8 sps:$4 sm:$0xff]  }
 0x45c   : > { %7616 = vmatmul.mubr.msk.bf16.gmra.mxu0 %vm5034_vm8, %v5367_v44  ;;  %5967 = vmatprep.subr.bf16.mxu1 %v8022_v12  ;;  %v10880_v44 = vpop.f32.mrf.mxu1 }
 0x45d   : > { %6423 = vmatpush1.bf16.msra.mxu0 %v8059_v60 }
 0x45e   : > { %v10890_v12 = vpop.f32.mrf.mxu1  ;;  %6424 = vmatprep.subr.bf16.mxu0 %v8064_v26 }
 0x45f   : > { %5968 = vmatpush1.bf16.msra.mxu1 %v8020_v45 }
 0x460   : > { %5969 = vmatprep.subr.bf16.mxu1 %v8025_v32  ;;  %v8067_v32 = vld [vmem:[%s11581_s17 + $0x14] ss:$8 sps:$4 sm:$0xff]  }
 0x463   : > { %5970 = vmatpush2.bf16.msra.mxu1 %v8023_v54  ;;  %v8062_v54 = vld [vmem:[%s11581_s17 + $0x20] ss:$8 sps:$4 sm:$0xff]  }
 0x464   : > { %5971 = vmatprep.subr.bf16.mxu1 %v8028_v27  ;;  %v10900_v27 = vpop.f32.mrf.mxu1  ;;  %6425 = vmatpush1.bf16.msra.mxu0 %v8062_v54 }
 0x465   : > { %6426 = vmatprep.subr.bf16.mxu0 %v8067_v32 }
 0x467   : > { %5972 = vmatpush2.bf16.msra.mxu1 %v8026_v36 }
 0x468   : > { %5973 = vmatprep.subr.bf16.mxu1 %v8031_v28 }
 0x46b   : > { %5974 = vmatpush2.bf16.msra.mxu1 %v8029_v11  ;;  %v8065_v11 = vld [vmem:[%s11581_s17 + $0x10] ss:$8 sps:$4 sm:$0xff]  }
 0x46c   : > { %5975 = vmatprep.subr.bf16.mxu1 %v8034_v21  ;;  %v5563_v21 = vlaneseq  ;;  %6427 = vmatpush1.bf16.msra.mxu0 %v8065_v11 }
 0x46f   : > { %5976 = vmatpush2.bf16.msra.mxu1 %v8032_v8  ;;  %v8070_v8 = vld [vmem:[%s11581_s17 + $0x4] ss:$8 sps:$4 sm:$0xff]  }
 0x470   : > { %5977 = vmatprep.subr.bf16.mxu1 %v8037_v48  ;;  %6428 = vmatprep.subr.bf16.mxu0 %v8070_v8 }
 0x473   : > { %5978 = vmatpush2.bf16.msra.mxu1 %v8035_v1  ;;  %v10912_v1 = vpop.f32.mrf.mxu1 }
 0x474   : > { %5979 = vmatprep.subr.bf16.mxu1 %v8040_v13  ;;  %v8068_v13 = vld [vmem:[%s11581_s17] ss:$8 sps:$4 sm:$0xff]  }
 0x475   : > { %6429 = vmatpush1.bf16.msra.mxu0 %v8068_v13 }
 0x477   : > { %5980 = vmatpush2.bf16.msra.mxu1 %v8038_v22 }
 0x478   : > { %5981 = vmatprep.subr.bf16.mxu1 %v8043_v25  ;;  %v5564_v25 = vshrl.u32 %v5563_v21, 7 }
 0x47a   : > { %v10931_v16 = vsub.s32 0, %v5564_v25  ;;  %v10938_v0 = vsub.s32 1, %v5564_v25 }
 0x47b   : > { %5982 = vmatpush2.bf16.msra.mxu1 %v8041_v47  ;;  %v8073_v47 = vld [vmem:[%s11581_s17 + $0xf4] ss:$8 sps:$4 sm:$0xff]  }
 0x47c   : > { %5983 = vmatprep.subr.bf16.mxu1 %v8046_v51  ;;  %v10924_v51 = vpop.f32.mrf.mxu1  ;;  %6430 = vmatprep.subr.bf16.mxu0 %v8073_v47  ;;  %v10947_v60 = vrot.slane %v5561_v14, %v10931_v16  ;;  %v10952_v11 = vrot.slane %v5561_v14, %v10938_v0 }
 0x47d   : > { %6431 = vmatpush2.bf16.msra.mxu0 %v8071_v46 }
 0x47e   : > { %v10940_v34 = vpop.f32.mrf.mxu1 }
 0x47f   : > { %5984 = vmatpush2.bf16.msra.mxu1 %v8044_v58 }
 0x480   : > { %v10954_v21 = vpop.f32.mrf.mxu1 }
 0x493   : > { %v10773_v20 = vpop.f32.mrf.mxu0 }
 0x494   : > { %v5282_v55 = vadd.f32 %v10797_v24, %v10773_v20 }
 0x495   : > { %v10778_v40 = vpop.f32.mrf.mxu0 }
 0x496   : > { %v5284_v54 = vadd.f32 %v10801_v31, %v10778_v40 }
 0x497   : > { %v10783_v63 = vpop.f32.mrf.mxu0 }
 0x498   : > { %v5286_v13 = vadd.f32 %v10805_v39, %v10783_v63 }
 0x499   : > { %v10785_v56 = vpop.f32.mrf.mxu0 }
 0x49a   : > { %v5288_v47 = vadd.f32 %v10811_v61, %v10785_v56 }
 0x49b   : > { %v10793_v38 = vpop.f32.mrf.mxu0 }
 0x49c   : > { %v5292_v14 = vadd.f32 %v10817_v5, %v10793_v38 }
 0x49d   : > { %v10795_v3 = vpop.f32.mrf.mxu0 }
 0x49e   : > { %v5294_v56 = vadd.f32 %v10823_v29, %v10795_v3 }
 0x49f   : > { %v10799_v42 = vpop.f32.mrf.mxu0 }
 0x4a0   : > { %v5296_v38 = vadd.f32 %v10827_v17, %v10799_v42 }
 0x4a1   : > { %v10803_v30 = vpop.f32.mrf.mxu0 }
 0x4a2   : > { %v5298_v29 = vadd.f32 %v10831_v18, %v10803_v30 }
 0x4ab   : > { %v10807_v23 = vpop.f32.mrf.mxu0 }
 0x4ad   : > { %v10809_v15 = vpop.f32.mrf.mxu0 }
 0x4af   : > { %v10813_v4 = vpop.f32.mrf.mxu0 }
 0x4b1   : > { %v10815_v33 = vpop.f32.mrf.mxu0 }
 0x4b3   : > { %v10819_v52 = vpop.f32.mrf.mxu0 }
 0x4b5   : > { %v10821_v7 = vpop.f32.mrf.mxu0 }
 0x4b7   : > { %v10825_v19 = vpop.f32.mrf.mxu0 }
 0x4b9   : > { %v10829_v62 = vpop.f32.mrf.mxu0 }
 0x4c0   : > { %v10833_v35 = vpop.f32.mrf.mxu0 }
 0x4c2   : > { %v10844_v2 = vpop.f32.mrf.mxu0 }
 0x4c4   : > { %v10851_v49 = vpop.f32.mrf.mxu0 }
 0x4c6   : > { %v10856_v43 = vpop.f32.mrf.mxu0 }
 0x4c8   : > { %v10863_v6 = vpop.f32.mrf.mxu0 }
 0x4ca   : > { %v10868_v9 = vpop.f32.mrf.mxu0 }
 0x4cc   : > { %v10878_v50 = vpop.f32.mrf.mxu0 }
 0x4ce   : > { %v10888_v45 = vpop.f32.mrf.mxu0 }
 0x4d4   : > { %v10898_v36 = vpop.f32.mrf.mxu0 }
 0x4d6   : > { %v10902_v28 = vpop.f32.mrf.mxu0 }
 0x4d8   : > { %v10910_v48 = vpop.f32.mrf.mxu0 }
 0x4da   : > { %v10914_v22 = vpop.f32.mrf.mxu0 }
 0x4dc   : > { %v10922_v58 = vpop.f32.mrf.mxu0 }
 0x4de   : > { %v10926_v41 = vpop.f32.mrf.mxu0 }
 0x4e0   : > { %v10933_v57 = vpop.f32.mrf.mxu0 }
 0x4e2   : > { %v10942_v53 = vpop.f32.mrf.mxu0 }
 0x4e4   : > { %v5450_v26 = vpop.f32.mrf.mxu0 }
 0x4e5   : > { %v5529_v32 = vadd.f32 %v5450_v26, %v5282_v55  ;;  %v10966_v55 = vpop.f32.mrf.mxu1 }
 0x4e6   : > { %v5452_v8 = vpop.f32.mrf.mxu0 }
 0x4e7   : > { %v5573_v25 = vadd.f32 %v10947_v60, %v5529_v32  ;;  %v5530_v20 = vadd.f32 %v5452_v8, %v5284_v54  ;;  %v10979_v5 = vpop.f32.mrf.mxu1 }
 0x4e8   : > { %v5454_v24 = vpop.f32.mrf.mxu0 }
 0x4e9   : > { %v10961_v46 = vmul.f32 0.5, %v5573_v25  ;;  %v5574_v40 = vadd.f32 %v10952_v11, %v5530_v20  ;;  %v5531_v31 = vadd.f32 %v5454_v24, %v5286_v13 }
 0x4ea   : > { %v5456_v26 = vpop.f32.mrf.mxu0 }
 0x4eb   : > { %8367 = vtanh.f32 %v10961_v46  ;;  %v10969_v63 = vmul.f32 0.5, %v5574_v40  ;;  %v5575_v39 = vadd.f32 %v10947_v60, %v5531_v31  ;;  %v5532_v54 = vadd.f32 %v5456_v26, %v5288_v47 }
 0x4ec   : > { %v5460_v32 = vpop.f32.mrf.mxu0  ;;  %v5302_v31 = vadd.f32 %v10846_v59, %v10807_v23 }
 0x4ed   : > { %v10974_v61 = vmul.f32 0.5, %v5575_v39  ;;  %v5576_v8 = vadd.f32 %v10952_v11, %v5532_v54  ;;  %v5533_v13 = vadd.f32 %v5460_v32, %v5292_v14  ;;  %8369 = vtanh.f32 %v10969_v63  ;;  %v10994_v14 = vpop.f32.mrf.mxu1 }
 0x4ee   : > { %v5462_v25 = vpop.f32.mrf.mxu0  ;;  %v5304_v32 = vadd.f32 %v10858_v10, %v10809_v15  ;;  %v5306_v15 = vadd.f32 %v10870_v37, %v10813_v4 }
 0x4ef   : > { %8371 = vtanh.f32 %v10974_v61  ;;  %v10983_v20 = vmul.f32 0.5, %v5576_v8  ;;  %v5577_v24 = vadd.f32 %v10947_v60, %v5533_v13  ;;  %v5534_v3 = vadd.f32 %v5462_v25, %v5294_v56  ;;  %v11005_v23 = vpop.f32.mrf.mxu1 }
 0x4f0   : > { %v5464_v47 = vpop.f32.mrf.mxu0 }
 0x4f1   : > { %8373 = vtanh.f32 %v10983_v20  ;;  %v10989_v40 = vmul.f32 0.5, %v5577_v24  ;;  %v5578_v42 = vadd.f32 %v10952_v11, %v5534_v3  ;;  %v5535_v17 = vadd.f32 %v5464_v47, %v5296_v38 }
 0x4f2   : > { %v5466_v26 = vpop.f32.mrf.mxu0 }
 0x4f3   : > { %8375 = vtanh.f32 %v10989_v40  ;;  %v10997_v39 = vmul.f32 0.5, %v5578_v42  ;;  %v5579_v30 = vadd.f32 %v10947_v60, %v5535_v17  ;;  %v5536_v18 = vadd.f32 %v5466_v26, %v5298_v29 }
 0x4f4   : > { %v5470_v54 = vpop.f32.mrf.mxu0  ;;  %v5308_v17 = vadd.f32 %v10880_v44, %v10815_v33  ;;  %v5314_v33 = vadd.f32 %v10900_v27, %v10821_v7 }
 0x4f5   : > { %v11002_v56 = vmul.f32 0.5, %v5579_v30  ;;  %v5580_v8 = vadd.f32 %v10952_v11, %v5536_v18  ;;  %v5537_v13 = vadd.f32 %v5470_v54, %v5302_v31  ;;  %8377 = vtanh.f32 %v10997_v39  ;;  %v11020_v31 = vpop.f32.mrf.mxu1 }
 0x4f6   : > { %v5472_v59 = vpop.f32.mrf.mxu0  ;;  %v5312_v54 = vadd.f32 %v10890_v12, %v10819_v52 }
 0x4f7   : > { %8379 = vtanh.f32 %v11002_v56  ;;  %v11009_v38 = vmul.f32 0.5, %v5580_v8  ;;  %v5581_v25 = vadd.f32 %v10947_v60, %v5537_v13  ;;  %v5538_v24 = vadd.f32 %v5472_v59, %v5304_v32 }
 0x4f8   : > { %v8368_v3 = vpop.eup %8367  ;;  %v5474_v10 = vpop.f32.mrf.mxu0 }
 0x4f9   : > { %v5669_v29 = vadd.f32 1.0, %v8368_v3  ;;  %8381 = vtanh.f32 %v11009_v38  ;;  %v11015_v47 = vmul.f32 0.5, %v5581_v25  ;;  %v5582_v42 = vadd.f32 %v10952_v11, %v5538_v24  ;;  %v11031_v3 = vpop.f32.mrf.mxu1 }
 0x4fa   : > { %v5539_v26 = vadd.f32 %v5474_v10, %v5306_v15  ;;  %v5476_v30 = vpop.f32.mrf.mxu0  ;;  %v8370_v18 = vpop.eup %8369 }
 0x4fb   : > { %8383 = vtanh.f32 %v11015_v47  ;;  %v11025_v4 = vmul.f32 0.5, %v5582_v42  ;;  %v5540_v8 = vadd.f32 %v5476_v30, %v5308_v17  ;;  %v5701_v44 = vmul.f32 %v5669_v29, %v10961_v46 }
 0x4fc   : > { %v8372_v37 = vpop.eup %8371  ;;  %v5583_v32 = vadd.f32 %v10947_v60, %v5539_v26  ;;  %v5480_v13 = vpop.f32.mrf.mxu0  ;;  %v5670_v52 = vadd.f32 1.0, %v8370_v18  ;;  %v5316_v29 = vadd.f32 %v10912_v1, %v10825_v19  ;;  %v5318_v18 = vadd.f32 %v10924_v51, %v10829_v62 }
 0x4fd   : > { %v5671_v59 = vadd.f32 1.0, %v8372_v37  ;;  %v5541_v25 = vadd.f32 %v5480_v13, %v5312_v54  ;;  %8385 = vtanh.f32 %v11025_v4  ;;  %v5584_v15 = vadd.f32 %v10952_v11, %v5540_v8 }
 0x4fe   : > { %v8374_v24 = vpop.eup %8373  ;;  %v11034_v12 = vmul.f32 0.5, %v5583_v32  ;;  %v5482_v10 = vpop.f32.mrf.mxu0  ;;  %v5702_v8 = vmul.f32 %v5670_v52, %v10969_v63 }
 0x4ff   : > { %v5703_v42 = vmul.f32 %v5671_v59, %v10974_v61  ;;  %v5672_v17 = vadd.f32 1.0, %v8374_v24  ;;  %v5585_v7 = vadd.f32 %v10947_v60, %v5541_v25  ;;  %v5542_v27 = vadd.f32 %v5482_v10, %v5314_v33  ;;  %v11049_v32 = vpop.f32.mrf.mxu1 }
 0x500   : > { %v8376_v46 = vpop.eup %8375  ;;  %8387 = vtanh.f32 %v11034_v12  ;;  %v11042_v26 = vmul.f32 0.5, %v5584_v15  ;;  %v5484_v30 = vpop.f32.mrf.mxu0  ;;  %v5322_v59 = vadd.f32 %v10940_v34, %v10833_v35 }
 0x501   : > { %v5733_v54 = vpack.c.bf16 %v5703_v42, %v5701_v44  ;;  %v5704_v37 = vmul.f32 %v5672_v17, %v10983_v20  ;;  %v11047_v61 = vmul.f32 0.5, %v5585_v7  ;;  %v5586_v19 = vadd.f32 %v10952_v11, %v5542_v27  ;;  %v11063_v35 = vpop.f32.mrf.mxu1 }
 0x502   : > { %8389 = vtanh.f32 %v11042_v26  ;;  %v5543_v1 = vadd.f32 %v5484_v30, %v5316_v29  ;;  %v5486_v13 = vpop.f32.mrf.mxu0  ;;  %v8378_v33 = vpop.eup %8377  ;;  %v5673_v62 = vadd.f32 1.0, %v8376_v46  ;;  %v5324_v17 = vadd.f32 %v10954_v21, %v10844_v2 }
 0x503   : > { %v5544_v51 = vadd.f32 %v5486_v13, %v5318_v18  ;;  %8391 = vtanh.f32 %v11047_v61  ;;  %v11057_v20 = vmul.f32 0.5, %v5586_v19  ;;  %v5734_v24 = vpack.c.bf16 %v5704_v37, %v5702_v8 }
 0x504   : > { %v8380_v44 = vpop.eup %8379  ;;  %v5587_v25 = vadd.f32 %v10947_v60, %v5543_v1  ;;  %v5490_v63 = vpop.f32.mrf.mxu0  ;;  %v5674_v34 = vadd.f32 1.0, %v8378_v33  ;;  %v5326_v2 = vadd.f32 %v10966_v55, %v10851_v49  ;;  %v5705_v21 = vmul.f32 %v5673_v62, %v10989_v40 }
 0x505   : > { %v5675_v52 = vadd.f32 1.0, %v8380_v44  ;;  %v5588_v15 = vadd.f32 %v10952_v11, %v5544_v51  ;;  %v5545_v10 = vadd.f32 %v5490_v63, %v5322_v59  ;;  %8393 = vtanh.f32 %v11057_v20  ;;  %5985 = vmatprep.mubr.bf16.mxu1 %v5734_v24 }
 0x506   : > { %v8382_v42 = vpop.eup %8381  ;;  %v11066_v7 = vmul.f32 0.5, %v5587_v25  ;;  %v5492_v27 = vpop.f32.mrf.mxu0  ;;  %5986 = vmatmul.mubr.bf16.vlgmr.msra.gmra.mxu1 %v5733_v54  ;;  %v5328_v1 = vadd.f32 %v10979_v5, %v10856_v43  ;;  %v5706_v33 = vmul.f32 %v5674_v34, %v10997_v39  ;;  %v5332_v51 = vadd.f32 %v10994_v14, %v10863_v6 }
 0x507   : > { %v5707_v46 = vmul.f32 %v5675_v52, %v11002_v56  ;;  %v5676_v29 = vadd.f32 1.0, %v8382_v42  ;;  %v11069_v30 = vmul.f32 0.5, %v5588_v15  ;;  %v5589_v18 = vadd.f32 %v10947_v60, %v5545_v10  ;;  %v11082_v54 = vpop.f32.mrf.mxu1 }
 0x508   : > { %v8384_v37 = vpop.eup %8383  ;;  %8395 = vtanh.f32 %v11066_v7  ;;  %v5546_v8 = vadd.f32 %v5492_v27, %v5324_v17  ;;  %v5494_v19 = vpop.f32.mrf.mxu0  ;;  %v5334_v24 = vadd.f32 %v11005_v23, %v10868_v9  ;;  %v5336_v27 = vadd.f32 %v11020_v31, %v10878_v50 }
 0x509   : > { %v5708_v56 = vmul.f32 %v5676_v29, %v11009_v38  ;;  %8397 = vtanh.f32 %v11069_v30  ;;  %v11080_v13 = vmul.f32 0.5, %v5589_v18  ;;  %v5547_v55 = vadd.f32 %v5494_v19, %v5326_v2  ;;  %v5347_v10 = vpop.f32.mrf.mxu1 }
 0x50a   : > { %v5590_v49 = vadd.f32 %v10952_v11, %v5546_v8  ;;  %v5496_v40 = vpop.f32.mrf.mxu0  ;;  %v5735_v59 = vpack.c.bf16 %v5707_v46, %v5705_v21  ;;  %v8386_v62 = vpop.eup %8385  ;;  %v5677_v43 = vadd.f32 1.0, %v8384_v37  ;;  %v5338_v8 = vadd.f32 %v11031_v3, %v10888_v45 }
 0x50b   : > { %v5548_v5 = vadd.f32 %v5496_v40, %v5328_v1  ;;  %8399 = vtanh.f32 %v11080_v13  ;;  %v5591_v44 = vadd.f32 %v10947_v60, %v5547_v55  ;;  %v5736_v63 = vpack.c.bf16 %v5708_v56, %v5706_v33  ;;  %v5351_v19 = vpop.f32.mrf.mxu1 }
 0x50c   : > { %v11089_v38 = vmul.f32 0.5, %v5590_v49  ;;  %v5500_v25 = vpop.f32.mrf.mxu0  ;;  %v5678_v42 = vadd.f32 1.0, %v8386_v62  ;;  %v5709_v29 = vmul.f32 %v5677_v43, %v11015_v47  ;;  %v5342_v55 = vadd.f32 %v11049_v32, %v10898_v36 }
 0x50d   : > { %v8388_v39 = vpop.eup %8387  ;;  %v5592_v52 = vadd.f32 %v10952_v11, %v5548_v5  ;;  %v5549_v15 = vadd.f32 %v5500_v25, %v5332_v51  ;;  %v11096_v14 = vmul.f32 0.5, %v5591_v44  ;;  %5995 = vmatprep.mubr.bf16.mxu1 %v5736_v63  ;;  %v5344_v40 = vadd.f32 %v11063_v35, %v10902_v28  ;;  %v5353_v25 = vpop.f32.mrf.mxu1 }
 0x50e   : > { %v5679_v6 = vadd.f32 1.0, %v8388_v39  ;;  %8401 = vtanh.f32 %v11089_v38  ;;  %v5502_v17 = vpop.f32.mrf.mxu0  ;;  %5996 = vmatmul.mubr.bf16.gmra.mxu1 %v5735_v59  ;;  %v5710_v1 = vmul.f32 %v5678_v42, %v11025_v4  ;;  %v5346_v44 = vadd.f32 %v11082_v54, %v10910_v48 }
 0x50f   : > { %v8390_v34 = vpop.eup %8389  ;;  %v11100_v46 = vmul.f32 0.5, %v5592_v52  ;;  %v5593_v9 = vadd.f32 %v10947_v60, %v5549_v15  ;;  %v5550_v23 = vadd.f32 %v5502_v17, %v5334_v24  ;;  %8403 = vtanh.f32 %v11096_v14 }
 0x510   : > { %v5711_v18 = vmul.f32 %v5679_v6, %v11034_v12  ;;  %v5680_v37 = vadd.f32 1.0, %v8390_v34  ;;  %v5504_v2 = vpop.f32.mrf.mxu0  ;;  %v8392_v21 = vpop.eup %8391  ;;  %v5348_v42 = vadd.f32 %v5347_v10, %v10914_v22 }
 0x511   : > { %8405 = vtanh.f32 %v11100_v46  ;;  %v11109_v50 = vmul.f32 0.5, %v5593_v9  ;;  %v5594_v31 = vadd.f32 %v10952_v11, %v5550_v23  ;;  %v5551_v12 = vadd.f32 %v5504_v2, %v5336_v27  ;;  %v5355_v23 = vpop.f32.mrf.mxu1 }
 0x512   : > { %v5712_v47 = vmul.f32 %v5680_v37, %v11042_v26  ;;  %v5506_v56 = vpop.f32.mrf.mxu0  ;;  %v5737_v33 = vpack.c.bf16 %v5711_v18, %v5709_v29  ;;  %v8394_v49 = vpop.eup %8393  ;;  %v5681_v59 = vadd.f32 1.0, %v8392_v21 }
 0x513   : > { %8407 = vtanh.f32 %v11109_v50  ;;  %v11117_v45 = vmul.f32 0.5, %v5594_v31  ;;  %v5552_v3 = vadd.f32 %v5506_v56, %v5338_v8  ;;  %v5595_v4 = vadd.f32 %v10947_v60, %v5551_v12 }
 0x514   : > { %v5510_v62 = vpop.f32.mrf.mxu0  ;;  %v5738_v26 = vpack.c.bf16 %v5712_v47, %v5710_v1  ;;  %v5682_v43 = vadd.f32 1.0, %v8394_v49  ;;  %v5713_v6 = vmul.f32 %v5681_v59, %v11047_v61  ;;  %v5354_v1 = vadd.f32 %v5353_v25, %v10926_v41 }
 0x515   : > { %v8396_v51 = vpop.eup %8395  ;;  %8409 = vtanh.f32 %v11117_v45  ;;  %v5596_v5 = vadd.f32 %v10952_v11, %v5552_v3  ;;  %v5553_v36 = vadd.f32 %v5510_v62, %v5342_v55  ;;  %v11126_v39 = vmul.f32 0.5, %v5595_v4 }
 0x516   : > { %v8398_v32 = vpop.eup %8397  ;;  %v5683_v63 = vadd.f32 1.0, %v8396_v51  ;;  %6005 = vmatprep.mubr.bf16.mxu1 %v5738_v26  ;;  %v5512_v28 = vpop.f32.mrf.mxu0  ;;  %v5714_v34 = vmul.f32 %v5682_v43, %v11057_v20  ;;  %v5356_v41 = vadd.f32 %v5355_v23, %v10933_v57 }
 0x517   : > { %v5684_v35 = vadd.f32 1.0, %v8398_v32  ;;  %v11128_v24 = vmul.f32 0.5, %v5596_v5  ;;  %v5597_v52 = vadd.f32 %v10947_v60, %v5553_v36  ;;  %v5554_v15 = vadd.f32 %v5512_v28, %v5344_v40  ;;  %6006 = vmatmul.mubr.bf16.gmra.mxu1 %v5737_v33  ;;  %v5357_v33 = vpop.f32.mrf.mxu1 }
 0x518   : > { %v5715_v17 = vmul.f32 %v5683_v63, %v11066_v7  ;;  %8411 = vtanh.f32 %v11126_v39  ;;  %v5514_v48 = vpop.f32.mrf.mxu0  ;;  %v8400_v54 = vpop.eup %8399  ;;  %v5352_v7 = vadd.f32 %v5351_v19, %v10922_v58  ;;  %v5358_v5 = vadd.f32 %v5357_v33, %v10942_v53 }
 0x519   : > { %v5716_v27 = vmul.f32 %v5684_v35, %v11069_v30  ;;  %8413 = vtanh.f32 %v11128_v24  ;;  %v11138_v9 = vmul.f32 0.5, %v5597_v52  ;;  %v5598_v29 = vadd.f32 %v10952_v11, %v5554_v15 }
 0x51a   : > { %v5555_v22 = vadd.f32 %v5514_v48, %v5346_v44  ;;  %v5516_v10 = vpop.f32.mrf.mxu0  ;;  %v5739_v61 = vpack.c.bf16 %v5715_v17, %v5713_v6  ;;  %v5685_v21 = vadd.f32 1.0, %v8400_v54 }
 0x51b   : > { %v8402_v18 = vpop.eup %8401  ;;  %v5556_v37 = vadd.f32 %v5516_v10, %v5348_v42  ;;  %v5740_v2 = vpack.c.bf16 %v5716_v27, %v5714_v34  ;;  %8415 = vtanh.f32 %v11138_v9  ;;  %v11143_v20 = vmul.f32 0.5, %v5598_v29 }
 0x51c   : > { %v5599_v30 = vadd.f32 %v10947_v60, %v5555_v22  ;;  %v5520_v8 = vpop.f32.mrf.mxu0  ;;  %v8404_v31 = vpop.eup %8403  ;;  %v5686_v58 = vadd.f32 1.0, %v8402_v18  ;;  %v5717_v26 = vmul.f32 %v5685_v21, %v11080_v13 }
 0x51d   : > { %v5600_v47 = vadd.f32 %v10952_v11, %v5556_v37  ;;  %v5557_v12 = vadd.f32 %v5520_v8, %v5352_v7  ;;  %6015 = vmatprep.mubr.bf16.mxu1 %v5740_v2  ;;  %v5687_v19 = vadd.f32 1.0, %v8404_v31  ;;  %8417 = vtanh.f32 %v11143_v20 }
 0x51e   : > { %v8406_v56 = vpop.eup %8405  ;;  %v5631_v49 = vmul.f32 0.5, %v5599_v30  ;;  %v5522_v55 = vpop.f32.mrf.mxu0  ;;  %v5718_v25 = vmul.f32 %v5686_v58, %v11089_v38 }
 0x51f   : > { %v5688_v3 = vadd.f32 1.0, %v8406_v56  ;;  %v5632_v40 = vmul.f32 0.5, %v5600_v47  ;;  %v5601_v59 = vadd.f32 %v10947_v60, %v5557_v12  ;;  %v5558_v4 = vadd.f32 %v5522_v55, %v5354_v1  ;;  %6016 = vmatmul.mubr.bf16.gmra.mxu1 %v5739_v61 }
 0x520   : > { %v8408_v62 = vpop.eup %8407  ;;  %v5719_v51 = vmul.f32 %v5687_v19, %v11096_v14  ;;  %8419 = vtanh.f32 %v5631_v49  ;;  %v5524_v43 = vpop.f32.mrf.mxu0 }
 0x521   : > { %v5720_v36 = vmul.f32 %v5688_v3, %v11100_v46  ;;  %8421 = vtanh.f32 %v5632_v40  ;;  %v5633_v32 = vmul.f32 0.5, %v5601_v59  ;;  %v5602_v63 = vadd.f32 %v10952_v11, %v5558_v4 }
 0x522   : > { %v8410_v44 = vpop.eup %8409  ;;  %v5559_v28 = vadd.f32 %v5524_v43, %v5356_v41  ;;  %v5526_v35 = vpop.f32.mrf.mxu0  ;;  %v5741_v57 = vpack.c.bf16 %v5719_v51, %v5717_v26  ;;  %v5689_v52 = vadd.f32 1.0, %v8408_v62  ;;  %v8077_v41 = vld [vmem:[%s11581_s17 + $0xd0] ss:$8 sps:$4 sm:$0xff]   ;;  %v8079_v26 = vld [vmem:[%s11581_s17 + $0xd4] ss:$8 sps:$4 sm:$0xff]  }
 0x523   : > { %v5560_v13 = vadd.f32 %v5526_v35, %v5358_v5  ;;  %8423 = vtanh.f32 %v5633_v32  ;;  %v5634_v14 = vmul.f32 0.5, %v5602_v63  ;;  %v5742_v42 = vpack.c.bf16 %v5720_v36, %v5718_v25  ;;  %v8080_v51 = vld [vmem:[%s11581_s17 + $0xc0] ss:$8 sps:$4 sm:$0xff]   ;;  %v8082_v43 = vld [vmem:[%s11581_s17 + $0xc4] ss:$8 sps:$4 sm:$0xff]  }
 0x524   : > { %v5603_v15 = vadd.f32 %v10947_v60, %v5559_v28  ;;  %v5690_v6 = vadd.f32 1.0, %v8410_v44  ;;  %v5721_v27 = vmul.f32 %v5689_v52, %v11109_v50  ;;  %v8083_v5 = vld [vmem:[%s11581_s17 + $0xb0] ss:$8 sps:$4 sm:$0xff]   ;;  %v8085_v36 = vld [vmem:[%s11581_s17 + $0xb4] ss:$8 sps:$4 sm:$0xff]  }
 0x525   : > { %v8412_v53 = vpop.eup %8411  ;;  %v5604_v46 = vadd.f32 %v10952_v11, %v5560_v13  ;;  %8425 = vtanh.f32 %v5634_v14  ;;  %6025 = vmatprep.mubr.bf16.mxu1 %v5742_v42  ;;  %v8088_v44 = vld [vmem:[%s11581_s17 + $0xa4] ss:$8 sps:$4 sm:$0xff]   ;;  %v8089_v25 = vld [vmem:[%s11581_s17 + $0x90] ss:$8 sps:$4 sm:$0xff]   ;;  %v8091_v63 = vld [vmem:[%s11581_s17 + $0x94] ss:$8 sps:$4 sm:$0xff]  }
 0x526   : > { %v8414_v17 = vpop.eup %8413  ;;  %v5691_v48 = vadd.f32 1.0, %v8412_v53  ;;  %v5635_v38 = vmul.f32 0.5, %v5603_v15  ;;  %v5722_v60 = vmul.f32 %v5690_v6, %v11117_v45  ;;  %v8092_v28 = vld [vmem:[%s11581_s17 + $0x80] ss:$8 sps:$4 sm:$0xff]   ;;  %v8094_v35 = vld [vmem:[%s11581_s17 + $0x84] ss:$8 sps:$4 sm:$0xff]  }
 0x527   : > { %v5692_v54 = vadd.f32 1.0, %v8414_v17  ;;  %v5636_v34 = vmul.f32 0.5, %v5604_v46  ;;  %6026 = vmatmul.mubr.bf16.gmra.mxu1 %v5741_v57  ;;  %v8095_v57 = vld [vmem:[%s11583_s19 + $0x78] sm:$0xff]   ;;  %v8097_v13 = vld [vmem:[%s11583_s19 + $0x70] sm:$0xff]   ;;  %v8099_v15 = vld [vmem:[%s11583_s19 + $0x68] sm:$0xff]  }
 0x528   : > { %v5723_v23 = vmul.f32 %v5691_v48, %v11126_v39  ;;  %8427 = vtanh.f32 %v5635_v38  ;;  %v8416_v29 = vpop.eup %8415  ;;  %v8096_v52 = vld [vmem:[%s11583_s19 + $0x38] sm:$0xff]   ;;  %7739 = vmatprep.subr.bf16.mxu1 %v8095_v57  ;;  %v8100_v42 = vld [vmem:[%s11583_s19 + $0x28] sm:$0xff]   ;;  %v8101_v53 = vld [vmem:[%s11583_s19 + $0x60] sm:$0xff]  }
 0x529   : > { %v5724_v22 = vmul.f32 %v5692_v54, %v11128_v24  ;;  %8429 = vtanh.f32 %v5636_v34  ;;  %v5693_v18 = vadd.f32 1.0, %v8416_v29  ;;  %7740 = vmatpush3.bf16.msra.mxu1 %v8096_v52  ;;  %v8102_v6 = vld [vmem:[%s11583_s19 + $0x20] sm:$0xff]   ;;  %v8103_v46 = vld [vmem:[%s11583_s19 + $0x58] sm:$0xff]  }
 0x52a   : > { %v5743_v11 = vpack.c.bf16 %v5723_v23, %v5721_v27  ;;  %v8418_v10 = vpop.eup %8417  ;;  %7741 = vmatprep.subr.bf16.mxu1 %v8097_v13  ;;  %v5781_v17 = vld [vmem:[%s11580_s16] sm:$0x3] }
 0x52b   : > { %v5744_v61 = vpack.c.bf16 %v5724_v22, %v5722_v60  ;;  %v5694_v37 = vadd.f32 1.0, %v8418_v10  ;;  %v5725_v50 = vmul.f32 %v5693_v18, %v11138_v9  ;;  %v11238_v48 = vrot.slane %v5781_v17, %v10931_v16 }
 0x52d   : > { %v8420_v7 = vpop.eup %8419  ;;  %6035 = vmatprep.mubr.bf16.mxu1 %v5744_v61  ;;  %v5726_v45 = vmul.f32 %v5694_v37, %v11143_v20  ;;  %v8074_v20 = vld [vmem:[%s11581_s17 + $0xe0] ss:$8 sps:$4 sm:$0xff]  }
 0x52e   : > { %v8422_v2 = vpop.eup %8421  ;;  %v5695_v21 = vadd.f32 1.0, %v8420_v7 }
 0x52f   : > { %v5696_v30 = vadd.f32 1.0, %v8422_v2  ;;  %6036 = vmatmul.mubr.bf16.gmra.mxu1 %v5743_v11 }
 0x530   : > { %v5727_v39 = vmul.f32 %v5695_v21, %v5631_v49  ;;  %v8424_v8 = vpop.eup %8423 }
 0x531   : > { %v5728_v31 = vmul.f32 %v5696_v30, %v5632_v40  ;;  %v5697_v12 = vadd.f32 1.0, %v8424_v8  ;;  %v8076_v40 = vld [vmem:[%s11581_s17 + $0xe4] ss:$8 sps:$4 sm:$0xff]  }
 0x532   : > { %v5745_v24 = vpack.c.bf16 %v5727_v39, %v5725_v50  ;;  %v8426_v1 = vpop.eup %8425  ;;  %6432 = vmatprep.subr.bf16.mxu0 %v8076_v40 }
 0x533   : > { %v5746_v47 = vpack.c.bf16 %v5728_v31, %v5726_v45  ;;  %v5698_v33 = vadd.f32 1.0, %v8426_v1  ;;  %v5729_v3 = vmul.f32 %v5697_v12, %v5633_v32  ;;  %6433 = vmatpush2.bf16.msra.mxu0 %v8074_v20  ;;  %v8086_v32 = vld [vmem:[%s11581_s17 + $0xa0] ss:$8 sps:$4 sm:$0xff]  }
 0x534   : > { %6434 = vmatprep.subr.bf16.mxu0 %v8079_v26 }
 0x535   : > { %v8428_v56 = vpop.eup %8427  ;;  %6045 = vmatprep.mubr.bf16.mxu1 %v5746_v47  ;;  %v5730_v4 = vmul.f32 %v5698_v33, %v5634_v14  ;;  %v8098_v14 = vld [vmem:[%s11583_s19 + $0x30] sm:$0xff]  }
 0x536   : > { %v8430_v58 = vpop.eup %8429  ;;  %v5699_v19 = vadd.f32 1.0, %v8428_v56  ;;  %7742 = vmatpush3.bf16.msra.mxu1 %v8098_v14 }
 0x537   : > { %v5700_v55 = vadd.f32 1.0, %v8430_v58  ;;  %6046 = vmatmul.mubr.bf16.gmra.mxu1 %v5745_v24  ;;  %6435 = vmatpush2.bf16.msra.mxu0 %v8077_v41 }
 0x538   : > { %v5731_v59 = vmul.f32 %v5699_v19, %v5635_v38  ;;  %6436 = vmatprep.subr.bf16.mxu0 %v8082_v43  ;;  %7743 = vmatprep.subr.bf16.mxu1 %v8099_v15  ;;  %v11241_v38 = vrot.slane %v5781_v17, %v10938_v0 }
 0x539   : > { %v5732_v9 = vmul.f32 %v5700_v55, %v5636_v34 }
 0x53a   : > { %v5747_v49 = vpack.c.bf16 %v5731_v59, %v5729_v3  ;;  %7744 = vmatpush3.bf16.msra.mxu1 %v8100_v42 }
 0x53b   : > { %v5748_v62 = vpack.c.bf16 %v5732_v9, %v5730_v4  ;;  %6437 = vmatpush2.bf16.msra.mxu0 %v8080_v51  ;;  %7745 = vmatprep.subr.bf16.mxu1 %v8101_v53 }
 0x53c   : > { %6438 = vmatprep.subr.bf16.mxu0 %v8085_v36 }
 0x53d   : > { %6055 = vmatprep.mubr.bf16.mxu1 %v5748_v62 }
 0x53e   : > { %7746 = vmatpush3.bf16.msra.mxu1 %v8102_v6 }
 0x53f   : > { %6056 = vmatmul.mubr.bf16.gmra.mxu1 %v5747_v49  ;;  %6439 = vmatpush2.bf16.msra.mxu0 %v8083_v5 }
 0x540   : > { %6440 = vmatprep.subr.bf16.mxu0 %v8088_v44  ;;  %7747 = vmatprep.subr.bf16.mxu1 %v8103_v46 }
 0x543   : > { %6441 = vmatpush2.bf16.msra.mxu0 %v8086_v32 }
 0x544   : > { %6442 = vmatprep.subr.bf16.mxu0 %v8091_v63 }
 0x547   : > { %6443 = vmatpush2.bf16.msra.mxu0 %v8089_v25 }
 0x548   : > { %6444 = vmatprep.subr.bf16.mxu0 %v8094_v35 }
 0x54b   : > { %6445 = vmatpush2.bf16.msra.mxu0 %v8092_v28 }
 0x5c6   : > { %v5987_v54 = vpop.f32.mrf.mxu1 }
 0x5c7   : > { %v5988_v34 = vadd.f32 %v5987_v54, %v11238_v48 }
 0x5c8   : > { %v5989_v27 = vpop.f32.mrf.mxu1 }
 0x5c9   : > { %v5990_v23 = vadd.f32 %v5989_v27, %v11241_v38  ;;  %v6066_v29 = vmul.f32 0.5, %v5988_v34 }
 0x5ca   : > { %v5991_v60 = vpop.f32.mrf.mxu1 }
 0x5cb   : > { %v6067_v22 = vmul.f32 0.5, %v5990_v23  ;;  %v5992_v11 = vadd.f32 %v5991_v60, %v11238_v48 }
 0x5cc   : > { %v5993_v10 = vpop.f32.mrf.mxu1 }
 0x5cd   : > { %8431 = vtanh.f32 %v6067_v22  ;;  %v6068_v61 = vmul.f32 0.5, %v5992_v11  ;;  %v5994_v18 = vadd.f32 %v5993_v10, %v11241_v38 }
 0x5ce   : > { %8433 = vtanh.f32 %v6066_v29  ;;  %v5997_v7 = vpop.f32.mrf.mxu1 }
 0x5cf   : > { %8435 = vtanh.f32 %v6068_v61  ;;  %v6069_v37 = vmul.f32 0.5, %v5994_v18  ;;  %v5998_v2 = vadd.f32 %v5997_v7, %v11238_v48 }
 0x5d0   : > { %v5999_v21 = vpop.f32.mrf.mxu1 }
 0x5d1   : > { %8437 = vtanh.f32 %v6069_v37  ;;  %v11248_v30 = vmul.f32 0.5, %v5998_v2  ;;  %v6000_v50 = vadd.f32 %v5999_v21, %v11241_v38 }
 0x5d2   : > { %v6001_v39 = vpop.f32.mrf.mxu1 }
 0x5d3   : > { %v11251_v8 = vmul.f32 0.5, %v6000_v50  ;;  %v6002_v45 = vadd.f32 %v6001_v39, %v11238_v48  ;;  %8439 = vtanh.f32 %v11248_v30 }
 0x5d4   : > { %v6003_v31 = vpop.f32.mrf.mxu1 }
 0x5d5   : > { %v6072_v24 = vmul.f32 0.5, %v6002_v45  ;;  %v6004_v1 = vadd.f32 %v6003_v31, %v11241_v38  ;;  %8441 = vtanh.f32 %v11251_v8 }
 0x5d7   : > { %v6007_v47 = vpop.f32.mrf.mxu1  ;;  %8443 = vtanh.f32 %v6072_v24  ;;  %v6073_v12 = vmul.f32 0.5, %v6004_v1 }
 0x5d8   : > { %v6008_v56 = vadd.f32 %v6007_v47, %v11238_v48 }
 0x5d9   : > { %v6009_v33 = vpop.f32.mrf.mxu1  ;;  %8445 = vtanh.f32 %v6073_v12 }
 0x5da   : > { %v6010_v58 = vadd.f32 %v6009_v33, %v11241_v38  ;;  %v8432_v19 = vpop.eup %8431  ;;  %v11259_v55 = vmul.f32 0.5, %v6008_v56 }
 0x5db   : > { %v6011_v3 = vpop.f32.mrf.mxu1  ;;  %v8434_v59 = vpop.eup %8433  ;;  %v6131_v20 = vadd.f32 1.0, %v8432_v19 }
 0x5dc   : > { %v11261_v4 = vmul.f32 0.5, %v6010_v58  ;;  %v8436_v9 = vpop.eup %8435  ;;  %v6012_v49 = vadd.f32 %v6011_v3, %v11238_v48  ;;  %v6130_v51 = vadd.f32 1.0, %v8434_v59 }
 0x5dd   : > { %v6013_v62 = vpop.f32.mrf.mxu1  ;;  %v6132_v40 = vadd.f32 1.0, %v8436_v9  ;;  %v6163_v28 = vmul.f32 %v6131_v20, %v6067_v22 }
 0x5de   : > { %8447 = vtanh.f32 %v11261_v4  ;;  %v6014_v41 = vadd.f32 %v6013_v62, %v11241_v38  ;;  %v8438_v26 = vpop.eup %8437  ;;  %v11267_v43 = vmul.f32 0.5, %v6012_v49  ;;  %v6162_v52 = vmul.f32 %v6130_v51, %v6066_v29 }
 0x5df   : > { %8449 = vtanh.f32 %v11259_v55  ;;  %v6017_v5 = vpop.f32.mrf.mxu1  ;;  %v6133_v36 = vadd.f32 1.0, %v8438_v26  ;;  %v6164_v25 = vmul.f32 %v6132_v40, %v6068_v61 }
 0x5e0   : > { %v11269_v32 = vmul.f32 0.5, %v6014_v41  ;;  %v6018_v44 = vadd.f32 %v6017_v5, %v11238_v48  ;;  %8451 = vtanh.f32 %v11267_v43  ;;  %v8440_v57 = vpop.eup %8439 }
 0x5e1   : > { %v6019_v63 = vpop.f32.mrf.mxu1  ;;  %v6165_v35 = vmul.f32 %v6133_v36, %v6069_v37  ;;  %v6194_v17 = vpack.c.bf16 %v6164_v25, %v6162_v52  ;;  %v6134_v22 = vadd.f32 1.0, %v8440_v57 }
 0x5e2   : > { %8453 = vtanh.f32 %v11269_v32  ;;  %v11274_v13 = vmul.f32 0.5, %v6018_v44  ;;  %v6020_v14 = vadd.f32 %v6019_v63, %v11241_v38  ;;  %v8442_v42 = vpop.eup %8441 }
 0x5e3   : > { %v6021_v15 = vpop.f32.mrf.mxu1  ;;  %v6195_v6 = vpack.c.bf16 %v6165_v35, %v6163_v28  ;;  %v6135_v11 = vadd.f32 1.0, %v8442_v42  ;;  %v6166_v45 = vmul.f32 %v6134_v22, %v11248_v30 }
 0x5e4   : > { %v6022_v53 = vadd.f32 %v6021_v15, %v11238_v48  ;;  %v8444_v46 = vpop.eup %8443  ;;  %v11278_v54 = vmul.f32 0.5, %v6020_v14  ;;  %8455 = vtanh.f32 %v11274_v13 }
 0x5e5   : > { %v6023_v34 = vpop.f32.mrf.mxu1  ;;  %v6136_v27 = vadd.f32 1.0, %v8444_v46  ;;  %6446 = vmatprep.mubr.bf16.mxu0 %v6195_v6  ;;  %v6167_v31 = vmul.f32 %v6135_v11, %v11251_v8 }
 0x5e6   : > { %v11281_v23 = vmul.f32 0.5, %v6022_v53  ;;  %v6024_v29 = vadd.f32 %v6023_v34, %v11241_v38  ;;  %v8446_v60 = vpop.eup %8445  ;;  %8457 = vtanh.f32 %v11278_v54  ;;  %6447 = vmatmul.mubr.bf16.vlgmr.msra.gmra.mxu0 %v6194_v17 }
 0x5e7   : > { %v6027_v10 = vpop.f32.mrf.mxu1  ;;  %v6137_v61 = vadd.f32 1.0, %v8446_v60  ;;  %v6168_v7 = vmul.f32 %v6136_v27, %v6072_v24 }
 0x5e8   : > { %8459 = vtanh.f32 %v11281_v23  ;;  %v11286_v18 = vmul.f32 0.5, %v6024_v29  ;;  %v6028_v37 = vadd.f32 %v6027_v10, %v11238_v48 }
 0x5e9   : > { %v6029_v2 = vpop.f32.mrf.mxu1  ;;  %v6169_v21 = vmul.f32 %v6137_v61, %v6073_v12  ;;  %v6196_v12 = vpack.c.bf16 %v6168_v7, %v6166_v45 }
 0x5ea   : > { %8461 = vtanh.f32 %v11286_v18  ;;  %v6030_v50 = vadd.f32 %v6029_v2, %v11241_v38  ;;  %v11293_v1 = vmul.f32 0.5, %v6028_v37 }
 0x5eb   : > { %v8448_v39 = vpop.eup %8447  ;;  %v6031_v47 = vpop.f32.mrf.mxu1  ;;  %v6197_v19 = vpack.c.bf16 %v6169_v21, %v6167_v31 }
 0x5ec   : > { %v8450_v56 = vpop.eup %8449  ;;  %v11295_v33 = vmul.f32 0.5, %v6030_v50  ;;  %v6032_v24 = vadd.f32 %v6031_v47, %v11238_v48  ;;  %v6139_v59 = vadd.f32 1.0, %v8448_v39  ;;  %8463 = vtanh.f32 %v11293_v1 }
 0x5ed   : > { %v6033_v58 = vpop.f32.mrf.mxu1  ;;  %v8452_v3 = vpop.eup %8451  ;;  %v6138_v49 = vadd.f32 1.0, %v8450_v56  ;;  %6456 = vmatprep.mubr.bf16.mxu0 %v6197_v19 }
 0x5ee   : > { %v11299_v9 = vmul.f32 0.5, %v6032_v24  ;;  %v6034_v30 = vadd.f32 %v6033_v58, %v11241_v38  ;;  %v6140_v62 = vadd.f32 1.0, %v8452_v3  ;;  %8465 = vtanh.f32 %v11295_v33  ;;  %6457 = vmatmul.mubr.bf16.gmra.mxu0 %v6196_v12 }
 0x5ef   : > { %v8454_v8 = vpop.eup %8453  ;;  %v6037_v20 = vpop.f32.mrf.mxu1  ;;  %v6171_v36 = vmul.f32 %v6139_v59, %v11261_v4  ;;  %v6170_v28 = vmul.f32 %v6138_v49, %v11259_v55 }
 0x5f0   : > { %v6141_v40 = vadd.f32 1.0, %v8454_v8  ;;  %8467 = vtanh.f32 %v11299_v9  ;;  %v11304_v41 = vmul.f32 0.5, %v6034_v30  ;;  %v6038_v26 = vadd.f32 %v6037_v20, %v11238_v48 }
 0x5f1   : > { %v6172_v51 = vmul.f32 %v6140_v62, %v11267_v43  ;;  %v6039_v5 = vpop.f32.mrf.mxu1  ;;  %v8456_v63 = vpop.eup %8455 }
 0x5f2   : > { %v6173_v44 = vmul.f32 %v6141_v40, %v11269_v32  ;;  %8469 = vtanh.f32 %v11304_v41  ;;  %v6040_v25 = vadd.f32 %v6039_v5, %v11241_v38  ;;  %v11313_v35 = vmul.f32 0.5, %v6038_v26 }
 0x5f3   : > { %v6041_v57 = vpop.f32.mrf.mxu1  ;;  %v8458_v52 = vpop.eup %8457  ;;  %v6198_v32 = vpack.c.bf16 %v6172_v51, %v6170_v28  ;;  %v6142_v27 = vadd.f32 1.0, %v8456_v63 }
 0x5f4   : > { %v11315_v14 = vmul.f32 0.5, %v6040_v25  ;;  %v6042_v43 = vadd.f32 %v6041_v57, %v11238_v48  ;;  %v6199_v15 = vpack.c.bf16 %v6173_v44, %v6171_v36  ;;  %v6143_v4 = vadd.f32 1.0, %v8458_v52 }
 0x5f5   : > { %v8460_v42 = vpop.eup %8459  ;;  %v6043_v53 = vpop.f32.mrf.mxu1  ;;  %v6174_v45 = vmul.f32 %v6142_v27, %v11274_v13 }
 0x5f6   : > { %v6144_v6 = vadd.f32 1.0, %v8460_v42  ;;  %8471 = vtanh.f32 %v11315_v14  ;;  %v11319_v46 = vmul.f32 0.5, %v6042_v43  ;;  %v6044_v55 = vadd.f32 %v6043_v53, %v11241_v38  ;;  %6466 = vmatprep.mubr.bf16.mxu0 %v6199_v15 }
 0x5f7   : > { %v8462_v17 = vpop.eup %8461  ;;  %8473 = vtanh.f32 %v11313_v35  ;;  %v6047_v34 = vpop.f32.mrf.mxu1  ;;  %6467 = vmatmul.mubr.bf16.gmra.mxu0 %v6198_v32  ;;  %v6175_v22 = vmul.f32 %v6143_v4, %v11278_v54 }
 0x5f8   : > { %v6145_v29 = vadd.f32 1.0, %v8462_v17  ;;  %8475 = vtanh.f32 %v11319_v46  ;;  %v11324_v60 = vmul.f32 0.5, %v6044_v55  ;;  %v6048_v11 = vadd.f32 %v6047_v34, %v11238_v48 }
 0x5f9   : > { %v6049_v10 = vpop.f32.mrf.mxu1  ;;  %v6176_v61 = vmul.f32 %v6144_v6, %v11281_v23  ;;  %v8464_v2 = vpop.eup %8463 }
 0x5fa   : > { %v6177_v7 = vmul.f32 %v6145_v29, %v11286_v18  ;;  %8477 = vtanh.f32 %v11324_v60  ;;  %v6050_v37 = vadd.f32 %v6049_v10, %v11241_v38  ;;  %v11332_v21 = vmul.f32 0.5, %v6048_v11 }
 0x5fb   : > { %v6051_v50 = vpop.f32.mrf.mxu1  ;;  %v8466_v39 = vpop.eup %8465  ;;  %v6200_v58 = vpack.c.bf16 %v6176_v61, %v6174_v45  ;;  %v6146_v12 = vadd.f32 1.0, %v8464_v2 }
 0x5fc   : > { %v11335_v31 = vmul.f32 0.5, %v6050_v37  ;;  %v6052_v54 = vadd.f32 %v6051_v50, %v11238_v48  ;;  %v6201_v47 = vpack.c.bf16 %v6177_v7, %v6175_v22  ;;  %8479 = vtanh.f32 %v11332_v21 }
 0x5fd   : > { %v8468_v56 = vpop.eup %8467  ;;  %v6053_v23 = vpop.f32.mrf.mxu1  ;;  %v6147_v3 = vadd.f32 1.0, %v8466_v39  ;;  %v6178_v5 = vmul.f32 %v6146_v12, %v11293_v1 }
 0x5fe   : > { %v6148_v24 = vadd.f32 1.0, %v8468_v56  ;;  %v6092_v18 = vmul.f32 0.5, %v6052_v54  ;;  %6476 = vmatprep.mubr.bf16.mxu0 %v6201_v47  ;;  %8481 = vtanh.f32 %v11335_v31  ;;  %v6054_v13 = vadd.f32 %v6053_v23, %v11241_v38 }
 0x5ff   : > { %v8470_v19 = vpop.eup %8469  ;;  %v6057_v59 = vpop.f32.mrf.mxu1  ;;  %6477 = vmatmul.mubr.bf16.gmra.mxu0 %v6200_v58  ;;  %v6179_v36 = vmul.f32 %v6147_v3, %v11295_v33 }
 0x600   : > { %v6149_v30 = vadd.f32 1.0, %v8470_v19  ;;  %8483 = vtanh.f32 %v6092_v18  ;;  %v6058_v8 = vadd.f32 %v6057_v59, %v11238_v48  ;;  %v6180_v49 = vmul.f32 %v6148_v24, %v11299_v9 }
 0x601   : > { %v6093_v62 = vmul.f32 0.5, %v6054_v13  ;;  %v6059_v20 = vpop.f32.mrf.mxu1 }
 0x602   : > { %v6181_v40 = vmul.f32 %v6149_v30, %v11304_v41  ;;  %v11344_v26 = vmul.f32 0.5, %v6058_v8  ;;  %v6060_v44 = vadd.f32 %v6059_v20, %v11241_v38  ;;  %v6202_v9 = vpack.c.bf16 %v6180_v49, %v6178_v5  ;;  %v8105_v30 = vld [vmem:[%s11583_s19 + $0x50] sm:$0xff]   ;;  %v8107_v49 = vld [vmem:[%s11583_s19 + $0x48] sm:$0xff]   ;;  %v8109_v20 = vld [vmem:[%s11583_s19 + $0x40] sm:$0xff]  }
 0x603   : > { %v8472_v51 = vpop.eup %8471  ;;  %8485 = vtanh.f32 %v6093_v62  ;;  %v6061_v25 = vpop.f32.mrf.mxu1  ;;  %v8106_v8 = vld [vmem:[%s11583_s19 + $0x10] sm:$0xff]  }
 0x604   : > { %v8474_v63 = vpop.eup %8473  ;;  %v6062_v28 = vadd.f32 %v6061_v25, %v11238_v48  ;;  %v6151_v52 = vadd.f32 1.0, %v8472_v51  ;;  %v6095_v43 = vmul.f32 0.5, %v6060_v44  ;;  %v6203_v41 = vpack.c.bf16 %v6181_v40, %v6179_v36  ;;  %v8110_v40 = vld [vmem:[%s11583_s19] sm:$0xff]  }
 0x605   : > { %v8476_v57 = vpop.eup %8475  ;;  %v6063_v15 = vpop.f32.mrf.mxu1  ;;  %8487 = vtanh.f32 %v11344_v26  ;;  %v6150_v53 = vadd.f32 1.0, %v8474_v63 }
 0x606   : > { %v6152_v42 = vadd.f32 1.0, %v8476_v57  ;;  %v6096_v4 = vmul.f32 0.5, %v6062_v28  ;;  %v6064_v1 = vadd.f32 %v6063_v15, %v11241_v38  ;;  %8489 = vtanh.f32 %v6095_v43  ;;  %6486 = vmatprep.mubr.bf16.mxu0 %v6203_v41 }
 0x607   : > { %v8478_v33 = vpop.eup %8477  ;;  %6487 = vmatmul.mubr.bf16.gmra.mxu0 %v6202_v9  ;;  %v6183_v48 = vmul.f32 %v6151_v52, %v11315_v14  ;;  %v6182_v29 = vmul.f32 %v6150_v53, %v11313_v35 }
 0x608   : > { %v6153_v32 = vadd.f32 1.0, %v8478_v33  ;;  %8491 = vtanh.f32 %v6096_v4  ;;  %v6097_v6 = vmul.f32 0.5, %v6064_v1  ;;  %v6184_v55 = vmul.f32 %v6152_v42, %v11319_v46 }
 0x609   : > { %v8480_v34 = vpop.eup %8479 }
 0x60a   : > { %v6185_v17 = vmul.f32 %v6153_v32, %v11324_v60  ;;  %8493 = vtanh.f32 %v6097_v6  ;;  %v6204_v11 = vpack.c.bf16 %v6184_v55, %v6182_v29  ;;  %v6154_v37 = vadd.f32 1.0, %v8480_v34 }
 0x60b   : > { %v8482_v27 = vpop.eup %8481 }
 0x60c   : > { %v6205_v38 = vpack.c.bf16 %v6185_v17, %v6183_v48  ;;  %v6155_v61 = vadd.f32 1.0, %v8482_v27  ;;  %v6186_v45 = vmul.f32 %v6154_v37, %v11332_v21  ;;  %v8104_v21 = vld [vmem:[%s11583_s19 + $0x18] sm:$0xff]  }
 0x60d   : > { %v8484_v22 = vpop.eup %8483  ;;  %7748 = vmatpush3.bf16.msra.mxu1 %v8104_v21 }
 0x60e   : > { %v6156_v10 = vadd.f32 1.0, %v8484_v22  ;;  %6496 = vmatprep.mubr.bf16.mxu0 %v6205_v38  ;;  %v6187_v46 = vmul.f32 %v6155_v61, %v11335_v31  ;;  %7749 = vmatprep.subr.bf16.mxu1 %v8105_v30 }
 0x60f   : > { %6497 = vmatmul.mubr.bf16.gmra.mxu0 %v6204_v11 }
 0x610   : > { %v8486_v7 = vpop.eup %8485  ;;  %v6188_v14 = vmul.f32 %v6156_v10, %v6092_v18 }
 0x611   : > { %v6157_v2 = vadd.f32 1.0, %v8486_v7  ;;  %7750 = vmatpush3.bf16.msra.mxu1 %v8106_v8 }
 0x612   : > { %v8488_v50 = vpop.eup %8487  ;;  %v6206_v47 = vpack.c.bf16 %v6188_v14, %v6186_v45  ;;  %7751 = vmatprep.subr.bf16.mxu1 %v8107_v49 }
 0x613   : > { %v6189_v60 = vmul.f32 %v6157_v2, %v6093_v62  ;;  %v8490_v39 = vpop.eup %8489  ;;  %v6158_v58 = vadd.f32 1.0, %v8488_v50  ;;  %v8108_v62 = vld [vmem:[%s11583_s19 + $0x8] sm:$0xff]  }
 0x614   : > { %v6159_v56 = vadd.f32 1.0, %v8490_v39 }
 0x615   : > { %v8492_v54 = vpop.eup %8491  ;;  %v6207_v35 = vpack.c.bf16 %v6189_v60, %v6187_v46  ;;  %v6190_v13 = vmul.f32 %v6158_v58, %v11344_v26  ;;  %7752 = vmatpush3.bf16.msra.mxu1 %v8108_v62  ;;  %v6242_v26 = vld [vmem:[%s11582_s18] sm:$0x3] }
 0x616   : > { %v6160_v23 = vadd.f32 1.0, %v8492_v54  ;;  %v6191_v12 = vmul.f32 %v6159_v56, %v6095_v43  ;;  %7753 = vmatprep.subr.bf16.mxu1 %v8109_v20  ;;  %v11384_v51 = vrot.slane %v6242_v26, %v10931_v16  ;;  %v11387_v5 = vrot.slane %v6242_v26, %v10938_v0 }
 0x617   : > { %v8494_v24 = vpop.eup %8493  ;;  %6506 = vmatprep.mubr.bf16.mxu0 %v6207_v35 }
 0x618   : > { %v6161_v19 = vadd.f32 1.0, %v8494_v24  ;;  %6507 = vmatmul.mubr.bf16.gmra.mxu0 %v6206_v47  ;;  %v6192_v3 = vmul.f32 %v6160_v23, %v6096_v4 }
 0x619   : > { %7754 = vmatpush3.bf16.msra.mxu1 %v8110_v40 }
 0x61a   : > { %v6193_v18 = vmul.f32 %v6161_v19, %v6097_v6  ;;  %v6208_v59 = vpack.c.bf16 %v6192_v3, %v6190_v13 }
 0x61c   : > { %v6209_v31 = vpack.c.bf16 %v6193_v18, %v6191_v12 }
 0x61e   : > { %6516 = vmatprep.mubr.bf16.mxu0 %v6209_v31 }
 0x620   : > { %6517 = vmatmul.mubr.bf16.gmra.mxu0 %v6208_v59 }
 0x6a6   : > { %v6448_v36 = vpop.f32.mrf.mxu0 }
 0x6a7   : > { %v6449_v44 = vadd.f32 %v6448_v36, %v11384_v51 }
 0x6a8   : > { %v6450_v25 = vpop.f32.mrf.mxu0 }
 0x6a9   : > { %v6451_v63 = vadd.f32 %v6450_v25, %v11387_v5  ;;  %v6527_v28 = vmul.f32 0.5, %v6449_v44 }
 0x6aa   : > { %v6452_v57 = vpop.f32.mrf.mxu0 }
 0x6ab   : > { %v6528_v9 = vmul.f32 0.5, %v6451_v63  ;;  %v6453_v52 = vadd.f32 %v6452_v57, %v11384_v51 }
 0x6ac   : > { %v6454_v43 = vpop.f32.mrf.mxu0 }
 0x6ad   : > { %8495 = vtanh.f32 %v6528_v9  ;;  %v6529_v15 = vmul.f32 0.5, %v6453_v52  ;;  %v6455_v16 = vadd.f32 %v6454_v43, %v11387_v5 }
 0x6ae   : > { %8497 = vtanh.f32 %v6527_v28  ;;  %v6458_v41 = vpop.f32.mrf.mxu0 }
 0x6af   : > { %8499 = vtanh.f32 %v6529_v15  ;;  %v6530_v0 = vmul.f32 0.5, %v6455_v16  ;;  %v6459_v42 = vadd.f32 %v6458_v41, %v11384_v51 }
 0x6b0   : > { %v6460_v4 = vpop.f32.mrf.mxu0 }
 0x6b1   : > { %8501 = vtanh.f32 %v6530_v0  ;;  %v11394_v1 = vmul.f32 0.5, %v6459_v42  ;;  %v6461_v33 = vadd.f32 %v6460_v4, %v11387_v5 }
 0x6b2   : > { %v6462_v53 = vpop.f32.mrf.mxu0 }
 0x6b3   : > { %v11397_v32 = vmul.f32 0.5, %v6461_v33  ;;  %v6463_v6 = vadd.f32 %v6462_v53, %v11384_v51  ;;  %8503 = vtanh.f32 %v11394_v1 }
 0x6b4   : > { %v6464_v48 = vpop.f32.mrf.mxu0 }
 0x6b5   : > { %v6533_v55 = vmul.f32 0.5, %v6463_v6  ;;  %v6465_v17 = vadd.f32 %v6464_v48, %v11387_v5  ;;  %8505 = vtanh.f32 %v11397_v32 }
 0x6b7   : > { %v6468_v34 = vpop.f32.mrf.mxu0  ;;  %8507 = vtanh.f32 %v6533_v55  ;;  %v6534_v27 = vmul.f32 0.5, %v6465_v17 }
 0x6b8   : > { %v6469_v29 = vadd.f32 %v6468_v34, %v11384_v51 }
 0x6b9   : > { %v6470_v38 = vpop.f32.mrf.mxu0  ;;  %8509 = vtanh.f32 %v6534_v27 }
 0x6ba   : > { %v8496_v22 = vpop.eup %8495  ;;  %v11404_v11 = vmul.f32 0.5, %v6469_v29  ;;  %v6471_v10 = vadd.f32 %v6470_v38, %v11387_v5 }
 0x6bb   : > { %v8498_v61 = vpop.eup %8497  ;;  %v6472_v7 = vpop.f32.mrf.mxu0  ;;  %v6592_v50 = vadd.f32 1.0, %v8496_v22 }
 0x6bc   : > { %v8500_v37 = vpop.eup %8499  ;;  %v11407_v2 = vmul.f32 0.5, %v6471_v10  ;;  %v6473_v14 = vadd.f32 %v6472_v7, %v11384_v51  ;;  %v6591_v45 = vadd.f32 1.0, %v8498_v61  ;;  %8511 = vtanh.f32 %v11404_v11 }
 0x6bd   : > { %v6593_v46 = vadd.f32 1.0, %v8500_v37  ;;  %v6474_v60 = vpop.f32.mrf.mxu0  ;;  %v6624_v19 = vmul.f32 %v6592_v50, %v6528_v9 }
 0x6be   : > { %v8502_v39 = vpop.eup %8501  ;;  %v11411_v54 = vmul.f32 0.5, %v6473_v14  ;;  %v6475_v35 = vadd.f32 %v6474_v60, %v11387_v5  ;;  %8513 = vtanh.f32 %v11407_v2  ;;  %v6623_v18 = vmul.f32 %v6591_v45, %v6527_v28 }
 0x6bf   : > { %v6594_v47 = vadd.f32 1.0, %v8502_v39  ;;  %v6478_v56 = vpop.f32.mrf.mxu0  ;;  %v6625_v23 = vmul.f32 %v6593_v46, %v6529_v15 }
 0x6c0   : > { %8515 = vtanh.f32 %v11411_v54  ;;  %v11416_v24 = vmul.f32 0.5, %v6475_v35  ;;  %v6479_v58 = vadd.f32 %v6478_v56, %v11384_v51  ;;  %v8504_v31 = vpop.eup %8503 }
 0x6c1   : > { %v6626_v12 = vmul.f32 %v6594_v47, %v6530_v0  ;;  %v6480_v3 = vpop.f32.mrf.mxu0  ;;  %v6655_v49 = vpack.c.bf16 %v6625_v23, %v6623_v18  ;;  %v6595_v63 = vadd.f32 1.0, %v8504_v31 }
 0x6c2   : > { %8517 = vtanh.f32 %v11416_v24  ;;  %v6481_v13 = vadd.f32 %v6480_v3, %v11387_v5  ;;  %v11421_v59 = vmul.f32 0.5, %v6479_v58  ;;  %v8506_v8 = vpop.eup %8505 }
 0x6c3   : > { %v6482_v21 = vpop.f32.mrf.mxu0  ;;  %v6656_v30 = vpack.c.bf16 %v6626_v12, %v6624_v19  ;;  %v6596_v28 = vadd.f32 1.0, %v8506_v8  ;;  %v6627_v33 = vmul.f32 %v6595_v63, %v11394_v1 }
 0x6c4   : > { %v11423_v62 = vmul.f32 0.5, %v6481_v13  ;;  %v8508_v20 = vpop.eup %8507  ;;  %v6483_v40 = vadd.f32 %v6482_v21, %v11384_v51 }
 0x6c5   : > { %v6484_v26 = vpop.f32.mrf.mxu0  ;;  %6838 = vmatprep.mubr.bf16.mxu1 %v6656_v30  ;;  %v6597_v36 = vadd.f32 1.0, %v8508_v20  ;;  %v6628_v53 = vmul.f32 %v6596_v28, %v11397_v32 }
 0x6c6   : > { %8519 = vtanh.f32 %v11423_v62  ;;  %v6485_v44 = vadd.f32 %v6484_v26, %v11387_v5  ;;  %6839 = vmatmul.mubr.bf16.vlgmr.msra.gmra.mxu1 %v6655_v49  ;;  %v8510_v25 = vpop.eup %8509  ;;  %v11429_v57 = vmul.f32 0.5, %v6483_v40 }
 0x6c7   : > { %8521 = vtanh.f32 %v11421_v59  ;;  %v6488_v9 = vpop.f32.mrf.mxu0  ;;  %v6598_v52 = vadd.f32 1.0, %v8510_v25  ;;  %v6629_v16 = vmul.f32 %v6597_v36, %v6533_v55 }
 0x6c8   : > { %v11431_v43 = vmul.f32 0.5, %v6485_v44  ;;  %v6489_v15 = vadd.f32 %v6488_v9, %v11384_v51  ;;  %8523 = vtanh.f32 %v11429_v57 }
 0x6c9   : > { %v6490_v0 = vpop.f32.mrf.mxu0  ;;  %v6630_v41 = vmul.f32 %v6598_v52, %v6534_v27  ;;  %v8512_v4 = vpop.eup %8511  ;;  %v6657_v22 = vpack.c.bf16 %v6629_v16, %v6627_v33 }
 0x6ca   : > { %8525 = vtanh.f32 %v11431_v43  ;;  %v11436_v42 = vmul.f32 0.5, %v6489_v15  ;;  %v6491_v6 = vadd.f32 %v6490_v0, %v11387_v5  ;;  %v6599_v7 = vadd.f32 1.0, %v8512_v4 }
 0x6cb   : > { %v6492_v48 = vpop.f32.mrf.mxu0  ;;  %v8514_v17 = vpop.eup %8513  ;;  %v6658_v27 = vpack.c.bf16 %v6630_v41, %v6628_v53 }
 0x6cc   : > { %v6493_v34 = vadd.f32 %v6492_v48, %v11384_v51  ;;  %v11442_v29 = vmul.f32 0.5, %v6491_v6  ;;  %8527 = vtanh.f32 %v11436_v42  ;;  %v6600_v37 = vadd.f32 1.0, %v8514_v17 }
 0x6cd   : > { %v8516_v55 = vpop.eup %8515  ;;  %v6494_v38 = vpop.f32.mrf.mxu0  ;;  %6846 = vmatprep.mubr.bf16.mxu1 %v6658_v27  ;;  %v6631_v23 = vmul.f32 %v6599_v7, %v11404_v11 }
 0x6ce   : > { %v6601_v10 = vadd.f32 1.0, %v8516_v55  ;;  %v11445_v61 = vmul.f32 0.5, %v6493_v34  ;;  %v6495_v1 = vadd.f32 %v6494_v38, %v11387_v5  ;;  %8529 = vtanh.f32 %v11442_v29  ;;  %6847 = vmatmul.mubr.bf16.gmra.mxu1 %v6657_v22 }
 0x6cf   : > { %v8518_v32 = vpop.eup %8517  ;;  %v6498_v14 = vpop.f32.mrf.mxu0  ;;  %v6632_v58 = vmul.f32 %v6600_v37, %v11407_v2 }
 0x6d0   : > { %v6602_v50 = vadd.f32 1.0, %v8518_v32  ;;  %8531 = vtanh.f32 %v11445_v61  ;;  %v11450_v46 = vmul.f32 0.5, %v6495_v1  ;;  %v6633_v60 = vmul.f32 %v6601_v10, %v11411_v54 }
 0x6d1   : > { %v6499_v39 = vadd.f32 %v6498_v14, %v11384_v51  ;;  %v6500_v45 = vpop.f32.mrf.mxu0 }
 0x6d2   : > { %v6634_v35 = vmul.f32 %v6602_v50, %v11416_v24  ;;  %8533 = vtanh.f32 %v11450_v46  ;;  %v6501_v47 = vadd.f32 %v6500_v45, %v11387_v5  ;;  %v6659_v24 = vpack.c.bf16 %v6633_v60, %v6631_v23 }
 0x6d3   : > { %v8520_v56 = vpop.eup %8519  ;;  %v11459_v19 = vmul.f32 0.5, %v6499_v39  ;;  %v6502_v12 = vpop.f32.mrf.mxu0 }
 0x6d4   : > { %v8522_v3 = vpop.eup %8521  ;;  %v11461_v18 = vmul.f32 0.5, %v6501_v47  ;;  %v6503_v54 = vadd.f32 %v6502_v12, %v11384_v51  ;;  %v6660_v31 = vpack.c.bf16 %v6634_v35, %v6632_v58  ;;  %v6604_v30 = vadd.f32 1.0, %v8520_v56 }
 0x6d5   : > { %v6504_v13 = vpop.f32.mrf.mxu0  ;;  %v8524_v21 = vpop.eup %8523  ;;  %v6603_v49 = vadd.f32 1.0, %v8522_v3 }
 0x6d6   : > { %8535 = vtanh.f32 %v11461_v18  ;;  %v11465_v8 = vmul.f32 0.5, %v6503_v54  ;;  %v6505_v11 = vadd.f32 %v6504_v13, %v11387_v5  ;;  %v6605_v20 = vadd.f32 1.0, %v8524_v21  ;;  %6854 = vmatprep.mubr.bf16.mxu1 %v6660_v31 }
 0x6d7   : > { %v8526_v2 = vpop.eup %8525  ;;  %8537 = vtanh.f32 %v11459_v19  ;;  %6855 = vmatmul.mubr.bf16.gmra.mxu1 %v6659_v24  ;;  %v6636_v28 = vmul.f32 %v6604_v30, %v11423_v62  ;;  %v6635_v16 = vmul.f32 %v6603_v49, %v11421_v59 }
 0x6d8   : > { %v6508_v40 = vpop.f32.mrf.mxu0  ;;  %v6606_v26 = vadd.f32 1.0, %v8526_v2  ;;  %8539 = vtanh.f32 %v11465_v8  ;;  %v11470_v36 = vmul.f32 0.5, %v6505_v11  ;;  %v6637_v25 = vmul.f32 %v6605_v20, %v11429_v57 }
 0x6d9   : > { %v6509_v44 = vadd.f32 %v6508_v40, %v11384_v51  ;;  %v8528_v15 = vpop.eup %8527 }
 0x6da   : > { %v6510_v63 = vpop.f32.mrf.mxu0  ;;  %v6638_v9 = vmul.f32 %v6606_v26, %v11431_v43  ;;  %8541 = vtanh.f32 %v11470_v36  ;;  %v6661_v6 = vpack.c.bf16 %v6637_v25, %v6635_v16  ;;  %v6607_v38 = vadd.f32 1.0, %v8528_v15 }
 0x6db   : > { %v11477_v52 = vmul.f32 0.5, %v6509_v44  ;;  %v6511_v0 = vadd.f32 %v6510_v63, %v11387_v5  ;;  %v8530_v4 = vpop.eup %8529 }
 0x6dc   : > { %v6512_v41 = vpop.f32.mrf.mxu0  ;;  %v6662_v53 = vpack.c.bf16 %v6638_v9, %v6636_v28  ;;  %v6608_v48 = vadd.f32 1.0, %v8530_v4  ;;  %v6639_v39 = vmul.f32 %v6607_v38, %v11436_v42  ;;  %v11504_v38 = vld [vmem:[%s11584_s20] ss:$0 sm:$0xff] }
 0x6dd   : > { %v6513_v33 = vadd.f32 %v6512_v41, %v11384_v51  ;;  %v8532_v57 = vpop.eup %8531  ;;  %8543 = vtanh.f32 %v11477_v52  ;;  %v11483_v62 = vmul.f32 0.5, %v6511_v0 }
 0x6de   : > { %v6514_v43 = vpop.f32.mrf.mxu0  ;;  %v6609_v17 = vadd.f32 1.0, %v8532_v57  ;;  %6862 = vmatprep.mubr.bf16.mxu1 %v6662_v53  ;;  %v6640_v37 = vmul.f32 %v6608_v48, %v11442_v29 }
 0x6df   : > { %v6553_v34 = vmul.f32 0.5, %v6513_v33  ;;  %v6515_v55 = vadd.f32 %v6514_v43, %v11387_v5  ;;  %v8534_v59 = vpop.eup %8533  ;;  %8545 = vtanh.f32 %v11483_v62  ;;  %6863 = vmatmul.mubr.bf16.gmra.mxu1 %v6661_v6 }
 0x6e0   : > { %v6518_v27 = vpop.f32.mrf.mxu0  ;;  %v6610_v22 = vadd.f32 1.0, %v8534_v59  ;;  %v6641_v1 = vmul.f32 %v6609_v17, %v11445_v61 }
 0x6e1   : > { %8547 = vtanh.f32 %v6553_v34  ;;  %v6554_v10 = vmul.f32 0.5, %v6515_v55  ;;  %v6519_v32 = vadd.f32 %v6518_v27, %v11384_v51 }
 0x6e2   : > { %v6520_v7 = vpop.f32.mrf.mxu0  ;;  %v6642_v14 = vmul.f32 %v6610_v22, %v11450_v46  ;;  %v6663_v12 = vpack.c.bf16 %v6641_v1, %v6639_v39 }
 0x6e3   : > { %8549 = vtanh.f32 %v6554_v10  ;;  %v6521_v50 = vadd.f32 %v6520_v7, %v11387_v5  ;;  %v8536_v60 = vpop.eup %8535  ;;  %v6555_v45 = vmul.f32 0.5, %v6519_v32  ;;  %v7194_v32 = vpop.permute.xlu0 %7193 }
 0x6e4   : > { %v6522_v35 = vpop.f32.mrf.mxu0  ;;  %v8538_v47 = vpop.eup %8537  ;;  %v6664_v61 = vpack.c.bf16 %v6642_v14, %v6640_v37  ;;  %v6612_v54 = vadd.f32 1.0, %v8536_v60 }
 0x6e5   : > { %v6556_v56 = vmul.f32 0.5, %v6521_v50  ;;  %v6523_v23 = vadd.f32 %v6522_v35, %v11384_v51  ;;  %v8540_v58 = vpop.eup %8539  ;;  %8551 = vtanh.f32 %v6555_v45  ;;  %v6611_v42 = vadd.f32 1.0, %v8538_v47  ;;  %v7199_v60 = vpop.permute.xlu1 %7198 }
 0x6e6   : > { %v6524_v3 = vpop.f32.mrf.mxu0  ;;  %v6613_v29 = vadd.f32 1.0, %v8540_v58  ;;  %6870 = vmatprep.mubr.bf16.mxu1 %v6664_v61  ;;  %v6644_v51 = vmul.f32 %v6612_v54, %v11461_v18 }
 0x6e7   : > { %v6557_v46 = vmul.f32 0.5, %v6523_v23  ;;  %v8542_v13 = vpop.eup %8541  ;;  %8553 = vtanh.f32 %v6556_v56  ;;  %v6525_v31 = vadd.f32 %v6524_v3, %v11387_v5  ;;  %6871 = vmatmul.mubr.bf16.gmra.mxu1 %v6663_v12  ;;  %v6643_v20 = vmul.f32 %v6611_v42, %v11459_v19  ;;  %v7204_v61 = vpop.permute.xlu0 %7203 }
 0x6e8   : > { %v6614_v24 = vadd.f32 1.0, %v8542_v13  ;;  %v6645_v11 = vmul.f32 %v6613_v29, %v11465_v8 }
 0x6e9   : > { %8555 = vtanh.f32 %v6557_v46  ;;  %v6558_v21 = vmul.f32 0.5, %v6525_v31 }
 0x6ea   : > { %v8544_v30 = vpop.eup %8543  ;;  %v6646_v2 = vmul.f32 %v6614_v24, %v11470_v36  ;;  %v6665_v44 = vpack.c.bf16 %v6645_v11, %v6643_v20 }
 0x6eb   : > { %8557 = vtanh.f32 %v6558_v21  ;;  %v6615_v28 = vadd.f32 1.0, %v8544_v30  ;;  %v7214_v30 = vpop.permute.xlu0 %7213 }
 0x6ec   : > { %v8546_v49 = vpop.eup %8545  ;;  %v6666_v40 = vpack.c.bf16 %v6646_v2, %v6644_v51 }
 0x6ed   : > { %v6616_v5 = vadd.f32 1.0, %v8546_v49  ;;  %v6647_v0 = vmul.f32 %v6615_v28, %v11477_v52 }
 0x6ee   : > { %v8548_v26 = vpop.eup %8547  ;;  %6878 = vmatprep.mubr.bf16.mxu1 %v6666_v40 }
 0x6ef   : > { %v6617_v25 = vadd.f32 1.0, %v8548_v26  ;;  %6879 = vmatmul.mubr.bf16.gmra.mxu1 %v6665_v44  ;;  %v6648_v18 = vmul.f32 %v6616_v5, %v11483_v62  ;;  %v7224_v28 = vpop.permute.xlu0 %7223 }
 0x6f0   : > { %v8550_v63 = vpop.eup %8549 }
 0x6f1   : > { %v6618_v9 = vadd.f32 1.0, %v8550_v63  ;;  %v6649_v15 = vmul.f32 %v6617_v25, %v6553_v34 }
 0x6f2   : > { %v8552_v16 = vpop.eup %8551 }
 0x6f3   : > { %v6650_v8 = vmul.f32 %v6618_v9, %v6554_v10  ;;  %v6667_v4 = vpack.c.bf16 %v6649_v15, %v6647_v0  ;;  %v6619_v43 = vadd.f32 1.0, %v8552_v16 }
 0x6f4   : > { %v8554_v36 = vpop.eup %8553 }
 0x6f5   : > { %v6668_v41 = vpack.c.bf16 %v6650_v8, %v6648_v18  ;;  %v6620_v53 = vadd.f32 1.0, %v8554_v36  ;;  %v6651_v34 = vmul.f32 %v6619_v43, %v6555_v45 }
 0x6f6   : > { %v8556_v19 = vpop.eup %8555 }
 0x6f7   : > { %v6621_v33 = vadd.f32 1.0, %v8556_v19  ;;  %6886 = vmatprep.mubr.bf16.mxu1 %v6668_v41  ;;  %v6652_v17 = vmul.f32 %v6620_v53, %v6556_v56  ;;  %v7234_v53 = vpop.permute.xlu0 %7233 }
 0x6f8   : > { %v8558_v57 = vpop.eup %8557  ;;  %6887 = vmatmul.mubr.bf16.gmra.mxu1 %v6667_v4 }
 0x6f9   : > { %v6622_v6 = vadd.f32 1.0, %v8558_v57  ;;  %v6653_v48 = vmul.f32 %v6621_v33, %v6557_v46  ;;  %v7209_v46 = vpop.permute.xlu1 %7208 }
 0x6fb   : > { %v6654_v62 = vmul.f32 %v6622_v6, %v6558_v21  ;;  %v6669_v59 = vpack.c.bf16 %v6653_v48, %v6651_v34 }
 0x6fd   : > { %v6670_v55 = vpack.c.bf16 %v6654_v62, %v6652_v17  ;;  %v7219_v40 = vpop.permute.xlu1 %7218 }
 0x6ff   : > { %6894 = vmatprep.mubr.bf16.mxu1 %v6670_v55 }
 0x700   : > { %6895 = vmatmul.mubr.bf16.gmra.mxu1 %v6669_v59 }
 0x701   : > { %v7229_v36 = vpop.permute.xlu1 %7228 }
 0x705   : > { %v7239_v62 = vpop.permute.xlu1 %7238 }
 0x786   : > { %v7755_v52 = vpop.f32.mrf.mxu1 }
 0x788   : > { %v7756_v27 = vpop.f32.mrf.mxu1 }
 0x789   : > { %v7757_v22 = vadd.f32 %v7756_v27, %v7755_v52 }
 0x78a   : > { %v7758_v10 = vpop.f32.mrf.mxu1 }
 0x78b   : > { %v6841_v1 = vadd.f32 %v7757_v22, %v11504_v38  ;;  %v7244_v22 = vpop.permute.xlu0 %7243 }
 0x78c   : > { %v7759_v7 = vpop.f32.mrf.mxu1 }
 0x78d   : > { %v7271_v37 = vmul.f32 %v7194_v32, %v6841_v1  ;;  %v7760_v14 = vadd.f32 %v7759_v7, %v7758_v10 }
 0x78e   : > { %v7761_v39 = vpop.f32.mrf.mxu1 }
 0x78f   : > { %7287 = vst.msk [vmem:[%s11512_s3] sm:$0xff] %vm4795_vm5, %v7271_v37  ;;  %v6844_v50 = vadd.f32 %v7760_v14, %v11504_v38  ;;  %v7249_v14 = vpop.permute.xlu1 %7248 }
 0x790   : > { %v7762_v35 = vpop.f32.mrf.mxu1 }
 0x791   : > { %v7272_v45 = vmul.f32 %v7199_v60, %v6844_v50  ;;  %v7763_v47 = vadd.f32 %v7762_v35, %v7761_v39 }
 0x792   : > { %v7764_v56 = vpop.f32.mrf.mxu1 }
 0x793   : > { %7288 = vst.msk [vmem:[%s11512_s3 + $0x8] sm:$0xff] %vm4795_vm5, %v7272_v45  ;;  %v6849_v23 = vadd.f32 %v7763_v47, %v11504_v38  ;;  %v7254_v47 = vpop.permute.xlu0 %7253 }
 0x794   : > { %v7765_v58 = vpop.f32.mrf.mxu1 }
 0x795   : > { %v7273_v12 = vmul.f32 %v7204_v61, %v6849_v23  ;;  %v7766_v3 = vadd.f32 %v7765_v58, %v7764_v56 }
 0x797   : > { %v7767_v54 = vpop.f32.mrf.mxu1  ;;  %7289 = vst.msk [vmem:[%s11512_s3 + $0x10] sm:$0xff] %vm4795_vm5, %v7273_v12  ;;  %v6852_v29 = vadd.f32 %v7766_v3, %v11504_v38  ;;  %v7259_v3 = vpop.permute.xlu1 %7258 }
 0x799   : > { %v7768_v13 = vpop.f32.mrf.mxu1  ;;  %v7274_v31 = vmul.f32 %v7209_v46, %v6852_v29 }
 0x79a   : > { %v7769_v42 = vadd.f32 %v7768_v13, %v7767_v54 }
 0x79b   : > { %v7770_v24 = vpop.f32.mrf.mxu1  ;;  %7290 = vst.msk [vmem:[%s11512_s3 + $0x18] sm:$0xff] %vm4795_vm5, %v7274_v31 }
 0x79c   : > { %v6857_v21 = vadd.f32 %v7769_v42, %v11504_v38  ;;  %v7264_v42 = vpop.permute.xlu0 %7263 }
 0x79d   : > { %v7771_v51 = vpop.f32.mrf.mxu1 }
 0x79e   : > { %v7275_v11 = vmul.f32 %v7214_v30, %v6857_v21  ;;  %v7772_v2 = vadd.f32 %v7771_v51, %v7770_v24 }
 0x79f   : > { %v7773_v49 = vpop.f32.mrf.mxu1 }
 0x7a0   : > { %7291 = vst.msk [vmem:[%s11512_s3 + $0x20] sm:$0xff] %vm4795_vm5, %v7275_v11  ;;  %v6860_v20 = vadd.f32 %v7772_v2, %v11504_v38  ;;  %v7269_v11 = vpop.permute.xlu1 %7268 }
 0x7a1   : > { %v7774_v26 = vpop.f32.mrf.mxu1 }
 0x7a2   : > { %v7276_v44 = vmul.f32 %v7219_v40, %v6860_v20  ;;  %v7775_v5 = vadd.f32 %v7774_v26, %v7773_v49 }
 0x7a3   : > { %v7776_v25 = vpop.f32.mrf.mxu1 }
 0x7a4   : > { %7292 = vst.msk [vmem:[%s11512_s3 + $0x28] sm:$0xff] %vm4795_vm5, %v7276_v44  ;;  %v6865_v63 = vadd.f32 %v7775_v5, %v11504_v38 }
 0x7a5   : > { %v7777_v9 = vpop.f32.mrf.mxu1 }
 0x7a6   : > { %v7277_v18 = vmul.f32 %v7224_v28, %v6865_v63  ;;  %v7778_v15 = vadd.f32 %v7777_v9, %v7776_v25 }
 0x7a7   : > { %v7779_v8 = vpop.f32.mrf.mxu1 }
 0x7a8   : > { %7293 = vst.msk [vmem:[%s11512_s3 + $0x30] sm:$0xff] %vm4795_vm5, %v7277_v18  ;;  %v6868_v16 = vadd.f32 %v7778_v15, %v11504_v38 }
 0x7a9   : > { %v7780_v0 = vpop.f32.mrf.mxu1 }
 0x7aa   : > { %v7278_v41 = vmul.f32 %v7229_v36, %v6868_v16  ;;  %v7781_v19 = vadd.f32 %v7780_v0, %v7779_v8 }
 0x7ab   : > { %v7782_v4 = vpop.f32.mrf.mxu1 }
 0x7ac   : > { %7294 = vst.msk [vmem:[%s11512_s3 + $0x38] sm:$0xff] %vm4795_vm5, %v7278_v41  ;;  %v6873_v33 = vadd.f32 %v7781_v19, %v11504_v38 }
 0x7ad   : > { %v7783_v57 = vpop.f32.mrf.mxu1 }
 0x7ae   : > { %v7279_v43 = vmul.f32 %v7234_v53, %v6873_v33  ;;  %v7784_v6 = vadd.f32 %v7783_v57, %v7782_v4 }
 0x7af   : > { %v7785_v48 = vpop.f32.mrf.mxu1 }
 0x7b0   : > { %7295 = vst.msk [vmem:[%s11512_s3 + $0x40] sm:$0xff] %vm4795_vm5, %v7279_v43  ;;  %v6876_v17 = vadd.f32 %v7784_v6, %v11504_v38 }
 0x7b1   : > { %v7786_v34 = vpop.f32.mrf.mxu1 }
 0x7b2   : > { %v7280_v55 = vmul.f32 %v7239_v62, %v6876_v17  ;;  %v7787_v59 = vadd.f32 %v7786_v34, %v7785_v48 }
 0x7b3   : > { %v7788_v52 = vpop.f32.mrf.mxu1 }
 0x7b4   : > { %7296 = vst.msk [vmem:[%s11512_s3 + $0x48] sm:$0xff] %vm4795_vm5, %v7280_v55  ;;  %v6881_v27 = vadd.f32 %v7787_v59, %v11504_v38 }
 0x7b5   : > { %v7789_v10 = vpop.f32.mrf.mxu1 }
 0x7b6   : > { %v7281_v1 = vmul.f32 %v7244_v22, %v6881_v27  ;;  %v7790_v32 = vadd.f32 %v7789_v10, %v7788_v52 }
 0x7b8   : > { %v7791_v7 = vpop.f32.mrf.mxu1  ;;  %7297 = vst.msk [vmem:[%s11512_s3 + $0x50] sm:$0xff] %vm4795_vm5, %v7281_v1  ;;  %v6884_v37 = vadd.f32 %v7790_v32, %v11504_v38 }
 0x7ba   : > { %v7792_v50 = vpop.f32.mrf.mxu1  ;;  %v7282_v60 = vmul.f32 %v7249_v14, %v6884_v37 }
 0x7bb   : > { %v7793_v39 = vadd.f32 %v7792_v50, %v7791_v7 }
 0x7bc   : > { %v7794_v45 = vpop.f32.mrf.mxu1  ;;  %7298 = vst.msk [vmem:[%s11512_s3 + $0x58] sm:$0xff] %vm4795_vm5, %v7282_v60 }
 0x7bd   : > { %v6889_v35 = vadd.f32 %v7793_v39, %v11504_v38 }
 0x7be   : > { %v7795_v56 = vpop.f32.mrf.mxu1 }
 0x7bf   : > { %v7283_v23 = vmul.f32 %v7254_v47, %v6889_v35  ;;  %v7796_v61 = vadd.f32 %v7795_v56, %v7794_v45 }
 0x7c0   : > { %v7797_v58 = vpop.f32.mrf.mxu1 }
 0x7c1   : > { %7299 = vst.msk [vmem:[%s11512_s3 + $0x60] sm:$0xff] %vm4795_vm5, %v7283_v23  ;;  %v6892_v12 = vadd.f32 %v7796_v61, %v11504_v38 }
 0x7c2   : > { %v7798_v54 = vpop.f32.mrf.mxu1 }
 0x7c3   : > { %v7284_v29 = vmul.f32 %v7259_v3, %v6892_v12  ;;  %v7799_v46 = vadd.f32 %v7798_v54, %v7797_v58 }
 0x7c4   : > { %v7800_v13 = vpop.f32.mrf.mxu1 }
 0x7c5   : > { %7300 = vst.msk [vmem:[%s11512_s3 + $0x68] sm:$0xff] %vm4795_vm5, %v7284_v29  ;;  %v6897_v31 = vadd.f32 %v7799_v46, %v11504_v38 }
 0x7c6   : > { %v7801_v24 = vpop.f32.mrf.mxu1 }
 0x7c7   : > { %v7285_v21 = vmul.f32 %v7264_v42, %v6897_v31  ;;  %v7802_v30 = vadd.f32 %v7801_v24, %v7800_v13 }
 0x7c9   : > { %7301 = vst.msk [vmem:[%s11512_s3 + $0x70] sm:$0xff] %vm4795_vm5, %v7285_v21  ;;  %v6900_v51 = vadd.f32 %v7802_v30, %v11504_v38 }
 0x7cb   : > { %v7286_v2 = vmul.f32 %v7269_v11, %v6900_v51 }
 0x7cd   : > { %7302 = vst.msk [vmem:[%s11512_s3 + $0x78] sm:$0xff] %vm4795_vm5, %v7286_v2 }
 0x7ce PF: > { %s31_s2 = sadd.s32 1, %s8567_s2  }
 0x7cf   : > { %p28_p4 = scmp.ge.s32.totalorder %s31_s2, 4  }
 0x7d1   :  { %30 = sbr.rel (!%p28_p4) target bundleno = 7 (0x7), region = 140 }

</bundles_post_ra>
